<compile_context>
chip_gen: v5e
topology: v5e:2x2
jax: 0.10.0
libtpu: 0.0.40
codegen_flags: <defaults>
</compile_context>

<pallas_src>
import functools

import jax
import jax.numpy as jnp
from jax import lax
from jax.experimental import pallas as pl
from jax.experimental.pallas import tpu as pltpu


# --------------------------------------------------------------------------- #
# Fully fused Seq2Seq forward kernel (one grid step = one group of batch rows)
# --------------------------------------------------------------------------- #
def seq2seq_kernel(x_t_ref, ch_ref, mask0_ref,
                   ewih_ref, ewhh_ref, ebih_ref, ebhh_ref,
                   dwih_ref, dwhh_ref, dbih_ref, dbhh_ref,
                   wout_ref, bout_ref,
                   loss_ref,
                   gi_enc_ref,
                   *, enc_layers, dec_layers, n_nodes, hidden, batch_g,
                   input_dim, unroll):
    H = hidden
    N = n_nodes
    BG = batch_g
    DP = x_t_ref.shape[2]

    # ---- hoist loop-invariant weight/bias loads (whole weight set is ~a few vregs) --
    e_wih = [ewih_ref[l] for l in range(enc_layers)]
    e_whh = [ewhh_ref[l] for l in range(enc_layers)]
    e_bih = [ebih_ref[l] for l in range(enc_layers)]
    e_bhh = [ebhh_ref[l] for l in range(enc_layers)]
    d_wih = [dwih_ref[l] for l in range(dec_layers)]
    d_whh = [dwhh_ref[l] for l in range(dec_layers)]
    d_bih = [dbih_ref[l] for l in range(dec_layers)]
    d_bhh = [dbhh_ref[l] for l in range(dec_layers)]
    w_out = wout_ref[...]                                   # (H, N)
    b_out = bout_ref[...]                                   # (1, N)
    coord_ch = [ch_ref[d] for d in range(input_dim)]        # (BG, N) each, lane layout

    def gru_gates(gi, gh, h_prev):
        # PyTorch GRU gate order (r, z, n); b_hn stays inside the r-gated term.
        r = jax.nn.sigmoid(gi[:, 0:H] + gh[:, 0:H])
        z = jax.nn.sigmoid(gi[:, H:2 * H] + gh[:, H:2 * H])
        n = jnp.tanh(gi[:, 2 * H:3 * H] + r * gh[:, 2 * H:3 * H])
        return (1.0 - z) * n + z * h_prev

    # ---- encoder ------------------------------------------------------------
    # Layer-0 input projections for all timesteps in ONE matmul (fills MXU sublanes),
    # layer-0 input bias folded in; the recurrence keeps only the h @ W_hh matmul.
    x_flat = x_t_ref[...].reshape(N * BG, DP)                               # (N*BG, DP)
    gi_enc_ref[...] = jnp.dot(x_flat, e_wih[0],
                              preferred_element_type=jnp.float32) + e_bih[0]

    def enc_step(t, hs):
        new_hs = []
        inp = None
        for l in range(enc_layers):
            h_prev = hs[l]
            if l == 0:
                row = pl.multiple_of(t * BG, BG)
                gi = gi_enc_ref[pl.ds(row, BG), :]                          # (BG, 3H)
            else:
                gi = jnp.dot(inp, e_wih[l],
                             preferred_element_type=jnp.float32) + e_bih[l]
            gh = jnp.dot(h_prev, e_whh[l],
                         preferred_element_type=jnp.float32) + e_bhh[l]
            h_new = gru_gates(gi, gh, h_prev)
            new_hs.append(h_new)
            inp = h_new
        return tuple(new_hs)

    hs0 = tuple(jnp.zeros((BG, H), jnp.float32) for _ in range(enc_layers))
    h_enc = lax.fori_loop(0, N, enc_step, hs0, unroll=unroll)

    # ---- decoder ------------------------------------------------------------
    # The reference re-feeds the encoder's final hidden every step, so the hidden-side
    # gate projection of every decoder layer is loop-invariant -> hoist (bias folded).
    gh_dec = [jnp.dot(h_enc[l], d_whh[l],
                      preferred_element_type=jnp.float32) + d_bhh[l]
              for l in range(dec_layers)]

    iota = lax.broadcasted_iota(jnp.int32, (BG, N), 1)                      # node ids
    lane = lax.broadcasted_iota(jnp.int32, (1, DP), 1)
    basis = [(lane == d).astype(jnp.float32) for d in range(input_dim)]     # (1, DP)

    def dec_step(t, carry):
        dec_in, visited, acc = carry                 # (BG, DP), (BG, N), (BG, 1)
        inp = dec_in
        h_new = inp
        for l in range(dec_layers):
            gi = jnp.dot(inp, d_wih[l],
                         preferred_element_type=jnp.float32) + d_bih[l]
            h_new = gru_gates(gi, gh_dec[l], h_enc[l])
            inp = h_new

        out = jnp.tanh(h_new)                                               # (BG, H)
        logits = jnp.dot(out, w_out,
                         preferred_element_type=jnp.float32) + b_out        # (BG, N)
        masked = jnp.where(visited != 0.0, -jnp.inf, logits)                # masked_fill

        # argmax (first max index, matches torch.argmax); softmax dropped since only
        # the argmax is consumed. If ALL nodes were already visited the index falls
        # back to 0 (unreachable within the N decode steps of an N-node tour).
        m = jnp.max(masked, axis=-1, keepdims=True)
        idx = jnp.min(jnp.where(masked == m, iota, jnp.int32(2 ** 30)),
                      axis=-1, keepdims=True)                               # (BG, 1)
        onehot = (iota == idx).astype(jnp.float32)                          # (BG, N)

        # Gather the selected node coords per row: VPU multiply + lane reduction per
        # coordinate channel (keeps the MXU off the serial argmax->gather chain).
        sel = jnp.zeros((BG, DP), jnp.float32)
        for d in range(input_dim):
            sel_d = jnp.sum(onehot * coord_ch[d], axis=-1, keepdims=True)   # (BG, 1)
            sel = sel + sel_d * basis[d]

        # env.step "loss": Euclidean distance from the previous position.
        diff = sel - dec_in
        step_loss = jnp.sqrt(jnp.sum(diff * diff, axis=-1, keepdims=True))  # (BG, 1)

        return (sel, jnp.maximum(visited, onehot), acc + step_loss)

    carry0 = (jnp.zeros((BG, DP), jnp.float32),     # dec_in = zeros (origin)
              mask0_ref[...],                       # initial visited mask from state
              jnp.zeros((BG, 1), jnp.float32))      # accumulated loss
    _, _, acc = lax.fori_loop(0, N, dec_step, carry0, unroll=unroll)

    loss_ref[...] = acc


# --------------------------------------------------------------------------- #
# Host wrapper: single pallas_call, batch rows in sublanes, grid over row groups
# --------------------------------------------------------------------------- #
def seq2seq_forward(state, params, input_dim):
    # state: (B, N, 4) -> [:, :, :2] node coords, [:, :, 3] visited mask
    B, N, _ = state.shape
    L_enc, DP, G3 = params["enc_wih"].shape
    H = G3 // 3
    L_dec = params["dec_wih"].shape[0]
    OUT = params["out_w"].shape[1]
    assert OUT == N        # masked_fill broadcast in the reference requires output_dim == N
    assert L_enc == L_dec  # reference feeds encoder hidden straight into the decoder

    BG = 8                                           # f32 sublane count: rows per program
    B_pad = ((B + BG - 1) // BG) * BG
    num_groups = B_pad // BG

    coords = state[:, :, :input_dim]                                       # (B, N, in)
    coords_b = jnp.pad(coords, ((0, B_pad - B), (0, 0), (0, 0)))           # (B_pad, N, in)
    x_t = jnp.pad(jnp.transpose(coords_b, (1, 0, 2)),
                  ((0, 0), (0, 0), (0, DP - input_dim)))                   # (N, B_pad, DP)
    coords_ch = jnp.transpose(coords_b, (2, 0, 1))                         # (in, B_pad, N)
    mask0 = jnp.pad(state[:, :, 3], ((0, B_pad - B), (0, 0)))              # (B_pad, N)

    unroll = True if N <= 16 else 8                  # full unroll only for small tours

    kernel = functools.partial(
        seq2seq_kernel, enc_layers=L_enc, dec_layers=L_dec,
        n_nodes=N, hidden=H, batch_g=BG, input_dim=input_dim, unroll=unroll)

    def fixed(arr):
        nd = arr.ndim
        return pl.BlockSpec(arr.shape, lambda g, _n=nd: (0,) * _n)

    loss = pl.pallas_call(
        kernel,
        out_shape=jax.ShapeDtypeStruct((B_pad, 1), jnp.float32),
        grid=(num_groups,),
        in_specs=[
            pl.BlockSpec((N, BG, DP), lambda g: (0, g, 0)),         # encoder inputs
            pl.BlockSpec((input_dim, BG, N), lambda g: (0, g, 0)),  # coord channels
            pl.BlockSpec((BG, N), lambda g: (g, 0)),                # initial visited mask
            fixed(params["enc_wih"]), fixed(params["enc_whh"]),
            fixed(params["enc_bih"]), fixed(params["enc_bhh"]),
            fixed(params["dec_wih"]), fixed(params["dec_whh"]),
            fixed(params["dec_bih"]), fixed(params["dec_bhh"]),
            fixed(params["out_w"]), fixed(params["out_b"]),
        ],
        out_specs=pl.BlockSpec((BG, 1), lambda g: (g, 0)),
        scratch_shapes=[pltpu.VMEM((N * BG, 3 * H), jnp.float32)],
        compiler_params=pltpu.CompilerParams(
            dimension_semantics=("parallel",)),
    )(x_t, coords_ch, mask0,
      params["enc_wih"], params["enc_whh"], params["enc_bih"], params["enc_bhh"],
      params["dec_wih"], params["dec_whh"], params["dec_bih"], params["dec_bhh"],
      params["out_w"], params["out_b"])

    return loss[:B, 0]


# --------------------------------------------------------------------------- #
# Deterministic parameter init (PyTorch-style U(-1/sqrt(H), 1/sqrt(H))),
# gate-stacked and pre-transposed for fused in-kernel matmuls.
# --------------------------------------------------------------------------- #
def _gru_layer_params(key, in_dim, H, DP, bound):
    k1, k2, k3, k4 = jax.random.split(key, 4)
    w_ih = jax.random.uniform(k1, (3 * H, in_dim), jnp.float32, minval=-bound, maxval=bound)
    w_hh = jax.random.uniform(k2, (3 * H, H), jnp.float32, minval=-bound, maxval=bound)
    b_ih = jax.random.uniform(k3, (3 * H,), jnp.float32, minval=-bound, maxval=bound)
    b_hh = jax.random.uniform(k4, (3 * H,), jnp.float32, minval=-bound, maxval=bound)
    w_ih_t = jnp.pad(jnp.transpose(w_ih), ((0, DP - in_dim), (0, 0)))      # (DP, 3H)
    w_hh_t = jnp.transpose(w_hh)                                           # (H, 3H)
    return w_ih_t, w_hh_t, b_ih.reshape(1, 3 * H), b_hh.reshape(1, 3 * H)


def _stack_gru(key, L, input_dim, H, DP, bound):
    keys = jax.random.split(key, L)
    wihs, whhs, bihs, bhhs = [], [], [], []
    for l in range(L):
        in_dim = input_dim if l == 0 else H
        a, b, c, d = _gru_layer_params(keys[l], in_dim, H, DP, bound)
        wihs.append(a); whhs.append(b); bihs.append(c); bhhs.append(d)
    return jnp.stack(wihs), jnp.stack(whhs), jnp.stack(bihs), jnp.stack(bhhs)


def init_params(key, input_dim, hidden_dim, output_dim, enc_layers, dec_layers):
    H = hidden_dim
    DP = hidden_dim   # padded input-feature dim so all layers share one weight stack
    assert input_dim <= DP
    bound = 1.0 / (H ** 0.5)
    k_enc, k_dec, k_out_w, k_out_b = jax.random.split(key, 4)

    enc_wih, enc_whh, enc_bih, enc_bhh = _stack_gru(k_enc, enc_layers, input_dim, H, DP, bound)
    dec_wih, dec_whh, dec_bih, dec_bhh = _stack_gru(k_dec, dec_layers, input_dim, H, DP, bound)

    w_out = jax.random.uniform(k_out_w, (output_dim, H), jnp.float32, minval=-bound, maxval=bound)
    b_out = jax.random.uniform(k_out_b, (output_dim,), jnp.float32, minval=-bound, maxval=bound)

    return {
        "enc_wih": enc_wih, "enc_whh": enc_whh, "enc_bih": enc_bih, "enc_bhh": enc_bhh,
        "dec_wih": dec_wih, "dec_whh": dec_whh, "dec_bih": dec_bih, "dec_bhh": dec_bhh,
        "out_w": jnp.transpose(w_out),            # (H, OUT)
        "out_b": b_out.reshape(1, output_dim),    # (1, OUT)
    }


if __name__ == "__main__":
    key = jax.random.PRNGKey(0)
    input_dim = 2
    hidden_dim = 32
    num_nodes = 8
    batch = 2
    output_dim = num_nodes       # logits masked against the N-node visited mask
    enc_layers = dec_layers = 1

    pkey, skey = jax.random.split(key)
    params = init_params(pkey, input_dim, hidden_dim, output_dim, enc_layers, dec_layers)

    coords = jax.random.uniform(skey, (batch, num_nodes, 2), jnp.float32)
    state = jnp.concatenate(
        [coords,
         jnp.zeros((batch, num_nodes, 1), jnp.float32),   # unused feature channel
         jnp.zeros((batch, num_nodes, 1), jnp.float32)],  # visited mask (initially all 0)
        axis=-1)                                          # (B, N, 4)

    # TODO(synk): the reference drives the decode loop with an external TSPEnv; here a
    # minimal deterministic TSP-style env (visited mask + Euclidean step cost from the
    # zero origin, no return-to-start leg) is simulated inside the fused kernel.
    fwd = jax.jit(seq2seq_forward, static_argnums=2)
    acc_loss = fwd(state, params, input_dim)
    jax.block_until_ready(acc_loss)
    assert acc_loss.shape == (batch,)
    assert bool(jnp.all(jnp.isfinite(acc_loss)))
    print("KERNEL_OK")
</pallas_src>

<mosaic_0001>
module attributes {stable_mosaic.version = 11 : i64} {
  func.func @seq2seq_kernel(%arg0: i32, %arg1: memref<8x8x32xf32, #tpu.memory_space<vmem>>, %arg2: memref<2x8x8xf32, #tpu.memory_space<vmem>>, %arg3: memref<8x8xf32, #tpu.memory_space<vmem>>, %arg4: memref<1x32x96xf32, #tpu.memory_space<vmem>>, %arg5: memref<1x32x96xf32, #tpu.memory_space<vmem>>, %arg6: memref<1x1x96xf32, #tpu.memory_space<vmem>>, %arg7: memref<1x1x96xf32, #tpu.memory_space<vmem>>, %arg8: memref<1x32x96xf32, #tpu.memory_space<vmem>>, %arg9: memref<1x32x96xf32, #tpu.memory_space<vmem>>, %arg10: memref<1x1x96xf32, #tpu.memory_space<vmem>>, %arg11: memref<1x1x96xf32, #tpu.memory_space<vmem>>, %arg12: memref<32x8xf32, #tpu.memory_space<vmem>>, %arg13: memref<1x8xf32, #tpu.memory_space<vmem>>, %arg14: memref<8x1xf32, #tpu.memory_space<vmem>>, %arg15: memref<64x96xf32, #tpu.memory_space<vmem>>) attributes {dimension_semantics = [#tpu.dimension_semantics<parallel>], iteration_bounds = array<i64: 1>, scalar_prefetch = 0 : i64, scratch_operands = 1 : i64, tpu.core_type = #tpu.core_type<tc>, window_params = [{transform_indices = @transform_0, window_bounds = array<i64: 8, 8, 32>}, {transform_indices = @transform_1, window_bounds = array<i64: 2, 8, 8>}, {transform_indices = @transform_2, window_bounds = array<i64: 8, 8>}, {pipeline_mode = #tpu.pipeline_mode<synchronous>, transform_indices = @transform_3, window_bounds = array<i64: 1, 32, 96>}, {pipeline_mode = #tpu.pipeline_mode<synchronous>, transform_indices = @transform_4, window_bounds = array<i64: 1, 32, 96>}, {pipeline_mode = #tpu.pipeline_mode<synchronous>, transform_indices = @transform_5, window_bounds = array<i64: 1, 1, 96>}, {pipeline_mode = #tpu.pipeline_mode<synchronous>, transform_indices = @transform_6, window_bounds = array<i64: 1, 1, 96>}, {pipeline_mode = #tpu.pipeline_mode<synchronous>, transform_indices = @transform_7, window_bounds = array<i64: 1, 32, 96>}, {pipeline_mode = #tpu.pipeline_mode<synchronous>, transform_indices = @transform_8, window_bounds = array<i64: 1, 32, 96>}, {pipeline_mode = #tpu.pipeline_mode<synchronous>, transform_indices = @transform_9, window_bounds = array<i64: 1, 1, 96>}, {pipeline_mode = #tpu.pipeline_mode<synchronous>, transform_indices = @transform_10, window_bounds = array<i64: 1, 1, 96>}, {pipeline_mode = #tpu.pipeline_mode<synchronous>, transform_indices = @transform_11, window_bounds = array<i64: 32, 8>}, {pipeline_mode = #tpu.pipeline_mode<synchronous>, transform_indices = @transform_12, window_bounds = array<i64: 1, 8>}, {transform_indices = @transform_13, window_bounds = array<i64: 8, 1>}]} {
    %c0 = arith.constant 0 : index
    %c0_0 = arith.constant 0 : index
    %c0_1 = arith.constant 0 : index
    %0 = vector.load %arg4[%c0, %c0_0, %c0_1] : memref<1x32x96xf32, #tpu.memory_space<vmem>>, vector<1x32x96xf32>
    %1 = vector.shape_cast %0 : vector<1x32x96xf32> to vector<32x96xf32>
    %c0_2 = arith.constant 0 : index
    %c0_3 = arith.constant 0 : index
    %c0_4 = arith.constant 0 : index
    %2 = vector.load %arg5[%c0_2, %c0_3, %c0_4] : memref<1x32x96xf32, #tpu.memory_space<vmem>>, vector<1x32x96xf32>
    %3 = vector.shape_cast %2 : vector<1x32x96xf32> to vector<32x96xf32>
    %c0_5 = arith.constant 0 : index
    %c0_6 = arith.constant 0 : index
    %c0_7 = arith.constant 0 : index
    %4 = vector.load %arg6[%c0_5, %c0_6, %c0_7] : memref<1x1x96xf32, #tpu.memory_space<vmem>>, vector<1x1x96xf32>
    %5 = vector.shape_cast %4 : vector<1x1x96xf32> to vector<1x96xf32>
    %c0_8 = arith.constant 0 : index
    %c0_9 = arith.constant 0 : index
    %c0_10 = arith.constant 0 : index
    %6 = vector.load %arg7[%c0_8, %c0_9, %c0_10] : memref<1x1x96xf32, #tpu.memory_space<vmem>>, vector<1x1x96xf32>
    %7 = vector.shape_cast %6 : vector<1x1x96xf32> to vector<1x96xf32>
    %c0_11 = arith.constant 0 : index
    %c0_12 = arith.constant 0 : index
    %c0_13 = arith.constant 0 : index
    %8 = vector.load %arg8[%c0_11, %c0_12, %c0_13] : memref<1x32x96xf32, #tpu.memory_space<vmem>>, vector<1x32x96xf32>
    %9 = vector.shape_cast %8 : vector<1x32x96xf32> to vector<32x96xf32>
    %c0_14 = arith.constant 0 : index
    %c0_15 = arith.constant 0 : index
    %c0_16 = arith.constant 0 : index
    %10 = vector.load %arg9[%c0_14, %c0_15, %c0_16] : memref<1x32x96xf32, #tpu.memory_space<vmem>>, vector<1x32x96xf32>
    %11 = vector.shape_cast %10 : vector<1x32x96xf32> to vector<32x96xf32>
    %c0_17 = arith.constant 0 : index
    %c0_18 = arith.constant 0 : index
    %c0_19 = arith.constant 0 : index
    %12 = vector.load %arg10[%c0_17, %c0_18, %c0_19] : memref<1x1x96xf32, #tpu.memory_space<vmem>>, vector<1x1x96xf32>
    %13 = vector.shape_cast %12 : vector<1x1x96xf32> to vector<1x96xf32>
    %c0_20 = arith.constant 0 : index
    %c0_21 = arith.constant 0 : index
    %c0_22 = arith.constant 0 : index
    %14 = vector.load %arg11[%c0_20, %c0_21, %c0_22] : memref<1x1x96xf32, #tpu.memory_space<vmem>>, vector<1x1x96xf32>
    %15 = vector.shape_cast %14 : vector<1x1x96xf32> to vector<1x96xf32>
    %c0_23 = arith.constant 0 : index
    %c0_24 = arith.constant 0 : index
    %16 = vector.load %arg12[%c0_23, %c0_24] : memref<32x8xf32, #tpu.memory_space<vmem>>, vector<32x8xf32>
    %c0_25 = arith.constant 0 : index
    %c0_26 = arith.constant 0 : index
    %17 = vector.load %arg13[%c0_25, %c0_26] : memref<1x8xf32, #tpu.memory_space<vmem>>, vector<1x8xf32>
    %c0_27 = arith.constant 0 : index
    %c0_28 = arith.constant 0 : index
    %c0_29 = arith.constant 0 : index
    %18 = vector.load %arg2[%c0_27, %c0_28, %c0_29] : memref<2x8x8xf32, #tpu.memory_space<vmem>>, vector<1x8x8xf32>
    %19 = vector.shape_cast %18 : vector<1x8x8xf32> to vector<8x8xf32>
    %c1 = arith.constant 1 : index
    %c0_30 = arith.constant 0 : index
    %c0_31 = arith.constant 0 : index
    %20 = vector.load %arg2[%c1, %c0_30, %c0_31] : memref<2x8x8xf32, #tpu.memory_space<vmem>>, vector<1x8x8xf32>
    %21 = vector.shape_cast %20 : vector<1x8x8xf32> to vector<8x8xf32>
    %c0_32 = arith.constant 0 : index
    %c0_33 = arith.constant 0 : index
    %c0_34 = arith.constant 0 : index
    %22 = vector.load %arg1[%c0_32, %c0_33, %c0_34] : memref<8x8x32xf32, #tpu.memory_space<vmem>>, vector<8x8x32xf32>
    %23 = vector.shape_cast %22 : vector<8x8x32xf32> to vector<64x32xf32>
    %cst = arith.constant dense<0.000000e+00> : vector<64x96xf32>
    %24 = tpu.matmul %23, %1, %cst {dimension_numbers = #tpu.dot_dimension_numbers<[1], [0], [0], [1], [0, 0, 1, 1], [], []>} : vector<64x32xf32>, vector<32x96xf32>, vector<64x96xf32> -> vector<64x96xf32>
    %25 = vector.broadcast %5 : vector<1x96xf32> to vector<64x96xf32>
    %26 = arith.addf %24, %25 : vector<64x96xf32>
    %c0_35 = arith.constant 0 : index
    %c0_36 = arith.constant 0 : index
    %27 = vector.load %arg15[%c0_35, %c0_36] : memref<64x96xf32, #tpu.memory_space<vmem>>, vector<64x96xf32>
    tpu.vector_store %arg15[%c0_35, %c0_36], %26 {strides = array<i32>} : memref<64x96xf32, #tpu.memory_space<vmem>>, vector<64x96xf32>,
    %cst_37 = arith.constant 0.000000e+00 : f32
    %28 = vector.broadcast %cst_37 : f32 to vector<8x32xf32>
    %c0_i32 = arith.constant 0 : i32
    %c8_i32 = arith.constant 8 : i32
    %29 = arith.muli %c0_i32, %c8_i32 : i32
    %30 = tpu.assume_multiple %29, 8 : i32
    %31 = arith.index_cast %30 : i32 to index
    %c0_38 = arith.constant 0 : index
    %32 = vector.load %arg15[%31, %c0_38] : memref<64x96xf32, #tpu.memory_space<vmem>>, vector<8x96xf32>
    %cst_39 = arith.constant dense<0.000000e+00> : vector<8x96xf32>
    %33 = tpu.matmul %28, %3, %cst_39 {dimension_numbers = #tpu.dot_dimension_numbers<[1], [0], [0], [1], [0, 0, 1, 1], [], []>} : vector<8x32xf32>, vector<32x96xf32>, vector<8x96xf32> -> vector<8x96xf32>
    %34 = vector.broadcast %7 : vector<1x96xf32> to vector<8x96xf32>
    %35 = arith.addf %33, %34 : vector<8x96xf32>
    %36 = vector.extract_strided_slice %32 {offsets = [0, 0], sizes = [8, 32], strides = [1, 1]} : vector<8x96xf32> to vector<8x32xf32>
    %37 = vector.extract_strided_slice %35 {offsets = [0, 0], sizes = [8, 32], strides = [1, 1]} : vector<8x96xf32> to vector<8x32xf32>
    %38 = arith.addf %36, %37 : vector<8x32xf32>
    %39 = arith.negf %38 : vector<8x32xf32>
    %40 = math.exp %39 : vector<8x32xf32>
    %cst_40 = arith.constant 1.000000e+00 : f32
    %41 = vector.broadcast %cst_40 : f32 to vector<8x32xf32>
    %42 = arith.addf %41, %40 : vector<8x32xf32>
    %43 = arith.divf %41, %42 : vector<8x32xf32>
    %44 = vector.extract_strided_slice %32 {offsets = [0, 32], sizes = [8, 32], strides = [1, 1]} : vector<8x96xf32> to vector<8x32xf32>
    %45 = vector.extract_strided_slice %35 {offsets = [0, 32], sizes = [8, 32], strides = [1, 1]} : vector<8x96xf32> to vector<8x32xf32>
    %46 = arith.addf %44, %45 : vector<8x32xf32>
    %47 = arith.negf %46 : vector<8x32xf32>
    %48 = math.exp %47 : vector<8x32xf32>
    %cst_41 = arith.constant 1.000000e+00 : f32
    %49 = vector.broadcast %cst_41 : f32 to vector<8x32xf32>
    %50 = arith.addf %49, %48 : vector<8x32xf32>
    %51 = arith.divf %49, %50 : vector<8x32xf32>
    %52 = vector.extract_strided_slice %32 {offsets = [0, 64], sizes = [8, 32], strides = [1, 1]} : vector<8x96xf32> to vector<8x32xf32>
    %53 = vector.extract_strided_slice %35 {offsets = [0, 64], sizes = [8, 32], strides = [1, 1]} : vector<8x96xf32> to vector<8x32xf32>
    %54 = arith.mulf %43, %53 : vector<8x32xf32>
    %55 = arith.addf %52, %54 : vector<8x32xf32>
    %56 = math.tanh %55 : vector<8x32xf32>
    %cst_42 = arith.constant 1.000000e+00 : f32
    %57 = vector.broadcast %cst_42 : f32 to vector<8x32xf32>
    %58 = arith.subf %57, %51 : vector<8x32xf32>
    %59 = arith.mulf %58, %56 : vector<8x32xf32>
    %60 = arith.mulf %51, %28 : vector<8x32xf32>
    %61 = arith.addf %59, %60 : vector<8x32xf32>
    %c1_i32 = arith.constant 1 : i32
    %c8_i32_43 = arith.constant 8 : i32
    %62 = arith.muli %c1_i32, %c8_i32_43 : i32
    %63 = tpu.assume_multiple %62, 8 : i32
    %64 = arith.index_cast %63 : i32 to index
    %c0_44 = arith.constant 0 : index
    %65 = vector.load %arg15[%64, %c0_44] : memref<64x96xf32, #tpu.memory_space<vmem>>, vector<8x96xf32>
    %cst_45 = arith.constant dense<0.000000e+00> : vector<8x96xf32>
    %66 = tpu.matmul %61, %3, %cst_45 {dimension_numbers = #tpu.dot_dimension_numbers<[1], [0], [0], [1], [0, 0, 1, 1], [], []>} : vector<8x32xf32>, vector<32x96xf32>, vector<8x96xf32> -> vector<8x96xf32>
    %67 = vector.broadcast %7 : vector<1x96xf32> to vector<8x96xf32>
    %68 = arith.addf %66, %67 : vector<8x96xf32>
    %69 = vector.extract_strided_slice %65 {offsets = [0, 0], sizes = [8, 32], strides = [1, 1]} : vector<8x96xf32> to vector<8x32xf32>
    %70 = vector.extract_strided_slice %68 {offsets = [0, 0], sizes = [8, 32], strides = [1, 1]} : vector<8x96xf32> to vector<8x32xf32>
    %71 = arith.addf %69, %70 : vector<8x32xf32>
    %72 = arith.negf %71 : vector<8x32xf32>
    %73 = math.exp %72 : vector<8x32xf32>
    %cst_46 = arith.constant 1.000000e+00 : f32
    %74 = vector.broadcast %cst_46 : f32 to vector<8x32xf32>
    %75 = arith.addf %74, %73 : vector<8x32xf32>
    %76 = arith.divf %74, %75 : vector<8x32xf32>
    %77 = vector.extract_strided_slice %65 {offsets = [0, 32], sizes = [8, 32], strides = [1, 1]} : vector<8x96xf32> to vector<8x32xf32>
    %78 = vector.extract_strided_slice %68 {offsets = [0, 32], sizes = [8, 32], strides = [1, 1]} : vector<8x96xf32> to vector<8x32xf32>
    %79 = arith.addf %77, %78 : vector<8x32xf32>
    %80 = arith.negf %79 : vector<8x32xf32>
    %81 = math.exp %80 : vector<8x32xf32>
    %cst_47 = arith.constant 1.000000e+00 : f32
    %82 = vector.broadcast %cst_47 : f32 to vector<8x32xf32>
    %83 = arith.addf %82, %81 : vector<8x32xf32>
    %84 = arith.divf %82, %83 : vector<8x32xf32>
    %85 = vector.extract_strided_slice %65 {offsets = [0, 64], sizes = [8, 32], strides = [1, 1]} : vector<8x96xf32> to vector<8x32xf32>
    %86 = vector.extract_strided_slice %68 {offsets = [0, 64], sizes = [8, 32], strides = [1, 1]} : vector<8x96xf32> to vector<8x32xf32>
    %87 = arith.mulf %76, %86 : vector<8x32xf32>
    %88 = arith.addf %85, %87 : vector<8x32xf32>
    %89 = math.tanh %88 : vector<8x32xf32>
    %cst_48 = arith.constant 1.000000e+00 : f32
    %90 = vector.broadcast %cst_48 : f32 to vector<8x32xf32>
    %91 = arith.subf %90, %84 : vector<8x32xf32>
    %92 = arith.mulf %91, %89 : vector<8x32xf32>
    %93 = arith.mulf %84, %61 : vector<8x32xf32>
    %94 = arith.addf %92, %93 : vector<8x32xf32>
    %c2_i32 = arith.constant 2 : i32
    %c8_i32_49 = arith.constant 8 : i32
    %95 = arith.muli %c2_i32, %c8_i32_49 : i32
    %96 = tpu.assume_multiple %95, 8 : i32
    %97 = arith.index_cast %96 : i32 to index
    %c0_50 = arith.constant 0 : index
    %98 = vector.load %arg15[%97, %c0_50] : memref<64x96xf32, #tpu.memory_space<vmem>>, vector<8x96xf32>
    %cst_51 = arith.constant dense<0.000000e+00> : vector<8x96xf32>
    %99 = tpu.matmul %94, %3, %cst_51 {dimension_numbers = #tpu.dot_dimension_numbers<[1], [0], [0], [1], [0, 0, 1, 1], [], []>} : vector<8x32xf32>, vector<32x96xf32>, vector<8x96xf32> -> vector<8x96xf32>
    %100 = vector.broadcast %7 : vector<1x96xf32> to vector<8x96xf32>
    %101 = arith.addf %99, %100 : vector<8x96xf32>
    %102 = vector.extract_strided_slice %98 {offsets = [0, 0], sizes = [8, 32], strides = [1, 1]} : vector<8x96xf32> to vector<8x32xf32>
    %103 = vector.extract_strided_slice %101 {offsets = [0, 0], sizes = [8, 32], strides = [1, 1]} : vector<8x96xf32> to vector<8x32xf32>
    %104 = arith.addf %102, %103 : vector<8x32xf32>
    %105 = arith.negf %104 : vector<8x32xf32>
    %106 = math.exp %105 : vector<8x32xf32>
    %cst_52 = arith.constant 1.000000e+00 : f32
    %107 = vector.broadcast %cst_52 : f32 to vector<8x32xf32>
    %108 = arith.addf %107, %106 : vector<8x32xf32>
    %109 = arith.divf %107, %108 : vector<8x32xf32>
    %110 = vector.extract_strided_slice %98 {offsets = [0, 32], sizes = [8, 32], strides = [1, 1]} : vector<8x96xf32> to vector<8x32xf32>
    %111 = vector.extract_strided_slice %101 {offsets = [0, 32], sizes = [8, 32], strides = [1, 1]} : vector<8x96xf32> to vector<8x32xf32>
    %112 = arith.addf %110, %111 : vector<8x32xf32>
    %113 = arith.negf %112 : vector<8x32xf32>
    %114 = math.exp %113 : vector<8x32xf32>
    %cst_53 = arith.constant 1.000000e+00 : f32
    %115 = vector.broadcast %cst_53 : f32 to vector<8x32xf32>
    %116 = arith.addf %115, %114 : vector<8x32xf32>
    %117 = arith.divf %115, %116 : vector<8x32xf32>
    %118 = vector.extract_strided_slice %98 {offsets = [0, 64], sizes = [8, 32], strides = [1, 1]} : vector<8x96xf32> to vector<8x32xf32>
    %119 = vector.extract_strided_slice %101 {offsets = [0, 64], sizes = [8, 32], strides = [1, 1]} : vector<8x96xf32> to vector<8x32xf32>
    %120 = arith.mulf %109, %119 : vector<8x32xf32>
    %121 = arith.addf %118, %120 : vector<8x32xf32>
    %122 = math.tanh %121 : vector<8x32xf32>
    %cst_54 = arith.constant 1.000000e+00 : f32
    %123 = vector.broadcast %cst_54 : f32 to vector<8x32xf32>
    %124 = arith.subf %123, %117 : vector<8x32xf32>
    %125 = arith.mulf %124, %122 : vector<8x32xf32>
    %126 = arith.mulf %117, %94 : vector<8x32xf32>
    %127 = arith.addf %125, %126 : vector<8x32xf32>
    %c3_i32 = arith.constant 3 : i32
    %c8_i32_55 = arith.constant 8 : i32
    %128 = arith.muli %c3_i32, %c8_i32_55 : i32
    %129 = tpu.assume_multiple %128, 8 : i32
    %130 = arith.index_cast %129 : i32 to index
    %c0_56 = arith.constant 0 : index
    %131 = vector.load %arg15[%130, %c0_56] : memref<64x96xf32, #tpu.memory_space<vmem>>, vector<8x96xf32>
    %cst_57 = arith.constant dense<0.000000e+00> : vector<8x96xf32>
    %132 = tpu.matmul %127, %3, %cst_57 {dimension_numbers = #tpu.dot_dimension_numbers<[1], [0], [0], [1], [0, 0, 1, 1], [], []>} : vector<8x32xf32>, vector<32x96xf32>, vector<8x96xf32> -> vector<8x96xf32>
    %133 = vector.broadcast %7 : vector<1x96xf32> to vector<8x96xf32>
    %134 = arith.addf %132, %133 : vector<8x96xf32>
    %135 = vector.extract_strided_slice %131 {offsets = [0, 0], sizes = [8, 32], strides = [1, 1]} : vector<8x96xf32> to vector<8x32xf32>
    %136 = vector.extract_strided_slice %134 {offsets = [0, 0], sizes = [8, 32], strides = [1, 1]} : vector<8x96xf32> to vector<8x32xf32>
    %137 = arith.addf %135, %136 : vector<8x32xf32>
    %138 = arith.negf %137 : vector<8x32xf32>
    %139 = math.exp %138 : vector<8x32xf32>
    %cst_58 = arith.constant 1.000000e+00 : f32
    %140 = vector.broadcast %cst_58 : f32 to vector<8x32xf32>
    %141 = arith.addf %140, %139 : vector<8x32xf32>
    %142 = arith.divf %140, %141 : vector<8x32xf32>
    %143 = vector.extract_strided_slice %131 {offsets = [0, 32], sizes = [8, 32], strides = [1, 1]} : vector<8x96xf32> to vector<8x32xf32>
    %144 = vector.extract_strided_slice %134 {offsets = [0, 32], sizes = [8, 32], strides = [1, 1]} : vector<8x96xf32> to vector<8x32xf32>
    %145 = arith.addf %143, %144 : vector<8x32xf32>
    %146 = arith.negf %145 : vector<8x32xf32>
    %147 = math.exp %146 : vector<8x32xf32>
    %cst_59 = arith.constant 1.000000e+00 : f32
    %148 = vector.broadcast %cst_59 : f32 to vector<8x32xf32>
    %149 = arith.addf %148, %147 : vector<8x32xf32>
    %150 = arith.divf %148, %149 : vector<8x32xf32>
    %151 = vector.extract_strided_slice %131 {offsets = [0, 64], sizes = [8, 32], strides = [1, 1]} : vector<8x96xf32> to vector<8x32xf32>
    %152 = vector.extract_strided_slice %134 {offsets = [0, 64], sizes = [8, 32], strides = [1, 1]} : vector<8x96xf32> to vector<8x32xf32>
    %153 = arith.mulf %142, %152 : vector<8x32xf32>
    %154 = arith.addf %151, %153 : vector<8x32xf32>
    %155 = math.tanh %154 : vector<8x32xf32>
    %cst_60 = arith.constant 1.000000e+00 : f32
    %156 = vector.broadcast %cst_60 : f32 to vector<8x32xf32>
    %157 = arith.subf %156, %150 : vector<8x32xf32>
    %158 = arith.mulf %157, %155 : vector<8x32xf32>
    %159 = arith.mulf %150, %127 : vector<8x32xf32>
    %160 = arith.addf %158, %159 : vector<8x32xf32>
    %c4_i32 = arith.constant 4 : i32
    %c8_i32_61 = arith.constant 8 : i32
    %161 = arith.muli %c4_i32, %c8_i32_61 : i32
    %162 = tpu.assume_multiple %161, 8 : i32
    %163 = arith.index_cast %162 : i32 to index
    %c0_62 = arith.constant 0 : index
    %164 = vector.load %arg15[%163, %c0_62] : memref<64x96xf32, #tpu.memory_space<vmem>>, vector<8x96xf32>
    %cst_63 = arith.constant dense<0.000000e+00> : vector<8x96xf32>
    %165 = tpu.matmul %160, %3, %cst_63 {dimension_numbers = #tpu.dot_dimension_numbers<[1], [0], [0], [1], [0, 0, 1, 1], [], []>} : vector<8x32xf32>, vector<32x96xf32>, vector<8x96xf32> -> vector<8x96xf32>
    %166 = vector.broadcast %7 : vector<1x96xf32> to vector<8x96xf32>
    %167 = arith.addf %165, %166 : vector<8x96xf32>
    %168 = vector.extract_strided_slice %164 {offsets = [0, 0], sizes = [8, 32], strides = [1, 1]} : vector<8x96xf32> to vector<8x32xf32>
    %169 = vector.extract_strided_slice %167 {offsets = [0, 0], sizes = [8, 32], strides = [1, 1]} : vector<8x96xf32> to vector<8x32xf32>
    %170 = arith.addf %168, %169 : vector<8x32xf32>
    %171 = arith.negf %170 : vector<8x32xf32>
    %172 = math.exp %171 : vector<8x32xf32>
    %cst_64 = arith.constant 1.000000e+00 : f32
    %173 = vector.broadcast %cst_64 : f32 to vector<8x32xf32>
    %174 = arith.addf %173, %172 : vector<8x32xf32>
    %175 = arith.divf %173, %174 : vector<8x32xf32>
    %176 = vector.extract_strided_slice %164 {offsets = [0, 32], sizes = [8, 32], strides = [1, 1]} : vector<8x96xf32> to vector<8x32xf32>
    %177 = vector.extract_strided_slice %167 {offsets = [0, 32], sizes = [8, 32], strides = [1, 1]} : vector<8x96xf32> to vector<8x32xf32>
    %178 = arith.addf %176, %177 : vector<8x32xf32>
    %179 = arith.negf %178 : vector<8x32xf32>
    %180 = math.exp %179 : vector<8x32xf32>
    %cst_65 = arith.constant 1.000000e+00 : f32
    %181 = vector.broadcast %cst_65 : f32 to vector<8x32xf32>
    %182 = arith.addf %181, %180 : vector<8x32xf32>
    %183 = arith.divf %181, %182 : vector<8x32xf32>
    %184 = vector.extract_strided_slice %164 {offsets = [0, 64], sizes = [8, 32], strides = [1, 1]} : vector<8x96xf32> to vector<8x32xf32>
    %185 = vector.extract_strided_slice %167 {offsets = [0, 64], sizes = [8, 32], strides = [1, 1]} : vector<8x96xf32> to vector<8x32xf32>
    %186 = arith.mulf %175, %185 : vector<8x32xf32>
    %187 = arith.addf %184, %186 : vector<8x32xf32>
    %188 = math.tanh %187 : vector<8x32xf32>
    %cst_66 = arith.constant 1.000000e+00 : f32
    %189 = vector.broadcast %cst_66 : f32 to vector<8x32xf32>
    %190 = arith.subf %189, %183 : vector<8x32xf32>
    %191 = arith.mulf %190, %188 : vector<8x32xf32>
    %192 = arith.mulf %183, %160 : vector<8x32xf32>
    %193 = arith.addf %191, %192 : vector<8x32xf32>
    %c5_i32 = arith.constant 5 : i32
    %c8_i32_67 = arith.constant 8 : i32
    %194 = arith.muli %c5_i32, %c8_i32_67 : i32
    %195 = tpu.assume_multiple %194, 8 : i32
    %196 = arith.index_cast %195 : i32 to index
    %c0_68 = arith.constant 0 : index
    %197 = vector.load %arg15[%196, %c0_68] : memref<64x96xf32, #tpu.memory_space<vmem>>, vector<8x96xf32>
    %cst_69 = arith.constant dense<0.000000e+00> : vector<8x96xf32>
    %198 = tpu.matmul %193, %3, %cst_69 {dimension_numbers = #tpu.dot_dimension_numbers<[1], [0], [0], [1], [0, 0, 1, 1], [], []>} : vector<8x32xf32>, vector<32x96xf32>, vector<8x96xf32> -> vector<8x96xf32>
    %199 = vector.broadcast %7 : vector<1x96xf32> to vector<8x96xf32>
    %200 = arith.addf %198, %199 : vector<8x96xf32>
    %201 = vector.extract_strided_slice %197 {offsets = [0, 0], sizes = [8, 32], strides = [1, 1]} : vector<8x96xf32> to vector<8x32xf32>
    %202 = vector.extract_strided_slice %200 {offsets = [0, 0], sizes = [8, 32], strides = [1, 1]} : vector<8x96xf32> to vector<8x32xf32>
    %203 = arith.addf %201, %202 : vector<8x32xf32>
    %204 = arith.negf %203 : vector<8x32xf32>
    %205 = math.exp %204 : vector<8x32xf32>
    %cst_70 = arith.constant 1.000000e+00 : f32
    %206 = vector.broadcast %cst_70 : f32 to vector<8x32xf32>
    %207 = arith.addf %206, %205 : vector<8x32xf32>
    %208 = arith.divf %206, %207 : vector<8x32xf32>
    %209 = vector.extract_strided_slice %197 {offsets = [0, 32], sizes = [8, 32], strides = [1, 1]} : vector<8x96xf32> to vector<8x32xf32>
    %210 = vector.extract_strided_slice %200 {offsets = [0, 32], sizes = [8, 32], strides = [1, 1]} : vector<8x96xf32> to vector<8x32xf32>
    %211 = arith.addf %209, %210 : vector<8x32xf32>
    %212 = arith.negf %211 : vector<8x32xf32>
    %213 = math.exp %212 : vector<8x32xf32>
    %cst_71 = arith.constant 1.000000e+00 : f32
    %214 = vector.broadcast %cst_71 : f32 to vector<8x32xf32>
    %215 = arith.addf %214, %213 : vector<8x32xf32>
    %216 = arith.divf %214, %215 : vector<8x32xf32>
    %217 = vector.extract_strided_slice %197 {offsets = [0, 64], sizes = [8, 32], strides = [1, 1]} : vector<8x96xf32> to vector<8x32xf32>
    %218 = vector.extract_strided_slice %200 {offsets = [0, 64], sizes = [8, 32], strides = [1, 1]} : vector<8x96xf32> to vector<8x32xf32>
    %219 = arith.mulf %208, %218 : vector<8x32xf32>
    %220 = arith.addf %217, %219 : vector<8x32xf32>
    %221 = math.tanh %220 : vector<8x32xf32>
    %cst_72 = arith.constant 1.000000e+00 : f32
    %222 = vector.broadcast %cst_72 : f32 to vector<8x32xf32>
    %223 = arith.subf %222, %216 : vector<8x32xf32>
    %224 = arith.mulf %223, %221 : vector<8x32xf32>
    %225 = arith.mulf %216, %193 : vector<8x32xf32>
    %226 = arith.addf %224, %225 : vector<8x32xf32>
    %c6_i32 = arith.constant 6 : i32
    %c8_i32_73 = arith.constant 8 : i32
    %227 = arith.muli %c6_i32, %c8_i32_73 : i32
    %228 = tpu.assume_multiple %227, 8 : i32
    %229 = arith.index_cast %228 : i32 to index
    %c0_74 = arith.constant 0 : index
    %230 = vector.load %arg15[%229, %c0_74] : memref<64x96xf32, #tpu.memory_space<vmem>>, vector<8x96xf32>
    %cst_75 = arith.constant dense<0.000000e+00> : vector<8x96xf32>
    %231 = tpu.matmul %226, %3, %cst_75 {dimension_numbers = #tpu.dot_dimension_numbers<[1], [0], [0], [1], [0, 0, 1, 1], [], []>} : vector<8x32xf32>, vector<32x96xf32>, vector<8x96xf32> -> vector<8x96xf32>
    %232 = vector.broadcast %7 : vector<1x96xf32> to vector<8x96xf32>
    %233 = arith.addf %231, %232 : vector<8x96xf32>
    %234 = vector.extract_strided_slice %230 {offsets = [0, 0], sizes = [8, 32], strides = [1, 1]} : vector<8x96xf32> to vector<8x32xf32>
    %235 = vector.extract_strided_slice %233 {offsets = [0, 0], sizes = [8, 32], strides = [1, 1]} : vector<8x96xf32> to vector<8x32xf32>
    %236 = arith.addf %234, %235 : vector<8x32xf32>
    %237 = arith.negf %236 : vector<8x32xf32>
    %238 = math.exp %237 : vector<8x32xf32>
    %cst_76 = arith.constant 1.000000e+00 : f32
    %239 = vector.broadcast %cst_76 : f32 to vector<8x32xf32>
    %240 = arith.addf %239, %238 : vector<8x32xf32>
    %241 = arith.divf %239, %240 : vector<8x32xf32>
    %242 = vector.extract_strided_slice %230 {offsets = [0, 32], sizes = [8, 32], strides = [1, 1]} : vector<8x96xf32> to vector<8x32xf32>
    %243 = vector.extract_strided_slice %233 {offsets = [0, 32], sizes = [8, 32], strides = [1, 1]} : vector<8x96xf32> to vector<8x32xf32>
    %244 = arith.addf %242, %243 : vector<8x32xf32>
    %245 = arith.negf %244 : vector<8x32xf32>
    %246 = math.exp %245 : vector<8x32xf32>
    %cst_77 = arith.constant 1.000000e+00 : f32
    %247 = vector.broadcast %cst_77 : f32 to vector<8x32xf32>
    %248 = arith.addf %247, %246 : vector<8x32xf32>
    %249 = arith.divf %247, %248 : vector<8x32xf32>
    %250 = vector.extract_strided_slice %230 {offsets = [0, 64], sizes = [8, 32], strides = [1, 1]} : vector<8x96xf32> to vector<8x32xf32>
    %251 = vector.extract_strided_slice %233 {offsets = [0, 64], sizes = [8, 32], strides = [1, 1]} : vector<8x96xf32> to vector<8x32xf32>
    %252 = arith.mulf %241, %251 : vector<8x32xf32>
    %253 = arith.addf %250, %252 : vector<8x32xf32>
    %254 = math.tanh %253 : vector<8x32xf32>
    %cst_78 = arith.constant 1.000000e+00 : f32
    %255 = vector.broadcast %cst_78 : f32 to vector<8x32xf32>
    %256 = arith.subf %255, %249 : vector<8x32xf32>
    %257 = arith.mulf %256, %254 : vector<8x32xf32>
    %258 = arith.mulf %249, %226 : vector<8x32xf32>
    %259 = arith.addf %257, %258 : vector<8x32xf32>
    %c7_i32 = arith.constant 7 : i32
    %c8_i32_79 = arith.constant 8 : i32
    %260 = arith.muli %c7_i32, %c8_i32_79 : i32
    %261 = tpu.assume_multiple %260, 8 : i32
    %262 = arith.index_cast %261 : i32 to index
    %c0_80 = arith.constant 0 : index
    %263 = vector.load %arg15[%262, %c0_80] : memref<64x96xf32, #tpu.memory_space<vmem>>, vector<8x96xf32>
    %cst_81 = arith.constant dense<0.000000e+00> : vector<8x96xf32>
    %264 = tpu.matmul %259, %3, %cst_81 {dimension_numbers = #tpu.dot_dimension_numbers<[1], [0], [0], [1], [0, 0, 1, 1], [], []>} : vector<8x32xf32>, vector<32x96xf32>, vector<8x96xf32> -> vector<8x96xf32>
    %265 = vector.broadcast %7 : vector<1x96xf32> to vector<8x96xf32>
    %266 = arith.addf %264, %265 : vector<8x96xf32>
    %267 = vector.extract_strided_slice %263 {offsets = [0, 0], sizes = [8, 32], strides = [1, 1]} : vector<8x96xf32> to vector<8x32xf32>
    %268 = vector.extract_strided_slice %266 {offsets = [0, 0], sizes = [8, 32], strides = [1, 1]} : vector<8x96xf32> to vector<8x32xf32>
    %269 = arith.addf %267, %268 : vector<8x32xf32>
    %270 = arith.negf %269 : vector<8x32xf32>
    %271 = math.exp %270 : vector<8x32xf32>
    %cst_82 = arith.constant 1.000000e+00 : f32
    %272 = vector.broadcast %cst_82 : f32 to vector<8x32xf32>
    %273 = arith.addf %272, %271 : vector<8x32xf32>
    %274 = arith.divf %272, %273 : vector<8x32xf32>
    %275 = vector.extract_strided_slice %263 {offsets = [0, 32], sizes = [8, 32], strides = [1, 1]} : vector<8x96xf32> to vector<8x32xf32>
    %276 = vector.extract_strided_slice %266 {offsets = [0, 32], sizes = [8, 32], strides = [1, 1]} : vector<8x96xf32> to vector<8x32xf32>
    %277 = arith.addf %275, %276 : vector<8x32xf32>
    %278 = arith.negf %277 : vector<8x32xf32>
    %279 = math.exp %278 : vector<8x32xf32>
    %cst_83 = arith.constant 1.000000e+00 : f32
    %280 = vector.broadcast %cst_83 : f32 to vector<8x32xf32>
    %281 = arith.addf %280, %279 : vector<8x32xf32>
    %282 = arith.divf %280, %281 : vector<8x32xf32>
    %283 = vector.extract_strided_slice %263 {offsets = [0, 64], sizes = [8, 32], strides = [1, 1]} : vector<8x96xf32> to vector<8x32xf32>
    %284 = vector.extract_strided_slice %266 {offsets = [0, 64], sizes = [8, 32], strides = [1, 1]} : vector<8x96xf32> to vector<8x32xf32>
    %285 = arith.mulf %274, %284 : vector<8x32xf32>
    %286 = arith.addf %283, %285 : vector<8x32xf32>
    %287 = math.tanh %286 : vector<8x32xf32>
    %cst_84 = arith.constant 1.000000e+00 : f32
    %288 = vector.broadcast %cst_84 : f32 to vector<8x32xf32>
    %289 = arith.subf %288, %282 : vector<8x32xf32>
    %290 = arith.mulf %289, %287 : vector<8x32xf32>
    %291 = arith.mulf %282, %259 : vector<8x32xf32>
    %292 = arith.addf %290, %291 : vector<8x32xf32>
    %c8_i32_85 = arith.constant 8 : i32
    %cst_86 = arith.constant dense<0.000000e+00> : vector<8x96xf32>
    %293 = tpu.matmul %292, %11, %cst_86 {dimension_numbers = #tpu.dot_dimension_numbers<[1], [0], [0], [1], [0, 0, 1, 1], [], []>} : vector<8x32xf32>, vector<32x96xf32>, vector<8x96xf32> -> vector<8x96xf32>
    %294 = vector.broadcast %15 : vector<1x96xf32> to vector<8x96xf32>
    %295 = arith.addf %293, %294 : vector<8x96xf32>
    %296 = tpu.iota {dimensions = array<i32: 1>} : vector<8x8xi32>
    %297 = tpu.iota {dimensions = array<i32: 1>} : vector<1x32xi32>
    %c0_i32_87 = arith.constant 0 : i32
    %298 = vector.broadcast %c0_i32_87 : i32 to vector<1x32xi32>
    %299 = arith.cmpi eq, %297, %298 : vector<1x32xi32>
    %300 = arith.extui %299 : vector<1x32xi1> to vector<1x32xi32>
    %301 = arith.sitofp %300 : vector<1x32xi32> to vector<1x32xf32>
    %c1_i32_88 = arith.constant 1 : i32
    %302 = vector.broadcast %c1_i32_88 : i32 to vector<1x32xi32>
    %303 = arith.cmpi eq, %297, %302 : vector<1x32xi32>
    %304 = arith.extui %303 : vector<1x32xi1> to vector<1x32xi32>
    %305 = arith.sitofp %304 : vector<1x32xi32> to vector<1x32xf32>
    %cst_89 = arith.constant 0.000000e+00 : f32
    %306 = vector.broadcast %cst_89 : f32 to vector<8x32xf32>
    %c0_90 = arith.constant 0 : index
    %c0_91 = arith.constant 0 : index
    %307 = vector.load %arg3[%c0_90, %c0_91] : memref<8x8xf32, #tpu.memory_space<vmem>>, vector<8x8xf32>
    %cst_92 = arith.constant 0.000000e+00 : f32
    %308 = vector.broadcast %cst_92 : f32 to vector<8x1xf32>
    %c0_i32_93 = arith.constant 0 : i32
    %cst_94 = arith.constant dense<0.000000e+00> : vector<8x96xf32>
    %309 = tpu.matmul %306, %9, %cst_94 {dimension_numbers = #tpu.dot_dimension_numbers<[1], [0], [0], [1], [0, 0, 1, 1], [], []>} : vector<8x32xf32>, vector<32x96xf32>, vector<8x96xf32> -> vector<8x96xf32>
    %310 = vector.broadcast %13 : vector<1x96xf32> to vector<8x96xf32>
    %311 = arith.addf %309, %310 : vector<8x96xf32>
    %312 = vector.extract_strided_slice %311 {offsets = [0, 0], sizes = [8, 32], strides = [1, 1]} : vector<8x96xf32> to vector<8x32xf32>
    %313 = vector.extract_strided_slice %295 {offsets = [0, 0], sizes = [8, 32], strides = [1, 1]} : vector<8x96xf32> to vector<8x32xf32>
    %314 = arith.addf %312, %313 : vector<8x32xf32>
    %315 = arith.negf %314 : vector<8x32xf32>
    %316 = math.exp %315 : vector<8x32xf32>
    %cst_95 = arith.constant 1.000000e+00 : f32
    %317 = vector.broadcast %cst_95 : f32 to vector<8x32xf32>
    %318 = arith.addf %317, %316 : vector<8x32xf32>
    %319 = arith.divf %317, %318 : vector<8x32xf32>
    %320 = vector.extract_strided_slice %311 {offsets = [0, 32], sizes = [8, 32], strides = [1, 1]} : vector<8x96xf32> to vector<8x32xf32>
    %321 = vector.extract_strided_slice %295 {offsets = [0, 32], sizes = [8, 32], strides = [1, 1]} : vector<8x96xf32> to vector<8x32xf32>
    %322 = arith.addf %320, %321 : vector<8x32xf32>
    %323 = arith.negf %322 : vector<8x32xf32>
    %324 = math.exp %323 : vector<8x32xf32>
    %cst_96 = arith.constant 1.000000e+00 : f32
    %325 = vector.broadcast %cst_96 : f32 to vector<8x32xf32>
    %326 = arith.addf %325, %324 : vector<8x32xf32>
    %327 = arith.divf %325, %326 : vector<8x32xf32>
    %328 = vector.extract_strided_slice %311 {offsets = [0, 64], sizes = [8, 32], strides = [1, 1]} : vector<8x96xf32> to vector<8x32xf32>
    %329 = vector.extract_strided_slice %295 {offsets = [0, 64], sizes = [8, 32], strides = [1, 1]} : vector<8x96xf32> to vector<8x32xf32>
    %330 = arith.mulf %319, %329 : vector<8x32xf32>
    %331 = arith.addf %328, %330 : vector<8x32xf32>
    %332 = math.tanh %331 : vector<8x32xf32>
    %cst_97 = arith.constant 1.000000e+00 : f32
    %333 = vector.broadcast %cst_97 : f32 to vector<8x32xf32>
    %334 = arith.subf %333, %327 : vector<8x32xf32>
    %335 = arith.mulf %334, %332 : vector<8x32xf32>
    %336 = arith.mulf %327, %292 : vector<8x32xf32>
    %337 = arith.addf %335, %336 : vector<8x32xf32>
    %338 = math.tanh %337 : vector<8x32xf32>
    %cst_98 = arith.constant dense<0.000000e+00> : vector<8x8xf32>
    %339 = tpu.matmul %338, %16, %cst_98 {dimension_numbers = #tpu.dot_dimension_numbers<[1], [0], [0], [1], [0, 0, 1, 1], [], []>} : vector<8x32xf32>, vector<32x8xf32>, vector<8x8xf32> -> vector<8x8xf32>
    %340 = vector.broadcast %17 : vector<1x8xf32> to vector<8x8xf32>
    %341 = arith.addf %339, %340 : vector<8x8xf32>
    %cst_99 = arith.constant 0.000000e+00 : f32
    %342 = vector.broadcast %cst_99 : f32 to vector<8x8xf32>
    %343 = arith.cmpf one, %307, %342 : vector<8x8xf32>
    %cst_100 = arith.constant 0xFF800000 : f32
    %344 = vector.broadcast %cst_100 : f32 to vector<8x8xf32>
    %345 = arith.select %343, %344, %341 : vector<8x8xi1>, vector<8x8xf32>
    %cst_101 = arith.constant dense<0xFF800000> : vector<8xf32>
    %346 = vector.multi_reduction <maximumf>, %345, %cst_101 [1] : vector<8x8xf32> to vector<8xf32>
    %347 = vector.shape_cast %346 : vector<8xf32> to vector<8x1xf32>
    %348 = vector.broadcast %347 : vector<8x1xf32> to vector<8x8xf32>
    %349 = arith.cmpf oeq, %345, %348 : vector<8x8xf32>
    %c1073741824_i32 = arith.constant 1073741824 : i32
    %350 = vector.broadcast %c1073741824_i32 : i32 to vector<8x8xi32>
    %351 = arith.select %349, %296, %350 : vector<8x8xi1>, vector<8x8xi32>
    %cst_102 = arith.constant dense<2147483647> : vector<8xi32>
    %352 = vector.multi_reduction <minsi>, %351, %cst_102 [1] : vector<8x8xi32> to vector<8xi32>
    %353 = vector.shape_cast %352 : vector<8xi32> to vector<8x1xi32>
    %354 = vector.broadcast %353 : vector<8x1xi32> to vector<8x8xi32>
    %355 = arith.cmpi eq, %296, %354 : vector<8x8xi32>
    %356 = arith.extui %355 : vector<8x8xi1> to vector<8x8xi32>
    %357 = arith.sitofp %356 : vector<8x8xi32> to vector<8x8xf32>
    %cst_103 = arith.constant 0.000000e+00 : f32
    %358 = vector.broadcast %cst_103 : f32 to vector<8x32xf32>
    %359 = arith.mulf %357, %19 : vector<8x8xf32>
    %cst_104 = arith.constant dense<0.000000e+00> : vector<8xf32>
    %360 = vector.multi_reduction <add>, %359, %cst_104 [1] : vector<8x8xf32> to vector<8xf32>
    %361 = vector.shape_cast %360 : vector<8xf32> to vector<8x1xf32>
    %362 = vector.broadcast %361 : vector<8x1xf32> to vector<8x32xf32>
    %363 = vector.broadcast %301 : vector<1x32xf32> to vector<8x32xf32>
    %364 = arith.mulf %362, %363 : vector<8x32xf32>
    %365 = arith.addf %358, %364 : vector<8x32xf32>
    %366 = arith.mulf %357, %21 : vector<8x8xf32>
    %cst_105 = arith.constant dense<0.000000e+00> : vector<8xf32>
    %367 = vector.multi_reduction <add>, %366, %cst_105 [1] : vector<8x8xf32> to vector<8xf32>
    %368 = vector.shape_cast %367 : vector<8xf32> to vector<8x1xf32>
    %369 = vector.broadcast %368 : vector<8x1xf32> to vector<8x32xf32>
    %370 = vector.broadcast %305 : vector<1x32xf32> to vector<8x32xf32>
    %371 = arith.mulf %369, %370 : vector<8x32xf32>
    %372 = arith.addf %365, %371 : vector<8x32xf32>
    %373 = arith.subf %372, %306 : vector<8x32xf32>
    %374 = arith.mulf %373, %373 : vector<8x32xf32>
    %cst_106 = arith.constant dense<0.000000e+00> : vector<8xf32>
    %375 = vector.multi_reduction <add>, %374, %cst_106 [1] : vector<8x32xf32> to vector<8xf32>
    %376 = vector.shape_cast %375 : vector<8xf32> to vector<8x1xf32>
    %377 = math.sqrt %376 : vector<8x1xf32>
    %378 = arith.maximumf %307, %357 : vector<8x8xf32>
    %379 = arith.addf %308, %377 : vector<8x1xf32>
    %c1_i32_107 = arith.constant 1 : i32
    %cst_108 = arith.constant dense<0.000000e+00> : vector<8x96xf32>
    %380 = tpu.matmul %372, %9, %cst_108 {dimension_numbers = #tpu.dot_dimension_numbers<[1], [0], [0], [1], [0, 0, 1, 1], [], []>} : vector<8x32xf32>, vector<32x96xf32>, vector<8x96xf32> -> vector<8x96xf32>
    %381 = vector.broadcast %13 : vector<1x96xf32> to vector<8x96xf32>
    %382 = arith.addf %380, %381 : vector<8x96xf32>
    %383 = vector.extract_strided_slice %382 {offsets = [0, 0], sizes = [8, 32], strides = [1, 1]} : vector<8x96xf32> to vector<8x32xf32>
    %384 = vector.extract_strided_slice %295 {offsets = [0, 0], sizes = [8, 32], strides = [1, 1]} : vector<8x96xf32> to vector<8x32xf32>
    %385 = arith.addf %383, %384 : vector<8x32xf32>
    %386 = arith.negf %385 : vector<8x32xf32>
    %387 = math.exp %386 : vector<8x32xf32>
    %cst_109 = arith.constant 1.000000e+00 : f32
    %388 = vector.broadcast %cst_109 : f32 to vector<8x32xf32>
    %389 = arith.addf %388, %387 : vector<8x32xf32>
    %390 = arith.divf %388, %389 : vector<8x32xf32>
    %391 = vector.extract_strided_slice %382 {offsets = [0, 32], sizes = [8, 32], strides = [1, 1]} : vector<8x96xf32> to vector<8x32xf32>
    %392 = vector.extract_strided_slice %295 {offsets = [0, 32], sizes = [8, 32], strides = [1, 1]} : vector<8x96xf32> to vector<8x32xf32>
    %393 = arith.addf %391, %392 : vector<8x32xf32>
    %394 = arith.negf %393 : vector<8x32xf32>
    %395 = math.exp %394 : vector<8x32xf32>
    %cst_110 = arith.constant 1.000000e+00 : f32
    %396 = vector.broadcast %cst_110 : f32 to vector<8x32xf32>
    %397 = arith.addf %396, %395 : vector<8x32xf32>
    %398 = arith.divf %396, %397 : vector<8x32xf32>
    %399 = vector.extract_strided_slice %382 {offsets = [0, 64], sizes = [8, 32], strides = [1, 1]} : vector<8x96xf32> to vector<8x32xf32>
    %400 = vector.extract_strided_slice %295 {offsets = [0, 64], sizes = [8, 32], strides = [1, 1]} : vector<8x96xf32> to vector<8x32xf32>
    %401 = arith.mulf %390, %400 : vector<8x32xf32>
    %402 = arith.addf %399, %401 : vector<8x32xf32>
    %403 = math.tanh %402 : vector<8x32xf32>
    %cst_111 = arith.constant 1.000000e+00 : f32
    %404 = vector.broadcast %cst_111 : f32 to vector<8x32xf32>
    %405 = arith.subf %404, %398 : vector<8x32xf32>
    %406 = arith.mulf %405, %403 : vector<8x32xf32>
    %407 = arith.mulf %398, %292 : vector<8x32xf32>
    %408 = arith.addf %406, %407 : vector<8x32xf32>
    %409 = math.tanh %408 : vector<8x32xf32>
    %cst_112 = arith.constant dense<0.000000e+00> : vector<8x8xf32>
    %410 = tpu.matmul %409, %16, %cst_112 {dimension_numbers = #tpu.dot_dimension_numbers<[1], [0], [0], [1], [0, 0, 1, 1], [], []>} : vector<8x32xf32>, vector<32x8xf32>, vector<8x8xf32> -> vector<8x8xf32>
    %411 = vector.broadcast %17 : vector<1x8xf32> to vector<8x8xf32>
    %412 = arith.addf %410, %411 : vector<8x8xf32>
    %cst_113 = arith.constant 0.000000e+00 : f32
    %413 = vector.broadcast %cst_113 : f32 to vector<8x8xf32>
    %414 = arith.cmpf one, %378, %413 : vector<8x8xf32>
    %cst_114 = arith.constant 0xFF800000 : f32
    %415 = vector.broadcast %cst_114 : f32 to vector<8x8xf32>
    %416 = arith.select %414, %415, %412 : vector<8x8xi1>, vector<8x8xf32>
    %cst_115 = arith.constant dense<0xFF800000> : vector<8xf32>
    %417 = vector.multi_reduction <maximumf>, %416, %cst_115 [1] : vector<8x8xf32> to vector<8xf32>
    %418 = vector.shape_cast %417 : vector<8xf32> to vector<8x1xf32>
    %419 = vector.broadcast %418 : vector<8x1xf32> to vector<8x8xf32>
    %420 = arith.cmpf oeq, %416, %419 : vector<8x8xf32>
    %c1073741824_i32_116 = arith.constant 1073741824 : i32
    %421 = vector.broadcast %c1073741824_i32_116 : i32 to vector<8x8xi32>
    %422 = arith.select %420, %296, %421 : vector<8x8xi1>, vector<8x8xi32>
    %cst_117 = arith.constant dense<2147483647> : vector<8xi32>
    %423 = vector.multi_reduction <minsi>, %422, %cst_117 [1] : vector<8x8xi32> to vector<8xi32>
    %424 = vector.shape_cast %423 : vector<8xi32> to vector<8x1xi32>
    %425 = vector.broadcast %424 : vector<8x1xi32> to vector<8x8xi32>
    %426 = arith.cmpi eq, %296, %425 : vector<8x8xi32>
    %427 = arith.extui %426 : vector<8x8xi1> to vector<8x8xi32>
    %428 = arith.sitofp %427 : vector<8x8xi32> to vector<8x8xf32>
    %cst_118 = arith.constant 0.000000e+00 : f32
    %429 = vector.broadcast %cst_118 : f32 to vector<8x32xf32>
    %430 = arith.mulf %428, %19 : vector<8x8xf32>
    %cst_119 = arith.constant dense<0.000000e+00> : vector<8xf32>
    %431 = vector.multi_reduction <add>, %430, %cst_119 [1] : vector<8x8xf32> to vector<8xf32>
    %432 = vector.shape_cast %431 : vector<8xf32> to vector<8x1xf32>
    %433 = vector.broadcast %432 : vector<8x1xf32> to vector<8x32xf32>
    %434 = vector.broadcast %301 : vector<1x32xf32> to vector<8x32xf32>
    %435 = arith.mulf %433, %434 : vector<8x32xf32>
    %436 = arith.addf %429, %435 : vector<8x32xf32>
    %437 = arith.mulf %428, %21 : vector<8x8xf32>
    %cst_120 = arith.constant dense<0.000000e+00> : vector<8xf32>
    %438 = vector.multi_reduction <add>, %437, %cst_120 [1] : vector<8x8xf32> to vector<8xf32>
    %439 = vector.shape_cast %438 : vector<8xf32> to vector<8x1xf32>
    %440 = vector.broadcast %439 : vector<8x1xf32> to vector<8x32xf32>
    %441 = vector.broadcast %305 : vector<1x32xf32> to vector<8x32xf32>
    %442 = arith.mulf %440, %441 : vector<8x32xf32>
    %443 = arith.addf %436, %442 : vector<8x32xf32>
    %444 = arith.subf %443, %372 : vector<8x32xf32>
    %445 = arith.mulf %444, %444 : vector<8x32xf32>
    %cst_121 = arith.constant dense<0.000000e+00> : vector<8xf32>
    %446 = vector.multi_reduction <add>, %445, %cst_121 [1] : vector<8x32xf32> to vector<8xf32>
    %447 = vector.shape_cast %446 : vector<8xf32> to vector<8x1xf32>
    %448 = math.sqrt %447 : vector<8x1xf32>
    %449 = arith.maximumf %378, %428 : vector<8x8xf32>
    %450 = arith.addf %379, %448 : vector<8x1xf32>
    %c2_i32_122 = arith.constant 2 : i32
    %cst_123 = arith.constant dense<0.000000e+00> : vector<8x96xf32>
    %451 = tpu.matmul %443, %9, %cst_123 {dimension_numbers = #tpu.dot_dimension_numbers<[1], [0], [0], [1], [0, 0, 1, 1], [], []>} : vector<8x32xf32>, vector<32x96xf32>, vector<8x96xf32> -> vector<8x96xf32>
    %452 = vector.broadcast %13 : vector<1x96xf32> to vector<8x96xf32>
    %453 = arith.addf %451, %452 : vector<8x96xf32>
    %454 = vector.extract_strided_slice %453 {offsets = [0, 0], sizes = [8, 32], strides = [1, 1]} : vector<8x96xf32> to vector<8x32xf32>
    %455 = vector.extract_strided_slice %295 {offsets = [0, 0], sizes = [8, 32], strides = [1, 1]} : vector<8x96xf32> to vector<8x32xf32>
    %456 = arith.addf %454, %455 : vector<8x32xf32>
    %457 = arith.negf %456 : vector<8x32xf32>
    %458 = math.exp %457 : vector<8x32xf32>
    %cst_124 = arith.constant 1.000000e+00 : f32
    %459 = vector.broadcast %cst_124 : f32 to vector<8x32xf32>
    %460 = arith.addf %459, %458 : vector<8x32xf32>
    %461 = arith.divf %459, %460 : vector<8x32xf32>
    %462 = vector.extract_strided_slice %453 {offsets = [0, 32], sizes = [8, 32], strides = [1, 1]} : vector<8x96xf32> to vector<8x32xf32>
    %463 = vector.extract_strided_slice %295 {offsets = [0, 32], sizes = [8, 32], strides = [1, 1]} : vector<8x96xf32> to vector<8x32xf32>
    %464 = arith.addf %462, %463 : vector<8x32xf32>
    %465 = arith.negf %464 : vector<8x32xf32>
    %466 = math.exp %465 : vector<8x32xf32>
    %cst_125 = arith.constant 1.000000e+00 : f32
    %467 = vector.broadcast %cst_125 : f32 to vector<8x32xf32>
    %468 = arith.addf %467, %466 : vector<8x32xf32>
    %469 = arith.divf %467, %468 : vector<8x32xf32>
    %470 = vector.extract_strided_slice %453 {offsets = [0, 64], sizes = [8, 32], strides = [1, 1]} : vector<8x96xf32> to vector<8x32xf32>
    %471 = vector.extract_strided_slice %295 {offsets = [0, 64], sizes = [8, 32], strides = [1, 1]} : vector<8x96xf32> to vector<8x32xf32>
    %472 = arith.mulf %461, %471 : vector<8x32xf32>
    %473 = arith.addf %470, %472 : vector<8x32xf32>
    %474 = math.tanh %473 : vector<8x32xf32>
    %cst_126 = arith.constant 1.000000e+00 : f32
    %475 = vector.broadcast %cst_126 : f32 to vector<8x32xf32>
    %476 = arith.subf %475, %469 : vector<8x32xf32>
    %477 = arith.mulf %476, %474 : vector<8x32xf32>
    %478 = arith.mulf %469, %292 : vector<8x32xf32>
    %479 = arith.addf %477, %478 : vector<8x32xf32>
    %480 = math.tanh %479 : vector<8x32xf32>
    %cst_127 = arith.constant dense<0.000000e+00> : vector<8x8xf32>
    %481 = tpu.matmul %480, %16, %cst_127 {dimension_numbers = #tpu.dot_dimension_numbers<[1], [0], [0], [1], [0, 0, 1, 1], [], []>} : vector<8x32xf32>, vector<32x8xf32>, vector<8x8xf32> -> vector<8x8xf32>
    %482 = vector.broadcast %17 : vector<1x8xf32> to vector<8x8xf32>
    %483 = arith.addf %481, %482 : vector<8x8xf32>
    %cst_128 = arith.constant 0.000000e+00 : f32
    %484 = vector.broadcast %cst_128 : f32 to vector<8x8xf32>
    %485 = arith.cmpf one, %449, %484 : vector<8x8xf32>
    %cst_129 = arith.constant 0xFF800000 : f32
    %486 = vector.broadcast %cst_129 : f32 to vector<8x8xf32>
    %487 = arith.select %485, %486, %483 : vector<8x8xi1>, vector<8x8xf32>
    %cst_130 = arith.constant dense<0xFF800000> : vector<8xf32>
    %488 = vector.multi_reduction <maximumf>, %487, %cst_130 [1] : vector<8x8xf32> to vector<8xf32>
    %489 = vector.shape_cast %488 : vector<8xf32> to vector<8x1xf32>
    %490 = vector.broadcast %489 : vector<8x1xf32> to vector<8x8xf32>
    %491 = arith.cmpf oeq, %487, %490 : vector<8x8xf32>
    %c1073741824_i32_131 = arith.constant 1073741824 : i32
    %492 = vector.broadcast %c1073741824_i32_131 : i32 to vector<8x8xi32>
    %493 = arith.select %491, %296, %492 : vector<8x8xi1>, vector<8x8xi32>
    %cst_132 = arith.constant dense<2147483647> : vector<8xi32>
    %494 = vector.multi_reduction <minsi>, %493, %cst_132 [1] : vector<8x8xi32> to vector<8xi32>
    %495 = vector.shape_cast %494 : vector<8xi32> to vector<8x1xi32>
    %496 = vector.broadcast %495 : vector<8x1xi32> to vector<8x8xi32>
    %497 = arith.cmpi eq, %296, %496 : vector<8x8xi32>
    %498 = arith.extui %497 : vector<8x8xi1> to vector<8x8xi32>
    %499 = arith.sitofp %498 : vector<8x8xi32> to vector<8x8xf32>
    %cst_133 = arith.constant 0.000000e+00 : f32
    %500 = vector.broadcast %cst_133 : f32 to vector<8x32xf32>
    %501 = arith.mulf %499, %19 : vector<8x8xf32>
    %cst_134 = arith.constant dense<0.000000e+00> : vector<8xf32>
    %502 = vector.multi_reduction <add>, %501, %cst_134 [1] : vector<8x8xf32> to vector<8xf32>
    %503 = vector.shape_cast %502 : vector<8xf32> to vector<8x1xf32>
    %504 = vector.broadcast %503 : vector<8x1xf32> to vector<8x32xf32>
    %505 = vector.broadcast %301 : vector<1x32xf32> to vector<8x32xf32>
    %506 = arith.mulf %504, %505 : vector<8x32xf32>
    %507 = arith.addf %500, %506 : vector<8x32xf32>
    %508 = arith.mulf %499, %21 : vector<8x8xf32>
    %cst_135 = arith.constant dense<0.000000e+00> : vector<8xf32>
    %509 = vector.multi_reduction <add>, %508, %cst_135 [1] : vector<8x8xf32> to vector<8xf32>
    %510 = vector.shape_cast %509 : vector<8xf32> to vector<8x1xf32>
    %511 = vector.broadcast %510 : vector<8x1xf32> to vector<8x32xf32>
    %512 = vector.broadcast %305 : vector<1x32xf32> to vector<8x32xf32>
    %513 = arith.mulf %511, %512 : vector<8x32xf32>
    %514 = arith.addf %507, %513 : vector<8x32xf32>
    %515 = arith.subf %514, %443 : vector<8x32xf32>
    %516 = arith.mulf %515, %515 : vector<8x32xf32>
    %cst_136 = arith.constant dense<0.000000e+00> : vector<8xf32>
    %517 = vector.multi_reduction <add>, %516, %cst_136 [1] : vector<8x32xf32> to vector<8xf32>
    %518 = vector.shape_cast %517 : vector<8xf32> to vector<8x1xf32>
    %519 = math.sqrt %518 : vector<8x1xf32>
    %520 = arith.maximumf %449, %499 : vector<8x8xf32>
    %521 = arith.addf %450, %519 : vector<8x1xf32>
    %c3_i32_137 = arith.constant 3 : i32
    %cst_138 = arith.constant dense<0.000000e+00> : vector<8x96xf32>
    %522 = tpu.matmul %514, %9, %cst_138 {dimension_numbers = #tpu.dot_dimension_numbers<[1], [0], [0], [1], [0, 0, 1, 1], [], []>} : vector<8x32xf32>, vector<32x96xf32>, vector<8x96xf32> -> vector<8x96xf32>
    %523 = vector.broadcast %13 : vector<1x96xf32> to vector<8x96xf32>
    %524 = arith.addf %522, %523 : vector<8x96xf32>
    %525 = vector.extract_strided_slice %524 {offsets = [0, 0], sizes = [8, 32], strides = [1, 1]} : vector<8x96xf32> to vector<8x32xf32>
    %526 = vector.extract_strided_slice %295 {offsets = [0, 0], sizes = [8, 32], strides = [1, 1]} : vector<8x96xf32> to vector<8x32xf32>
    %527 = arith.addf %525, %526 : vector<8x32xf32>
    %528 = arith.negf %527 : vector<8x32xf32>
    %529 = math.exp %528 : vector<8x32xf32>
    %cst_139 = arith.constant 1.000000e+00 : f32
    %530 = vector.broadcast %cst_139 : f32 to vector<8x32xf32>
    %531 = arith.addf %530, %529 : vector<8x32xf32>
    %532 = arith.divf %530, %531 : vector<8x32xf32>
    %533 = vector.extract_strided_slice %524 {offsets = [0, 32], sizes = [8, 32], strides = [1, 1]} : vector<8x96xf32> to vector<8x32xf32>
    %534 = vector.extract_strided_slice %295 {offsets = [0, 32], sizes = [8, 32], strides = [1, 1]} : vector<8x96xf32> to vector<8x32xf32>
    %535 = arith.addf %533, %534 : vector<8x32xf32>
    %536 = arith.negf %535 : vector<8x32xf32>
    %537 = math.exp %536 : vector<8x32xf32>
    %cst_140 = arith.constant 1.000000e+00 : f32
    %538 = vector.broadcast %cst_140 : f32 to vector<8x32xf32>
    %539 = arith.addf %538, %537 : vector<8x32xf32>
    %540 = arith.divf %538, %539 : vector<8x32xf32>
    %541 = vector.extract_strided_slice %524 {offsets = [0, 64], sizes = [8, 32], strides = [1, 1]} : vector<8x96xf32> to vector<8x32xf32>
    %542 = vector.extract_strided_slice %295 {offsets = [0, 64], sizes = [8, 32], strides = [1, 1]} : vector<8x96xf32> to vector<8x32xf32>
    %543 = arith.mulf %532, %542 : vector<8x32xf32>
    %544 = arith.addf %541, %543 : vector<8x32xf32>
    %545 = math.tanh %544 : vector<8x32xf32>
    %cst_141 = arith.constant 1.000000e+00 : f32
    %546 = vector.broadcast %cst_141 : f32 to vector<8x32xf32>
    %547 = arith.subf %546, %540 : vector<8x32xf32>
    %548 = arith.mulf %547, %545 : vector<8x32xf32>
    %549 = arith.mulf %540, %292 : vector<8x32xf32>
    %550 = arith.addf %548, %549 : vector<8x32xf32>
    %551 = math.tanh %550 : vector<8x32xf32>
    %cst_142 = arith.constant dense<0.000000e+00> : vector<8x8xf32>
    %552 = tpu.matmul %551, %16, %cst_142 {dimension_numbers = #tpu.dot_dimension_numbers<[1], [0], [0], [1], [0, 0, 1, 1], [], []>} : vector<8x32xf32>, vector<32x8xf32>, vector<8x8xf32> -> vector<8x8xf32>
    %553 = vector.broadcast %17 : vector<1x8xf32> to vector<8x8xf32>
    %554 = arith.addf %552, %553 : vector<8x8xf32>
    %cst_143 = arith.constant 0.000000e+00 : f32
    %555 = vector.broadcast %cst_143 : f32 to vector<8x8xf32>
    %556 = arith.cmpf one, %520, %555 : vector<8x8xf32>
    %cst_144 = arith.constant 0xFF800000 : f32
    %557 = vector.broadcast %cst_144 : f32 to vector<8x8xf32>
    %558 = arith.select %556, %557, %554 : vector<8x8xi1>, vector<8x8xf32>
    %cst_145 = arith.constant dense<0xFF800000> : vector<8xf32>
    %559 = vector.multi_reduction <maximumf>, %558, %cst_145 [1] : vector<8x8xf32> to vector<8xf32>
    %560 = vector.shape_cast %559 : vector<8xf32> to vector<8x1xf32>
    %561 = vector.broadcast %560 : vector<8x1xf32> to vector<8x8xf32>
    %562 = arith.cmpf oeq, %558, %561 : vector<8x8xf32>
    %c1073741824_i32_146 = arith.constant 1073741824 : i32
    %563 = vector.broadcast %c1073741824_i32_146 : i32 to vector<8x8xi32>
    %564 = arith.select %562, %296, %563 : vector<8x8xi1>, vector<8x8xi32>
    %cst_147 = arith.constant dense<2147483647> : vector<8xi32>
    %565 = vector.multi_reduction <minsi>, %564, %cst_147 [1] : vector<8x8xi32> to vector<8xi32>
    %566 = vector.shape_cast %565 : vector<8xi32> to vector<8x1xi32>
    %567 = vector.broadcast %566 : vector<8x1xi32> to vector<8x8xi32>
    %568 = arith.cmpi eq, %296, %567 : vector<8x8xi32>
    %569 = arith.extui %568 : vector<8x8xi1> to vector<8x8xi32>
    %570 = arith.sitofp %569 : vector<8x8xi32> to vector<8x8xf32>
    %cst_148 = arith.constant 0.000000e+00 : f32
    %571 = vector.broadcast %cst_148 : f32 to vector<8x32xf32>
    %572 = arith.mulf %570, %19 : vector<8x8xf32>
    %cst_149 = arith.constant dense<0.000000e+00> : vector<8xf32>
    %573 = vector.multi_reduction <add>, %572, %cst_149 [1] : vector<8x8xf32> to vector<8xf32>
    %574 = vector.shape_cast %573 : vector<8xf32> to vector<8x1xf32>
    %575 = vector.broadcast %574 : vector<8x1xf32> to vector<8x32xf32>
    %576 = vector.broadcast %301 : vector<1x32xf32> to vector<8x32xf32>
    %577 = arith.mulf %575, %576 : vector<8x32xf32>
    %578 = arith.addf %571, %577 : vector<8x32xf32>
    %579 = arith.mulf %570, %21 : vector<8x8xf32>
    %cst_150 = arith.constant dense<0.000000e+00> : vector<8xf32>
    %580 = vector.multi_reduction <add>, %579, %cst_150 [1] : vector<8x8xf32> to vector<8xf32>
    %581 = vector.shape_cast %580 : vector<8xf32> to vector<8x1xf32>
    %582 = vector.broadcast %581 : vector<8x1xf32> to vector<8x32xf32>
    %583 = vector.broadcast %305 : vector<1x32xf32> to vector<8x32xf32>
    %584 = arith.mulf %582, %583 : vector<8x32xf32>
    %585 = arith.addf %578, %584 : vector<8x32xf32>
    %586 = arith.subf %585, %514 : vector<8x32xf32>
    %587 = arith.mulf %586, %586 : vector<8x32xf32>
    %cst_151 = arith.constant dense<0.000000e+00> : vector<8xf32>
    %588 = vector.multi_reduction <add>, %587, %cst_151 [1] : vector<8x32xf32> to vector<8xf32>
    %589 = vector.shape_cast %588 : vector<8xf32> to vector<8x1xf32>
    %590 = math.sqrt %589 : vector<8x1xf32>
    %591 = arith.maximumf %520, %570 : vector<8x8xf32>
    %592 = arith.addf %521, %590 : vector<8x1xf32>
    %c4_i32_152 = arith.constant 4 : i32
    %cst_153 = arith.constant dense<0.000000e+00> : vector<8x96xf32>
    %593 = tpu.matmul %585, %9, %cst_153 {dimension_numbers = #tpu.dot_dimension_numbers<[1], [0], [0], [1], [0, 0, 1, 1], [], []>} : vector<8x32xf32>, vector<32x96xf32>, vector<8x96xf32> -> vector<8x96xf32>
    %594 = vector.broadcast %13 : vector<1x96xf32> to vector<8x96xf32>
    %595 = arith.addf %593, %594 : vector<8x96xf32>
    %596 = vector.extract_strided_slice %595 {offsets = [0, 0], sizes = [8, 32], strides = [1, 1]} : vector<8x96xf32> to vector<8x32xf32>
    %597 = vector.extract_strided_slice %295 {offsets = [0, 0], sizes = [8, 32], strides = [1, 1]} : vector<8x96xf32> to vector<8x32xf32>
    %598 = arith.addf %596, %597 : vector<8x32xf32>
    %599 = arith.negf %598 : vector<8x32xf32>
    %600 = math.exp %599 : vector<8x32xf32>
    %cst_154 = arith.constant 1.000000e+00 : f32
    %601 = vector.broadcast %cst_154 : f32 to vector<8x32xf32>
    %602 = arith.addf %601, %600 : vector<8x32xf32>
    %603 = arith.divf %601, %602 : vector<8x32xf32>
    %604 = vector.extract_strided_slice %595 {offsets = [0, 32], sizes = [8, 32], strides = [1, 1]} : vector<8x96xf32> to vector<8x32xf32>
    %605 = vector.extract_strided_slice %295 {offsets = [0, 32], sizes = [8, 32], strides = [1, 1]} : vector<8x96xf32> to vector<8x32xf32>
    %606 = arith.addf %604, %605 : vector<8x32xf32>
    %607 = arith.negf %606 : vector<8x32xf32>
    %608 = math.exp %607 : vector<8x32xf32>
    %cst_155 = arith.constant 1.000000e+00 : f32
    %609 = vector.broadcast %cst_155 : f32 to vector<8x32xf32>
    %610 = arith.addf %609, %608 : vector<8x32xf32>
    %611 = arith.divf %609, %610 : vector<8x32xf32>
    %612 = vector.extract_strided_slice %595 {offsets = [0, 64], sizes = [8, 32], strides = [1, 1]} : vector<8x96xf32> to vector<8x32xf32>
    %613 = vector.extract_strided_slice %295 {offsets = [0, 64], sizes = [8, 32], strides = [1, 1]} : vector<8x96xf32> to vector<8x32xf32>
    %614 = arith.mulf %603, %613 : vector<8x32xf32>
    %615 = arith.addf %612, %614 : vector<8x32xf32>
    %616 = math.tanh %615 : vector<8x32xf32>
    %cst_156 = arith.constant 1.000000e+00 : f32
    %617 = vector.broadcast %cst_156 : f32 to vector<8x32xf32>
    %618 = arith.subf %617, %611 : vector<8x32xf32>
    %619 = arith.mulf %618, %616 : vector<8x32xf32>
    %620 = arith.mulf %611, %292 : vector<8x32xf32>
    %621 = arith.addf %619, %620 : vector<8x32xf32>
    %622 = math.tanh %621 : vector<8x32xf32>
    %cst_157 = arith.constant dense<0.000000e+00> : vector<8x8xf32>
    %623 = tpu.matmul %622, %16, %cst_157 {dimension_numbers = #tpu.dot_dimension_numbers<[1], [0], [0], [1], [0, 0, 1, 1], [], []>} : vector<8x32xf32>, vector<32x8xf32>, vector<8x8xf32> -> vector<8x8xf32>
    %624 = vector.broadcast %17 : vector<1x8xf32> to vector<8x8xf32>
    %625 = arith.addf %623, %624 : vector<8x8xf32>
    %cst_158 = arith.constant 0.000000e+00 : f32
    %626 = vector.broadcast %cst_158 : f32 to vector<8x8xf32>
    %627 = arith.cmpf one, %591, %626 : vector<8x8xf32>
    %cst_159 = arith.constant 0xFF800000 : f32
    %628 = vector.broadcast %cst_159 : f32 to vector<8x8xf32>
    %629 = arith.select %627, %628, %625 : vector<8x8xi1>, vector<8x8xf32>
    %cst_160 = arith.constant dense<0xFF800000> : vector<8xf32>
    %630 = vector.multi_reduction <maximumf>, %629, %cst_160 [1] : vector<8x8xf32> to vector<8xf32>
    %631 = vector.shape_cast %630 : vector<8xf32> to vector<8x1xf32>
    %632 = vector.broadcast %631 : vector<8x1xf32> to vector<8x8xf32>
    %633 = arith.cmpf oeq, %629, %632 : vector<8x8xf32>
    %c1073741824_i32_161 = arith.constant 1073741824 : i32
    %634 = vector.broadcast %c1073741824_i32_161 : i32 to vector<8x8xi32>
    %635 = arith.select %633, %296, %634 : vector<8x8xi1>, vector<8x8xi32>
    %cst_162 = arith.constant dense<2147483647> : vector<8xi32>
    %636 = vector.multi_reduction <minsi>, %635, %cst_162 [1] : vector<8x8xi32> to vector<8xi32>
    %637 = vector.shape_cast %636 : vector<8xi32> to vector<8x1xi32>
    %638 = vector.broadcast %637 : vector<8x1xi32> to vector<8x8xi32>
    %639 = arith.cmpi eq, %296, %638 : vector<8x8xi32>
    %640 = arith.extui %639 : vector<8x8xi1> to vector<8x8xi32>
    %641 = arith.sitofp %640 : vector<8x8xi32> to vector<8x8xf32>
    %cst_163 = arith.constant 0.000000e+00 : f32
    %642 = vector.broadcast %cst_163 : f32 to vector<8x32xf32>
    %643 = arith.mulf %641, %19 : vector<8x8xf32>
    %cst_164 = arith.constant dense<0.000000e+00> : vector<8xf32>
    %644 = vector.multi_reduction <add>, %643, %cst_164 [1] : vector<8x8xf32> to vector<8xf32>
    %645 = vector.shape_cast %644 : vector<8xf32> to vector<8x1xf32>
    %646 = vector.broadcast %645 : vector<8x1xf32> to vector<8x32xf32>
    %647 = vector.broadcast %301 : vector<1x32xf32> to vector<8x32xf32>
    %648 = arith.mulf %646, %647 : vector<8x32xf32>
    %649 = arith.addf %642, %648 : vector<8x32xf32>
    %650 = arith.mulf %641, %21 : vector<8x8xf32>
    %cst_165 = arith.constant dense<0.000000e+00> : vector<8xf32>
    %651 = vector.multi_reduction <add>, %650, %cst_165 [1] : vector<8x8xf32> to vector<8xf32>
    %652 = vector.shape_cast %651 : vector<8xf32> to vector<8x1xf32>
    %653 = vector.broadcast %652 : vector<8x1xf32> to vector<8x32xf32>
    %654 = vector.broadcast %305 : vector<1x32xf32> to vector<8x32xf32>
    %655 = arith.mulf %653, %654 : vector<8x32xf32>
    %656 = arith.addf %649, %655 : vector<8x32xf32>
    %657 = arith.subf %656, %585 : vector<8x32xf32>
    %658 = arith.mulf %657, %657 : vector<8x32xf32>
    %cst_166 = arith.constant dense<0.000000e+00> : vector<8xf32>
    %659 = vector.multi_reduction <add>, %658, %cst_166 [1] : vector<8x32xf32> to vector<8xf32>
    %660 = vector.shape_cast %659 : vector<8xf32> to vector<8x1xf32>
    %661 = math.sqrt %660 : vector<8x1xf32>
    %662 = arith.maximumf %591, %641 : vector<8x8xf32>
    %663 = arith.addf %592, %661 : vector<8x1xf32>
    %c5_i32_167 = arith.constant 5 : i32
    %cst_168 = arith.constant dense<0.000000e+00> : vector<8x96xf32>
    %664 = tpu.matmul %656, %9, %cst_168 {dimension_numbers = #tpu.dot_dimension_numbers<[1], [0], [0], [1], [0, 0, 1, 1], [], []>} : vector<8x32xf32>, vector<32x96xf32>, vector<8x96xf32> -> vector<8x96xf32>
    %665 = vector.broadcast %13 : vector<1x96xf32> to vector<8x96xf32>
    %666 = arith.addf %664, %665 : vector<8x96xf32>
    %667 = vector.extract_strided_slice %666 {offsets = [0, 0], sizes = [8, 32], strides = [1, 1]} : vector<8x96xf32> to vector<8x32xf32>
    %668 = vector.extract_strided_slice %295 {offsets = [0, 0], sizes = [8, 32], strides = [1, 1]} : vector<8x96xf32> to vector<8x32xf32>
    %669 = arith.addf %667, %668 : vector<8x32xf32>
    %670 = arith.negf %669 : vector<8x32xf32>
    %671 = math.exp %670 : vector<8x32xf32>
    %cst_169 = arith.constant 1.000000e+00 : f32
    %672 = vector.broadcast %cst_169 : f32 to vector<8x32xf32>
    %673 = arith.addf %672, %671 : vector<8x32xf32>
    %674 = arith.divf %672, %673 : vector<8x32xf32>
    %675 = vector.extract_strided_slice %666 {offsets = [0, 32], sizes = [8, 32], strides = [1, 1]} : vector<8x96xf32> to vector<8x32xf32>
    %676 = vector.extract_strided_slice %295 {offsets = [0, 32], sizes = [8, 32], strides = [1, 1]} : vector<8x96xf32> to vector<8x32xf32>
    %677 = arith.addf %675, %676 : vector<8x32xf32>
    %678 = arith.negf %677 : vector<8x32xf32>
    %679 = math.exp %678 : vector<8x32xf32>
    %cst_170 = arith.constant 1.000000e+00 : f32
    %680 = vector.broadcast %cst_170 : f32 to vector<8x32xf32>
    %681 = arith.addf %680, %679 : vector<8x32xf32>
    %682 = arith.divf %680, %681 : vector<8x32xf32>
    %683 = vector.extract_strided_slice %666 {offsets = [0, 64], sizes = [8, 32], strides = [1, 1]} : vector<8x96xf32> to vector<8x32xf32>
    %684 = vector.extract_strided_slice %295 {offsets = [0, 64], sizes = [8, 32], strides = [1, 1]} : vector<8x96xf32> to vector<8x32xf32>
    %685 = arith.mulf %674, %684 : vector<8x32xf32>
    %686 = arith.addf %683, %685 : vector<8x32xf32>
    %687 = math.tanh %686 : vector<8x32xf32>
    %cst_171 = arith.constant 1.000000e+00 : f32
    %688 = vector.broadcast %cst_171 : f32 to vector<8x32xf32>
    %689 = arith.subf %688, %682 : vector<8x32xf32>
    %690 = arith.mulf %689, %687 : vector<8x32xf32>
    %691 = arith.mulf %682, %292 : vector<8x32xf32>
    %692 = arith.addf %690, %691 : vector<8x32xf32>
    %693 = math.tanh %692 : vector<8x32xf32>
    %cst_172 = arith.constant dense<0.000000e+00> : vector<8x8xf32>
    %694 = tpu.matmul %693, %16, %cst_172 {dimension_numbers = #tpu.dot_dimension_numbers<[1], [0], [0], [1], [0, 0, 1, 1], [], []>} : vector<8x32xf32>, vector<32x8xf32>, vector<8x8xf32> -> vector<8x8xf32>
    %695 = vector.broadcast %17 : vector<1x8xf32> to vector<8x8xf32>
    %696 = arith.addf %694, %695 : vector<8x8xf32>
    %cst_173 = arith.constant 0.000000e+00 : f32
    %697 = vector.broadcast %cst_173 : f32 to vector<8x8xf32>
    %698 = arith.cmpf one, %662, %697 : vector<8x8xf32>
    %cst_174 = arith.constant 0xFF800000 : f32
    %699 = vector.broadcast %cst_174 : f32 to vector<8x8xf32>
    %700 = arith.select %698, %699, %696 : vector<8x8xi1>, vector<8x8xf32>
    %cst_175 = arith.constant dense<0xFF800000> : vector<8xf32>
    %701 = vector.multi_reduction <maximumf>, %700, %cst_175 [1] : vector<8x8xf32> to vector<8xf32>
    %702 = vector.shape_cast %701 : vector<8xf32> to vector<8x1xf32>
    %703 = vector.broadcast %702 : vector<8x1xf32> to vector<8x8xf32>
    %704 = arith.cmpf oeq, %700, %703 : vector<8x8xf32>
    %c1073741824_i32_176 = arith.constant 1073741824 : i32
    %705 = vector.broadcast %c1073741824_i32_176 : i32 to vector<8x8xi32>
    %706 = arith.select %704, %296, %705 : vector<8x8xi1>, vector<8x8xi32>
    %cst_177 = arith.constant dense<2147483647> : vector<8xi32>
    %707 = vector.multi_reduction <minsi>, %706, %cst_177 [1] : vector<8x8xi32> to vector<8xi32>
    %708 = vector.shape_cast %707 : vector<8xi32> to vector<8x1xi32>
    %709 = vector.broadcast %708 : vector<8x1xi32> to vector<8x8xi32>
    %710 = arith.cmpi eq, %296, %709 : vector<8x8xi32>
    %711 = arith.extui %710 : vector<8x8xi1> to vector<8x8xi32>
    %712 = arith.sitofp %711 : vector<8x8xi32> to vector<8x8xf32>
    %cst_178 = arith.constant 0.000000e+00 : f32
    %713 = vector.broadcast %cst_178 : f32 to vector<8x32xf32>
    %714 = arith.mulf %712, %19 : vector<8x8xf32>
    %cst_179 = arith.constant dense<0.000000e+00> : vector<8xf32>
    %715 = vector.multi_reduction <add>, %714, %cst_179 [1] : vector<8x8xf32> to vector<8xf32>
    %716 = vector.shape_cast %715 : vector<8xf32> to vector<8x1xf32>
    %717 = vector.broadcast %716 : vector<8x1xf32> to vector<8x32xf32>
    %718 = vector.broadcast %301 : vector<1x32xf32> to vector<8x32xf32>
    %719 = arith.mulf %717, %718 : vector<8x32xf32>
    %720 = arith.addf %713, %719 : vector<8x32xf32>
    %721 = arith.mulf %712, %21 : vector<8x8xf32>
    %cst_180 = arith.constant dense<0.000000e+00> : vector<8xf32>
    %722 = vector.multi_reduction <add>, %721, %cst_180 [1] : vector<8x8xf32> to vector<8xf32>
    %723 = vector.shape_cast %722 : vector<8xf32> to vector<8x1xf32>
    %724 = vector.broadcast %723 : vector<8x1xf32> to vector<8x32xf32>
    %725 = vector.broadcast %305 : vector<1x32xf32> to vector<8x32xf32>
    %726 = arith.mulf %724, %725 : vector<8x32xf32>
    %727 = arith.addf %720, %726 : vector<8x32xf32>
    %728 = arith.subf %727, %656 : vector<8x32xf32>
    %729 = arith.mulf %728, %728 : vector<8x32xf32>
    %cst_181 = arith.constant dense<0.000000e+00> : vector<8xf32>
    %730 = vector.multi_reduction <add>, %729, %cst_181 [1] : vector<8x32xf32> to vector<8xf32>
    %731 = vector.shape_cast %730 : vector<8xf32> to vector<8x1xf32>
    %732 = math.sqrt %731 : vector<8x1xf32>
    %733 = arith.maximumf %662, %712 : vector<8x8xf32>
    %734 = arith.addf %663, %732 : vector<8x1xf32>
    %c6_i32_182 = arith.constant 6 : i32
    %cst_183 = arith.constant dense<0.000000e+00> : vector<8x96xf32>
    %735 = tpu.matmul %727, %9, %cst_183 {dimension_numbers = #tpu.dot_dimension_numbers<[1], [0], [0], [1], [0, 0, 1, 1], [], []>} : vector<8x32xf32>, vector<32x96xf32>, vector<8x96xf32> -> vector<8x96xf32>
    %736 = vector.broadcast %13 : vector<1x96xf32> to vector<8x96xf32>
    %737 = arith.addf %735, %736 : vector<8x96xf32>
    %738 = vector.extract_strided_slice %737 {offsets = [0, 0], sizes = [8, 32], strides = [1, 1]} : vector<8x96xf32> to vector<8x32xf32>
    %739 = vector.extract_strided_slice %295 {offsets = [0, 0], sizes = [8, 32], strides = [1, 1]} : vector<8x96xf32> to vector<8x32xf32>
    %740 = arith.addf %738, %739 : vector<8x32xf32>
    %741 = arith.negf %740 : vector<8x32xf32>
    %742 = math.exp %741 : vector<8x32xf32>
    %cst_184 = arith.constant 1.000000e+00 : f32
    %743 = vector.broadcast %cst_184 : f32 to vector<8x32xf32>
    %744 = arith.addf %743, %742 : vector<8x32xf32>
    %745 = arith.divf %743, %744 : vector<8x32xf32>
    %746 = vector.extract_strided_slice %737 {offsets = [0, 32], sizes = [8, 32], strides = [1, 1]} : vector<8x96xf32> to vector<8x32xf32>
    %747 = vector.extract_strided_slice %295 {offsets = [0, 32], sizes = [8, 32], strides = [1, 1]} : vector<8x96xf32> to vector<8x32xf32>
    %748 = arith.addf %746, %747 : vector<8x32xf32>
    %749 = arith.negf %748 : vector<8x32xf32>
    %750 = math.exp %749 : vector<8x32xf32>
    %cst_185 = arith.constant 1.000000e+00 : f32
    %751 = vector.broadcast %cst_185 : f32 to vector<8x32xf32>
    %752 = arith.addf %751, %750 : vector<8x32xf32>
    %753 = arith.divf %751, %752 : vector<8x32xf32>
    %754 = vector.extract_strided_slice %737 {offsets = [0, 64], sizes = [8, 32], strides = [1, 1]} : vector<8x96xf32> to vector<8x32xf32>
    %755 = vector.extract_strided_slice %295 {offsets = [0, 64], sizes = [8, 32], strides = [1, 1]} : vector<8x96xf32> to vector<8x32xf32>
    %756 = arith.mulf %745, %755 : vector<8x32xf32>
    %757 = arith.addf %754, %756 : vector<8x32xf32>
    %758 = math.tanh %757 : vector<8x32xf32>
    %cst_186 = arith.constant 1.000000e+00 : f32
    %759 = vector.broadcast %cst_186 : f32 to vector<8x32xf32>
    %760 = arith.subf %759, %753 : vector<8x32xf32>
    %761 = arith.mulf %760, %758 : vector<8x32xf32>
    %762 = arith.mulf %753, %292 : vector<8x32xf32>
    %763 = arith.addf %761, %762 : vector<8x32xf32>
    %764 = math.tanh %763 : vector<8x32xf32>
    %cst_187 = arith.constant dense<0.000000e+00> : vector<8x8xf32>
    %765 = tpu.matmul %764, %16, %cst_187 {dimension_numbers = #tpu.dot_dimension_numbers<[1], [0], [0], [1], [0, 0, 1, 1], [], []>} : vector<8x32xf32>, vector<32x8xf32>, vector<8x8xf32> -> vector<8x8xf32>
    %766 = vector.broadcast %17 : vector<1x8xf32> to vector<8x8xf32>
    %767 = arith.addf %765, %766 : vector<8x8xf32>
    %cst_188 = arith.constant 0.000000e+00 : f32
    %768 = vector.broadcast %cst_188 : f32 to vector<8x8xf32>
    %769 = arith.cmpf one, %733, %768 : vector<8x8xf32>
    %cst_189 = arith.constant 0xFF800000 : f32
    %770 = vector.broadcast %cst_189 : f32 to vector<8x8xf32>
    %771 = arith.select %769, %770, %767 : vector<8x8xi1>, vector<8x8xf32>
    %cst_190 = arith.constant dense<0xFF800000> : vector<8xf32>
    %772 = vector.multi_reduction <maximumf>, %771, %cst_190 [1] : vector<8x8xf32> to vector<8xf32>
    %773 = vector.shape_cast %772 : vector<8xf32> to vector<8x1xf32>
    %774 = vector.broadcast %773 : vector<8x1xf32> to vector<8x8xf32>
    %775 = arith.cmpf oeq, %771, %774 : vector<8x8xf32>
    %c1073741824_i32_191 = arith.constant 1073741824 : i32
    %776 = vector.broadcast %c1073741824_i32_191 : i32 to vector<8x8xi32>
    %777 = arith.select %775, %296, %776 : vector<8x8xi1>, vector<8x8xi32>
    %cst_192 = arith.constant dense<2147483647> : vector<8xi32>
    %778 = vector.multi_reduction <minsi>, %777, %cst_192 [1] : vector<8x8xi32> to vector<8xi32>
    %779 = vector.shape_cast %778 : vector<8xi32> to vector<8x1xi32>
    %780 = vector.broadcast %779 : vector<8x1xi32> to vector<8x8xi32>
    %781 = arith.cmpi eq, %296, %780 : vector<8x8xi32>
    %782 = arith.extui %781 : vector<8x8xi1> to vector<8x8xi32>
    %783 = arith.sitofp %782 : vector<8x8xi32> to vector<8x8xf32>
    %cst_193 = arith.constant 0.000000e+00 : f32
    %784 = vector.broadcast %cst_193 : f32 to vector<8x32xf32>
    %785 = arith.mulf %783, %19 : vector<8x8xf32>
    %cst_194 = arith.constant dense<0.000000e+00> : vector<8xf32>
    %786 = vector.multi_reduction <add>, %785, %cst_194 [1] : vector<8x8xf32> to vector<8xf32>
    %787 = vector.shape_cast %786 : vector<8xf32> to vector<8x1xf32>
    %788 = vector.broadcast %787 : vector<8x1xf32> to vector<8x32xf32>
    %789 = vector.broadcast %301 : vector<1x32xf32> to vector<8x32xf32>
    %790 = arith.mulf %788, %789 : vector<8x32xf32>
    %791 = arith.addf %784, %790 : vector<8x32xf32>
    %792 = arith.mulf %783, %21 : vector<8x8xf32>
    %cst_195 = arith.constant dense<0.000000e+00> : vector<8xf32>
    %793 = vector.multi_reduction <add>, %792, %cst_195 [1] : vector<8x8xf32> to vector<8xf32>
    %794 = vector.shape_cast %793 : vector<8xf32> to vector<8x1xf32>
    %795 = vector.broadcast %794 : vector<8x1xf32> to vector<8x32xf32>
    %796 = vector.broadcast %305 : vector<1x32xf32> to vector<8x32xf32>
    %797 = arith.mulf %795, %796 : vector<8x32xf32>
    %798 = arith.addf %791, %797 : vector<8x32xf32>
    %799 = arith.subf %798, %727 : vector<8x32xf32>
    %800 = arith.mulf %799, %799 : vector<8x32xf32>
    %cst_196 = arith.constant dense<0.000000e+00> : vector<8xf32>
    %801 = vector.multi_reduction <add>, %800, %cst_196 [1] : vector<8x32xf32> to vector<8xf32>
    %802 = vector.shape_cast %801 : vector<8xf32> to vector<8x1xf32>
    %803 = math.sqrt %802 : vector<8x1xf32>
    %804 = arith.maximumf %733, %783 : vector<8x8xf32>
    %805 = arith.addf %734, %803 : vector<8x1xf32>
    %c7_i32_197 = arith.constant 7 : i32
    %cst_198 = arith.constant dense<0.000000e+00> : vector<8x96xf32>
    %806 = tpu.matmul %798, %9, %cst_198 {dimension_numbers = #tpu.dot_dimension_numbers<[1], [0], [0], [1], [0, 0, 1, 1], [], []>} : vector<8x32xf32>, vector<32x96xf32>, vector<8x96xf32> -> vector<8x96xf32>
    %807 = vector.broadcast %13 : vector<1x96xf32> to vector<8x96xf32>
    %808 = arith.addf %806, %807 : vector<8x96xf32>
    %809 = vector.extract_strided_slice %808 {offsets = [0, 0], sizes = [8, 32], strides = [1, 1]} : vector<8x96xf32> to vector<8x32xf32>
    %810 = vector.extract_strided_slice %295 {offsets = [0, 0], sizes = [8, 32], strides = [1, 1]} : vector<8x96xf32> to vector<8x32xf32>
    %811 = arith.addf %809, %810 : vector<8x32xf32>
    %812 = arith.negf %811 : vector<8x32xf32>
    %813 = math.exp %812 : vector<8x32xf32>
    %cst_199 = arith.constant 1.000000e+00 : f32
    %814 = vector.broadcast %cst_199 : f32 to vector<8x32xf32>
    %815 = arith.addf %814, %813 : vector<8x32xf32>
    %816 = arith.divf %814, %815 : vector<8x32xf32>
    %817 = vector.extract_strided_slice %808 {offsets = [0, 32], sizes = [8, 32], strides = [1, 1]} : vector<8x96xf32> to vector<8x32xf32>
    %818 = vector.extract_strided_slice %295 {offsets = [0, 32], sizes = [8, 32], strides = [1, 1]} : vector<8x96xf32> to vector<8x32xf32>
    %819 = arith.addf %817, %818 : vector<8x32xf32>
    %820 = arith.negf %819 : vector<8x32xf32>
    %821 = math.exp %820 : vector<8x32xf32>
    %cst_200 = arith.constant 1.000000e+00 : f32
    %822 = vector.broadcast %cst_200 : f32 to vector<8x32xf32>
    %823 = arith.addf %822, %821 : vector<8x32xf32>
    %824 = arith.divf %822, %823 : vector<8x32xf32>
    %825 = vector.extract_strided_slice %808 {offsets = [0, 64], sizes = [8, 32], strides = [1, 1]} : vector<8x96xf32> to vector<8x32xf32>
    %826 = vector.extract_strided_slice %295 {offsets = [0, 64], sizes = [8, 32], strides = [1, 1]} : vector<8x96xf32> to vector<8x32xf32>
    %827 = arith.mulf %816, %826 : vector<8x32xf32>
    %828 = arith.addf %825, %827 : vector<8x32xf32>
    %829 = math.tanh %828 : vector<8x32xf32>
    %cst_201 = arith.constant 1.000000e+00 : f32
    %830 = vector.broadcast %cst_201 : f32 to vector<8x32xf32>
    %831 = arith.subf %830, %824 : vector<8x32xf32>
    %832 = arith.mulf %831, %829 : vector<8x32xf32>
    %833 = arith.mulf %824, %292 : vector<8x32xf32>
    %834 = arith.addf %832, %833 : vector<8x32xf32>
    %835 = math.tanh %834 : vector<8x32xf32>
    %cst_202 = arith.constant dense<0.000000e+00> : vector<8x8xf32>
    %836 = tpu.matmul %835, %16, %cst_202 {dimension_numbers = #tpu.dot_dimension_numbers<[1], [0], [0], [1], [0, 0, 1, 1], [], []>} : vector<8x32xf32>, vector<32x8xf32>, vector<8x8xf32> -> vector<8x8xf32>
    %837 = vector.broadcast %17 : vector<1x8xf32> to vector<8x8xf32>
    %838 = arith.addf %836, %837 : vector<8x8xf32>
    %cst_203 = arith.constant 0.000000e+00 : f32
    %839 = vector.broadcast %cst_203 : f32 to vector<8x8xf32>
    %840 = arith.cmpf one, %804, %839 : vector<8x8xf32>
    %cst_204 = arith.constant 0xFF800000 : f32
    %841 = vector.broadcast %cst_204 : f32 to vector<8x8xf32>
    %842 = arith.select %840, %841, %838 : vector<8x8xi1>, vector<8x8xf32>
    %cst_205 = arith.constant dense<0xFF800000> : vector<8xf32>
    %843 = vector.multi_reduction <maximumf>, %842, %cst_205 [1] : vector<8x8xf32> to vector<8xf32>
    %844 = vector.shape_cast %843 : vector<8xf32> to vector<8x1xf32>
    %845 = vector.broadcast %844 : vector<8x1xf32> to vector<8x8xf32>
    %846 = arith.cmpf oeq, %842, %845 : vector<8x8xf32>
    %c1073741824_i32_206 = arith.constant 1073741824 : i32
    %847 = vector.broadcast %c1073741824_i32_206 : i32 to vector<8x8xi32>
    %848 = arith.select %846, %296, %847 : vector<8x8xi1>, vector<8x8xi32>
    %cst_207 = arith.constant dense<2147483647> : vector<8xi32>
    %849 = vector.multi_reduction <minsi>, %848, %cst_207 [1] : vector<8x8xi32> to vector<8xi32>
    %850 = vector.shape_cast %849 : vector<8xi32> to vector<8x1xi32>
    %851 = vector.broadcast %850 : vector<8x1xi32> to vector<8x8xi32>
    %852 = arith.cmpi eq, %296, %851 : vector<8x8xi32>
    %853 = arith.extui %852 : vector<8x8xi1> to vector<8x8xi32>
    %854 = arith.sitofp %853 : vector<8x8xi32> to vector<8x8xf32>
    %cst_208 = arith.constant 0.000000e+00 : f32
    %855 = vector.broadcast %cst_208 : f32 to vector<8x32xf32>
    %856 = arith.mulf %854, %19 : vector<8x8xf32>
    %cst_209 = arith.constant dense<0.000000e+00> : vector<8xf32>
    %857 = vector.multi_reduction <add>, %856, %cst_209 [1] : vector<8x8xf32> to vector<8xf32>
    %858 = vector.shape_cast %857 : vector<8xf32> to vector<8x1xf32>
    %859 = vector.broadcast %858 : vector<8x1xf32> to vector<8x32xf32>
    %860 = vector.broadcast %301 : vector<1x32xf32> to vector<8x32xf32>
    %861 = arith.mulf %859, %860 : vector<8x32xf32>
    %862 = arith.addf %855, %861 : vector<8x32xf32>
    %863 = arith.mulf %854, %21 : vector<8x8xf32>
    %cst_210 = arith.constant dense<0.000000e+00> : vector<8xf32>
    %864 = vector.multi_reduction <add>, %863, %cst_210 [1] : vector<8x8xf32> to vector<8xf32>
    %865 = vector.shape_cast %864 : vector<8xf32> to vector<8x1xf32>
    %866 = vector.broadcast %865 : vector<8x1xf32> to vector<8x32xf32>
    %867 = vector.broadcast %305 : vector<1x32xf32> to vector<8x32xf32>
    %868 = arith.mulf %866, %867 : vector<8x32xf32>
    %869 = arith.addf %862, %868 : vector<8x32xf32>
    %870 = arith.subf %869, %798 : vector<8x32xf32>
    %871 = arith.mulf %870, %870 : vector<8x32xf32>
    %cst_211 = arith.constant dense<0.000000e+00> : vector<8xf32>
    %872 = vector.multi_reduction <add>, %871, %cst_211 [1] : vector<8x32xf32> to vector<8xf32>
    %873 = vector.shape_cast %872 : vector<8xf32> to vector<8x1xf32>
    %874 = math.sqrt %873 : vector<8x1xf32>
    %875 = arith.maximumf %804, %854 : vector<8x8xf32>
    %876 = arith.addf %805, %874 : vector<8x1xf32>
    %c0_212 = arith.constant 0 : index
    %c0_213 = arith.constant 0 : index
    %877 = vector.load %arg14[%c0_212, %c0_213] : memref<8x1xf32, #tpu.memory_space<vmem>>, vector<8x1xf32>
    tpu.vector_store %arg14[%c0_212, %c0_213], %876 {strides = array<i32>} : memref<8x1xf32, #tpu.memory_space<vmem>>, vector<8x1xf32>,
    return
  }
  func.func @transform_0(%arg0: i32) -> (i32, i32, i32) {
    %c0_i32 = arith.constant 0 : i32
    %c0_i32_0 = arith.constant 0 : i32
    %c0_i32_1 = arith.constant 0 : i32
    return %c0_i32, %arg0, %c0_i32_0 : i32, i32, i32
  }
  func.func @transform_1(%arg0: i32) -> (i32, i32, i32) {
    %c0_i32 = arith.constant 0 : i32
    %c0_i32_0 = arith.constant 0 : i32
    %c0_i32_1 = arith.constant 0 : i32
    return %c0_i32, %arg0, %c0_i32_0 : i32, i32, i32
  }
  func.func @transform_2(%arg0: i32) -> (i32, i32) {
    %c0_i32 = arith.constant 0 : i32
    %c0_i32_0 = arith.constant 0 : i32
    return %arg0, %c0_i32 : i32, i32
  }
  func.func @transform_3(%arg0: i32) -> (i32, i32, i32) {
    %c0_i32 = arith.constant 0 : i32
    %c0_i32_0 = arith.constant 0 : i32
    %c0_i32_1 = arith.constant 0 : i32
    %c0_i32_2 = arith.constant 0 : i32
    return %c0_i32, %c0_i32_0, %c0_i32_1 : i32, i32, i32
  }
  func.func @transform_4(%arg0: i32) -> (i32, i32, i32) {
    %c0_i32 = arith.constant 0 : i32
    %c0_i32_0 = arith.constant 0 : i32
    %c0_i32_1 = arith.constant 0 : i32
    %c0_i32_2 = arith.constant 0 : i32
    return %c0_i32, %c0_i32_0, %c0_i32_1 : i32, i32, i32
  }
  func.func @transform_5(%arg0: i32) -> (i32, i32, i32) {
    %c0_i32 = arith.constant 0 : i32
    %c0_i32_0 = arith.constant 0 : i32
    %c0_i32_1 = arith.constant 0 : i32
    %c0_i32_2 = arith.constant 0 : i32
    return %c0_i32, %c0_i32_0, %c0_i32_1 : i32, i32, i32
  }
  func.func @transform_6(%arg0: i32) -> (i32, i32, i32) {
    %c0_i32 = arith.constant 0 : i32
    %c0_i32_0 = arith.constant 0 : i32
    %c0_i32_1 = arith.constant 0 : i32
    %c0_i32_2 = arith.constant 0 : i32
    return %c0_i32, %c0_i32_0, %c0_i32_1 : i32, i32, i32
  }
  func.func @transform_7(%arg0: i32) -> (i32, i32, i32) {
    %c0_i32 = arith.constant 0 : i32
    %c0_i32_0 = arith.constant 0 : i32
    %c0_i32_1 = arith.constant 0 : i32
    %c0_i32_2 = arith.constant 0 : i32
    return %c0_i32, %c0_i32_0, %c0_i32_1 : i32, i32, i32
  }
  func.func @transform_8(%arg0: i32) -> (i32, i32, i32) {
    %c0_i32 = arith.constant 0 : i32
    %c0_i32_0 = arith.constant 0 : i32
    %c0_i32_1 = arith.constant 0 : i32
    %c0_i32_2 = arith.constant 0 : i32
    return %c0_i32, %c0_i32_0, %c0_i32_1 : i32, i32, i32
  }
  func.func @transform_9(%arg0: i32) -> (i32, i32, i32) {
    %c0_i32 = arith.constant 0 : i32
    %c0_i32_0 = arith.constant 0 : i32
    %c0_i32_1 = arith.constant 0 : i32
    %c0_i32_2 = arith.constant 0 : i32
    return %c0_i32, %c0_i32_0, %c0_i32_1 : i32, i32, i32
  }
  func.func @transform_10(%arg0: i32) -> (i32, i32, i32) {
    %c0_i32 = arith.constant 0 : i32
    %c0_i32_0 = arith.constant 0 : i32
    %c0_i32_1 = arith.constant 0 : i32
    %c0_i32_2 = arith.constant 0 : i32
    return %c0_i32, %c0_i32_0, %c0_i32_1 : i32, i32, i32
  }
  func.func @transform_11(%arg0: i32) -> (i32, i32) {
    %c0_i32 = arith.constant 0 : i32
    %c0_i32_0 = arith.constant 0 : i32
    %c0_i32_1 = arith.constant 0 : i32
    return %c0_i32, %c0_i32_0 : i32, i32
  }
  func.func @transform_12(%arg0: i32) -> (i32, i32) {
    %c0_i32 = arith.constant 0 : i32
    %c0_i32_0 = arith.constant 0 : i32
    %c0_i32_1 = arith.constant 0 : i32
    return %c0_i32, %c0_i32_0 : i32, i32
  }
  func.func @transform_13(%arg0: i32) -> (i32, i32) {
    %c0_i32 = arith.constant 0 : i32
    %c0_i32_0 = arith.constant 0 : i32
    return %arg0, %c0_i32 : i32, i32
  }
}

</mosaic_0001>

<bundles_post_ra>
// kernel: seq2seq_forward.1
= control target key start
LH: loop header
LB: loop body
LE: loop exit
PB: predicated region body
PF: predicated region fallthrough
CT: control target
= control target key end

     0   :  { %vm83_vm0 = vcmask 261120   ;;  %v2053_v9 = vmov 0.0   ;;  %vm149_vm1 = vcmask 785408   ;;  %s2054_s28 = smov 64   ;;  %s2771_s3 = inlined_call_operand.vmem [shape: f32[1,32,96], index: 3, kind: input, shape index: {}]   ;;  %s2772_s4 = inlined_call_operand.vmem [shape: f32[1,32,96], index: 4, kind: input, shape index: {}]   ;;  %s2773_s0 = inlined_call_operand.vmem [shape: f32[8,8,32], index: 0, kind: input, shape index: {}]   ;;  %s2774_s5 = inlined_call_operand.vmem [shape: f32[1,1,96], index: 5, kind: input, shape index: {}]   ;;  %s2775_s6 = inlined_call_operand.vmem [shape: f32[1,1,96], index: 6, kind: input, shape index: {}]   ;;  %s2776_s8 = inlined_call_operand.vmem [shape: f32[1,32,96], index: 8, kind: input, shape index: {}]   ;;  %s2777_s7 = inlined_call_operand.vmem [shape: f32[1,32,96], index: 7, kind: input, shape index: {}]   ;;  %s2778_s10 = inlined_call_operand.vmem [shape: f32[1,1,96], index: 10, kind: input, shape index: {}]   ;;  %s2779_s9 = inlined_call_operand.vmem [shape: f32[1,1,96], index: 9, kind: input, shape index: {}]   ;;  %s2780_s12 = inlined_call_operand.vmem [shape: f32[1,8], index: 12, kind: input, shape index: {}]   ;;  %s2781_s11 = inlined_call_operand.vmem [shape: f32[32,8], index: 11, kind: input, shape index: {}]   ;;  %s2782_s2 = inlined_call_operand.vmem [shape: f32[8,8], index: 2, kind: input, shape index: {}]   ;;  %s2783_s1 = inlined_call_operand.vmem [shape: f32[2,8,8], index: 1, kind: input, shape index: {}]   ;;  %s2784_s13 = inlined_call_operand.vmem [shape: f32[8,1], index: 13, kind: output, shape index: {}]  }
   0x1   :  { %v47_v0 = vld [vmem:[%s2771_s3 + $0x18] sm:$0xff]  ;;  %v46_v2 = vld [vmem:[%s2771_s3 + $0x10] sm:$0xff]  ;;  %v45_v4 = vld [vmem:[%s2771_s3 + $0x8] sm:$0xff] }
   0x2   :  { %v2132_v1 = vld [vmem:[%s2772_s4 + $0x18] sm:$0xff]  ;;  %120 = vmatpush.msra.mxu0 %v47_v0  ;;  %v2141_v3 = vld [vmem:[%s2772_s4 + $0x10] sm:$0xff]  ;;  %v2149_v5 = vld [vmem:[%s2772_s4 + $0x8] sm:$0xff] }
   0x3   :  { %177 = vmatpush.msra.mxu1 %v2132_v1  ;;  %243 = vmatpush.msra.mxu2 %v2132_v1  ;;  %v44_v6 = vld [vmem:[%s2771_s3] sm:$0xff]  ;;  %v73_v36 = vld [vmem:[%s2773_s0 + $0x8] sm:$0xff] }
   0x4   :  { %309 = vmatpush.msra.mxu3 %v2132_v1  ;;  %121 = vmatpush.msra.mxu0 %v46_v2  ;;  %v2160_v7 = vld [vmem:[%s2772_s4] sm:$0xff] }
   0x5   :  { %178 = vmatpush.msra.mxu1 %v2141_v3  ;;  %244 = vmatpush.msra.mxu2 %v2141_v3  ;;  %v72_v8 = vld [vmem:[%s2773_s0] sm:$0xff] }
   0x6   :  { %310 = vmatpush.msra.mxu3 %v2141_v3  ;;  %122 = vmatpush.msra.mxu0 %v45_v4  ;;  %v2194_v10 = vld [vmem:[%s2774_s5] ss:$0 sm:$0xff]  ;;  %s2055_s5 = smov 96  }
   0x7   :  { %179 = vmatpush.msra.mxu1 %v2149_v5  ;;  %245 = vmatpush.msra.mxu2 %v2149_v5  ;;  %v2199_v11 = vld [vmem:[%s2775_s6] ss:$0 sm:$0xff] }
   0x8   :  { %311 = vmatpush.msra.mxu3 %v2149_v5  ;;  %123 = vmatpush.msra.mxu0 %v44_v6 }
   0x9   :  { %180 = vmatpush.msra.mxu1 %v2160_v7  ;;  %1856 = vmatmul.msk.f32.vlgmr.msra.gmra.mxu0 %vm83_vm0, %v72_v8 }
   0xa   :  { %181 = vmatmul.f32.vlgmr.msra.gmra.mxu1 %v2053_v9  ;;  %246 = vmatpush.msra.mxu2 %v2160_v7 }
   0xb   :  { %312 = vmatpush.msra.mxu3 %v2160_v7  ;;  %375 = vmatpush.msrb.mxu1 %v2132_v1 }
   0xc   :  { %441 = vmatpush.msrb.mxu2 %v2132_v1 }
   0xd   :  { %507 = vmatpush.msrb.mxu3 %v2132_v1  ;;  %376 = vmatpush.msrb.mxu1 %v2141_v3 }
   0xe   :  { %442 = vmatpush.msrb.mxu2 %v2141_v3 }
   0xf   :  { %508 = vmatpush.msrb.mxu3 %v2141_v3  ;;  %377 = vmatpush.msrb.mxu1 %v2149_v5 }
  0x10   :  { %443 = vmatpush.msrb.mxu2 %v2149_v5 }
  0x11   :  { %509 = vmatpush.msrb.mxu3 %v2149_v5  ;;  %378 = vmatpush.msrb.mxu1 %v2160_v7 }
  0x12   :  { %444 = vmatpush.msrb.mxu2 %v2160_v7  ;;  %1857 = vmatmul.msk.f32.gmra.mxu0 %vm83_vm0, %v73_v36 }
  0x13   :  { %510 = vmatpush.msrb.mxu3 %v2160_v7  ;;  %573 = vmatpush.msra.mxu1 %v2132_v1 }
  0x15   :  { %574 = vmatpush.msra.mxu1 %v2141_v3 }
  0x17   :  { %575 = vmatpush.msra.mxu1 %v2149_v5 }
  0x19   :  { %576 = vmatpush.msra.mxu1 %v2160_v7 }
  0x86   :  { %v125_v12 = vpop.f32.mrf.mxu0 }
  0x87   :  { %v182_v13 = vpop.f32.mrf.mxu1  ;;  %v126_v14 = vadd.f32 %v2194_v10, %v125_v12 }
  0x88   :  { %v183_v15 = vadd.f32 %v2199_v11, %v182_v13 }
  0x89   :  { %150 = vst.msk [vmem:[#allocation2] sm:$0xff] %vm149_vm1, %v126_v14 }
  0x8a   :  { %206 = vrot.lane.b32.xlu0 %v183_v15, %s2054_s28 }
  0x8f   :  { %v128_v42 = vpop.f32.mrf.mxu0 }
  0x90   :  { %v158_v16 = vld [vmem:[#allocation2] sm:$0xff]  ;;  %v129_v43 = vadd.f32 %v2194_v10, %v128_v42 }
  0x91   :  { %v185_v17 = vadd.f32 %v183_v15, %v158_v16 }
  0x92   :  { %151 = vst.msk [vmem:[#allocation2 + $0x8] sm:$0xff] %vm149_vm1, %v129_v43 }
  0x93   :  { %v1864_v18 = vmul.f32 -1.442695, %v185_v17 }
  0x95   :  { %1921 = vpow2.f32 %v1864_v18 }
  0x99   :  { %v225_v47 = vld [vmem:[#allocation2 + $0x8] sm:$0xff] }
  0x9b   :  { %v1922_v19 = vpop.eup %1921 }
  0x9c   :  { %v189_v20 = vadd.f32 1.0, %v1922_v19 }
  0x9e   :  { %1923 = vrcp.f32 %v189_v20  ;;  %v201_v26 = vand.u32 2147483648, %v189_v20  ;;  %vm195_vm3 = vweird.f32 %v189_v20  ;;  %v199_v27 = vand.u32 2147483647, %v189_v20 }
  0xa0   :  { %v202_v29 = vor.u32 1.1754944e-38, %v201_v26  ;;  %vm200_vm5 = vcmp.eq.f32.partialorder %v199_v27, 8.507059e+37 }
  0xa4   :  { %v1924_v21 = vpop.eup %1923 }
  0xa5   :  { %v191_v22 = vmul.f32 %v1924_v21, %v189_v20  ;;  %vm196_vm2 = vweird.f32 %v1924_v21 }
  0xa6   :  { %vm197_vm4 = vmor %vm195_vm3, %vm196_vm2 }
  0xa7   :  { %v192_v23 = vsub.f32 1.0, %v191_v22 }
  0xa9   :  { %v193_v24 = vmul.f32 %v1924_v21, %v192_v23 }
  0xab   :  { %v194_v25 = vadd.f32 %v1924_v21, %v193_v24 }
  0xad   :  { %v198_v28 = vsel %vm197_vm4, %v1924_v21, %v194_v25 }
  0xae   :  { %v203_v31 = vsel %vm200_vm5, %v202_v29, %v198_v28 }
  0xaf   :  { %v216_v37 = vsub.f32 1.0, %v203_v31  ;;  %v222_v39 = vmul.f32 0.0, %v203_v31 }
  0xfc   :  { %v207_v30 = vpop.permute.xlu0 %206 }
  0xfd   :  { %v209_v32 = vmul.f32 %v207_v30, %v203_v31 }
  0xff   :  { %211 = vrot.lane.b32.xlu0 %v209_v32, %s2054_s28 }
 0x171   :  { %v212_v33 = vpop.permute.xlu0 %211 }
 0x172   :  { %v214_v34 = vadd.f32 %v212_v33, %v158_v16 }
 0x174   :  { %1925 = vtanh.f32 %v214_v34 }
 0x17a   :  { %v1926_v35 = vpop.eup %1925 }
 0x17b   :  { %218 = vrot.lane.b32.xlu1 %v1926_v35, %s2055_s5 }
 0x1ed   :  { %v219_v38 = vpop.permute.xlu1 %218 }
 0x1ee   :  { %v221_v40 = vmul.f32 %v219_v38, %v216_v37  ;;  %v75_v37 = vld [vmem:[%s2773_s0 + $0x18] sm:$0xff] }
 0x1f0   :  { %v223_v41 = vadd.f32 %v222_v39, %v221_v40 }
 0x1f2   :  { %227 = vrot.lane.b32.xlu1 %v223_v41, %s2055_s5 }
 0x264   :  { %v228_v44 = vpop.permute.xlu1 %227 }
 0x265   :  { %1865 = vmatmul.msk.f32.vlgmr.msra.gmra.mxu2 %vm83_vm0, %v228_v44 }
 0x266   :  { %639 = vmatpush.msra.mxu2 %v2132_v1 }
 0x268   :  { %640 = vmatpush.msra.mxu2 %v2141_v3  ;;  %v74_v3 = vld [vmem:[%s2773_s0 + $0x10] sm:$0xff] }
 0x269   :  { %1858 = vmatmul.msk.f32.gmra.mxu0 %vm83_vm0, %v74_v3 }
 0x26a   :  { %641 = vmatpush.msra.mxu2 %v2149_v5 }
 0x26c   :  { %642 = vmatpush.msra.mxu2 %v2160_v7 }
 0x271   :  { %1859 = vmatmul.msk.f32.gmra.mxu0 %vm83_vm0, %v75_v37 }
 0x2e6   :  { %v131_v12 = vpop.f32.mrf.mxu0 }
 0x2e7   :  { %v132_v13 = vadd.f32 %v2194_v10, %v131_v12 }
 0x2e8   :  { %v248_v45 = vpop.f32.mrf.mxu2 }
 0x2e9   :  { %v249_v46 = vadd.f32 %v2199_v11, %v248_v45  ;;  %152 = vst.msk [vmem:[#allocation2 + $0x10] sm:$0xff] %vm149_vm1, %v132_v13 }
 0x2eb   :  { %272 = vrot.lane.b32.xlu2 %v249_v46, %s2054_s28  ;;  %v251_v48 = vadd.f32 %v249_v46, %v225_v47 }
 0x2ed   :  { %v1866_v49 = vmul.f32 -1.442695, %v251_v48 }
 0x2ee   :  { %v134_v44 = vpop.f32.mrf.mxu0 }
 0x2ef   :  { %1927 = vpow2.f32 %v1866_v49  ;;  %v135_v45 = vadd.f32 %v2194_v10, %v134_v44 }
 0x2f0   :  { %v291_v17 = vld [vmem:[#allocation2 + $0x10] sm:$0xff] }
 0x2f1   :  { %153 = vst.msk [vmem:[#allocation2 + $0x18] sm:$0xff] %vm149_vm1, %v135_v45 }
 0x2f5   :  { %v1928_v50 = vpop.eup %1927 }
 0x2f6   :  { %v255_v51 = vadd.f32 1.0, %v1928_v50 }
 0x2f8   :  { %1929 = vrcp.f32 %v255_v51  ;;  %v267_v57 = vand.u32 2147483648, %v255_v51  ;;  %vm261_vm7 = vweird.f32 %v255_v51  ;;  %v265_v58 = vand.u32 2147483647, %v255_v51  ;;  %v357_v48 = vld [vmem:[#allocation2 + $0x18] sm:$0xff] }
 0x2fa   :  { %v268_v60 = vor.u32 1.1754944e-38, %v267_v57  ;;  %vm266_vm9 = vcmp.eq.f32.partialorder %v265_v58, 8.507059e+37 }
 0x2fe   :  { %v1930_v52 = vpop.eup %1929 }
 0x2ff   :  { %v257_v53 = vmul.f32 %v1930_v52, %v255_v51  ;;  %vm262_vm6 = vweird.f32 %v1930_v52 }
 0x300   :  { %vm263_vm8 = vmor %vm261_vm7, %vm262_vm6 }
 0x301   :  { %v258_v54 = vsub.f32 1.0, %v257_v53 }
 0x303   :  { %v259_v55 = vmul.f32 %v1930_v52, %v258_v54 }
 0x305   :  { %v260_v56 = vadd.f32 %v1930_v52, %v259_v55 }
 0x307   :  { %v264_v59 = vsel %vm263_vm8, %v1930_v52, %v260_v56 }
 0x308   :  { %v269_v62 = vsel %vm266_vm9, %v268_v60, %v264_v59 }
 0x309   :  { %v282_v4 = vsub.f32 1.0, %v269_v62  ;;  %v288_v6 = vmul.f32 %v269_v62, %v223_v41 }
 0x345   :  { %v273_v61 = vpop.permute.xlu2 %272 }
 0x346   :  { %v275_v63 = vmul.f32 %v273_v61, %v269_v62 }
 0x348   :  { %277 = vrot.lane.b32.xlu2 %v275_v63, %s2054_s28 }
 0x3a2   :  { %v278_v0 = vpop.permute.xlu2 %277 }
 0x3a3   :  { %v280_v1 = vadd.f32 %v278_v0, %v225_v47 }
 0x3a5   :  { %1931 = vtanh.f32 %v280_v1 }
 0x3ab   :  { %v1932_v2 = vpop.eup %1931 }
 0x3ac   :  { %284 = vrot.lane.b32.xlu0 %v1932_v2, %s2055_s5 }
 0x41e   :  { %v285_v5 = vpop.permute.xlu0 %284 }
 0x41f   :  { %v287_v7 = vmul.f32 %v285_v5, %v282_v4  ;;  %v76_v4 = vld [vmem:[%s2773_s0 + $0x20] sm:$0xff] }
 0x420   :  { %1860 = vmatmul.msk.f32.gmra.mxu0 %vm83_vm0, %v76_v4 }
 0x421   :  { %v289_v8 = vadd.f32 %v288_v6, %v287_v7 }
 0x423   :  { %293 = vrot.lane.b32.xlu1 %v289_v8, %s2055_s5 }
 0x495   :  { %v294_v14 = vpop.permute.xlu1 %293 }
 0x496   :  { %1867 = vmatmul.msk.f32.vlgmr.msra.gmra.mxu3 %vm83_vm0, %v294_v14 }
 0x49d   :  { %v137_v13 = vpop.f32.mrf.mxu0 }
 0x49e   :  { %v138_v14 = vadd.f32 %v2194_v10, %v137_v13 }
 0x4a0   :  { %154 = vst.msk [vmem:[#allocation2 + $0x20] sm:$0xff] %vm149_vm1, %v138_v14 }
 0x519   :  { %v314_v15 = vpop.f32.mrf.mxu3 }
 0x51a   :  { %v315_v16 = vadd.f32 %v2199_v11, %v314_v15 }
 0x51c   :  { %338 = vrot.lane.b32.xlu2 %v315_v16, %s2054_s28  ;;  %v317_v18 = vadd.f32 %v315_v16, %v291_v17 }
 0x51e   :  { %v1868_v19 = vmul.f32 -1.442695, %v317_v18  ;;  %v423_v18 = vld [vmem:[#allocation2 + $0x20] sm:$0xff] }
 0x520   :  { %1933 = vpow2.f32 %v1868_v19 }
 0x526   :  { %v1934_v20 = vpop.eup %1933 }
 0x527   :  { %v321_v21 = vadd.f32 1.0, %v1934_v20 }
 0x529   :  { %1935 = vrcp.f32 %v321_v21  ;;  %v333_v27 = vand.u32 2147483648, %v321_v21  ;;  %vm327_vm11 = vweird.f32 %v321_v21  ;;  %v331_v28 = vand.u32 2147483647, %v321_v21 }
 0x52b   :  { %v334_v30 = vor.u32 1.1754944e-38, %v333_v27  ;;  %vm332_vm13 = vcmp.eq.f32.partialorder %v331_v28, 8.507059e+37 }
 0x52f   :  { %v1936_v22 = vpop.eup %1935 }
 0x530   :  { %v323_v23 = vmul.f32 %v1936_v22, %v321_v21  ;;  %vm328_vm10 = vweird.f32 %v1936_v22 }
 0x531   :  { %vm329_vm12 = vmor %vm327_vm11, %vm328_vm10 }
 0x532   :  { %v324_v24 = vsub.f32 1.0, %v323_v23 }
 0x534   :  { %v325_v25 = vmul.f32 %v1936_v22, %v324_v24 }
 0x536   :  { %v326_v26 = vadd.f32 %v1936_v22, %v325_v25 }
 0x538   :  { %v330_v29 = vsel %vm329_vm12, %v1936_v22, %v326_v26 }
 0x539   :  { %v335_v32 = vsel %vm332_vm13, %v334_v30, %v330_v29 }
 0x53a   :  { %v348_v38 = vsub.f32 1.0, %v335_v32  ;;  %v354_v40 = vmul.f32 %v335_v32, %v289_v8 }
 0x576   :  { %v339_v31 = vpop.permute.xlu2 %338 }
 0x577   :  { %v341_v33 = vmul.f32 %v339_v31, %v335_v32 }
 0x579   :  { %343 = vrot.lane.b32.xlu0 %v341_v33, %s2054_s28 }
 0x5eb   :  { %v344_v34 = vpop.permute.xlu0 %343 }
 0x5ec   :  { %v346_v35 = vadd.f32 %v344_v34, %v291_v17 }
 0x5ee   :  { %1937 = vtanh.f32 %v346_v35 }
 0x5f4   :  { %v1938_v36 = vpop.eup %1937 }
 0x5f5   :  { %350 = vrot.lane.b32.xlu1 %v1938_v36, %s2055_s5 }
 0x667   :  { %v351_v39 = vpop.permute.xlu1 %350 }
 0x668   :  { %v353_v41 = vmul.f32 %v351_v39, %v348_v38  ;;  %v77_v38 = vld [vmem:[%s2773_s0 + $0x28] sm:$0xff] }
 0x669   :  { %1861 = vmatmul.msk.f32.gmra.mxu0 %vm83_vm0, %v77_v38 }
 0x66a   :  { %v355_v42 = vadd.f32 %v354_v40, %v353_v41 }
 0x66c   :  { %359 = vrot.lane.b32.xlu2 %v355_v42, %s2055_s5 }
 0x6c6   :  { %v360_v43 = vpop.permute.xlu2 %359 }
 0x6c7   :  { %1869 = vmatmul.msk.f32.vlgmr.msrb.gmra.mxu1 %vm83_vm0, %v360_v43 }
 0x6e6   :  { %v140_v44 = vpop.f32.mrf.mxu0 }
 0x6e7   :  { %v141_v45 = vadd.f32 %v2194_v10, %v140_v44 }
 0x6e9   :  { %155 = vst.msk [vmem:[#allocation2 + $0x28] sm:$0xff] %vm149_vm1, %v141_v45 }
 0x744   :  { %v380_v46 = vpop.f32.mrf.mxu1 }
 0x745   :  { %v381_v47 = vadd.f32 %v2199_v11, %v380_v46 }
 0x747   :  { %404 = vrot.lane.b32.xlu0 %v381_v47, %s2054_s28  ;;  %v383_v49 = vadd.f32 %v381_v47, %v357_v48 }
 0x749   :  { %v1870_v50 = vmul.f32 -1.442695, %v383_v49  ;;  %v489_v49 = vld [vmem:[#allocation2 + $0x28] sm:$0xff] }
 0x74b   :  { %1939 = vpow2.f32 %v1870_v50 }
 0x751   :  { %v1940_v51 = vpop.eup %1939 }
 0x752   :  { %v387_v52 = vadd.f32 1.0, %v1940_v51 }
 0x754   :  { %1941 = vrcp.f32 %v387_v52  ;;  %v399_v58 = vand.u32 2147483648, %v387_v52  ;;  %vm393_vm15 = vweird.f32 %v387_v52  ;;  %v397_v59 = vand.u32 2147483647, %v387_v52 }
 0x756   :  { %v400_v61 = vor.u32 1.1754944e-38, %v399_v58  ;;  %vm398_vm3 = vcmp.eq.f32.partialorder %v397_v59, 8.507059e+37 }
 0x75a   :  { %v1942_v53 = vpop.eup %1941 }
 0x75b   :  { %v389_v54 = vmul.f32 %v1942_v53, %v387_v52  ;;  %vm394_vm14 = vweird.f32 %v1942_v53 }
 0x75c   :  { %vm395_vm2 = vmor %vm393_vm15, %vm394_vm14 }
 0x75d   :  { %v390_v55 = vsub.f32 1.0, %v389_v54 }
 0x75f   :  { %v391_v56 = vmul.f32 %v1942_v53, %v390_v55 }
 0x761   :  { %v392_v57 = vadd.f32 %v1942_v53, %v391_v56 }
 0x763   :  { %v396_v60 = vsel %vm395_vm2, %v1942_v53, %v392_v57 }
 0x764   :  { %v401_v63 = vsel %vm398_vm3, %v400_v61, %v396_v60 }
 0x765   :  { %v414_v5 = vsub.f32 1.0, %v401_v63  ;;  %v420_v7 = vmul.f32 %v401_v63, %v355_v42 }
 0x7b9   :  { %v405_v62 = vpop.permute.xlu0 %404 }
 0x7ba   :  { %v407_v0 = vmul.f32 %v405_v62, %v401_v63 }
 0x7bc   :  { %409 = vrot.lane.b32.xlu1 %v407_v0, %s2054_s28 }
 0x82e   :  { %v410_v1 = vpop.permute.xlu1 %409 }
 0x82f   :  { %v412_v2 = vadd.f32 %v410_v1, %v357_v48 }
 0x831   :  { %1943 = vtanh.f32 %v412_v2 }
 0x837   :  { %v1944_v3 = vpop.eup %1943 }
 0x838   :  { %416 = vrot.lane.b32.xlu2 %v1944_v3, %s2055_s5 }
 0x892   :  { %v417_v6 = vpop.permute.xlu2 %416 }
 0x893   :  { %v419_v8 = vmul.f32 %v417_v6, %v414_v5  ;;  %v78_v5 = vld [vmem:[%s2773_s0 + $0x30] sm:$0xff] }
 0x894   :  { %1862 = vmatmul.msk.f32.gmra.mxu0 %vm83_vm0, %v78_v5  ;;  %v60_v5 = vld [vmem:[%s2776_s8 + $0x10] sm:$0xff] }
 0x895   :  { %v421_v12 = vadd.f32 %v420_v7, %v419_v8 }
 0x897   :  { %425 = vrot.lane.b32.xlu0 %v421_v12, %s2055_s5 }
 0x909   :  { %v426_v15 = vpop.permute.xlu0 %425 }
 0x90a   :  { %1871 = vmatmul.msk.f32.vlgmr.msrb.gmra.mxu2 %vm83_vm0, %v426_v15 }
 0x911   :  { %v143_v15 = vpop.f32.mrf.mxu0 }
 0x98d   :  { %v446_v16 = vpop.f32.mrf.mxu2 }
 0x98e   :  { %v447_v17 = vadd.f32 %v2199_v11, %v446_v16  ;;  %v144_v16 = vadd.f32 %v2194_v10, %v143_v15 }
 0x990   :  { %470 = vrot.lane.b32.xlu1 %v447_v17, %s2054_s28  ;;  %v449_v19 = vadd.f32 %v447_v17, %v423_v18  ;;  %156 = vst.msk [vmem:[#allocation2 + $0x30] sm:$0xff] %vm149_vm1, %v144_v16 }
 0x992   :  { %v1872_v20 = vmul.f32 -1.442695, %v449_v19 }
 0x994   :  { %1945 = vpow2.f32 %v1872_v20 }
 0x997   :  { %v555_v19 = vld [vmem:[#allocation2 + $0x30] sm:$0xff] }
 0x99a   :  { %v1946_v21 = vpop.eup %1945 }
 0x99b   :  { %v453_v22 = vadd.f32 1.0, %v1946_v21 }
 0x99d   :  { %1947 = vrcp.f32 %v453_v22  ;;  %v465_v28 = vand.u32 2147483648, %v453_v22  ;;  %vm459_vm5 = vweird.f32 %v453_v22  ;;  %v463_v29 = vand.u32 2147483647, %v453_v22 }
 0x99f   :  { %v466_v31 = vor.u32 1.1754944e-38, %v465_v28  ;;  %vm464_vm7 = vcmp.eq.f32.partialorder %v463_v29, 8.507059e+37 }
 0x9a3   :  { %v1948_v23 = vpop.eup %1947 }
 0x9a4   :  { %v455_v24 = vmul.f32 %v1948_v23, %v453_v22  ;;  %vm460_vm4 = vweird.f32 %v1948_v23 }
 0x9a5   :  { %vm461_vm6 = vmor %vm459_vm5, %vm460_vm4 }
 0x9a6   :  { %v456_v25 = vsub.f32 1.0, %v455_v24 }
 0x9a8   :  { %v457_v26 = vmul.f32 %v1948_v23, %v456_v25 }
 0x9aa   :  { %v458_v27 = vadd.f32 %v1948_v23, %v457_v26 }
 0x9ac   :  { %v462_v30 = vsel %vm461_vm6, %v1948_v23, %v458_v27 }
 0x9ad   :  { %v467_v33 = vsel %vm464_vm7, %v466_v31, %v462_v30 }
 0x9ae   :  { %v480_v39 = vsub.f32 1.0, %v467_v33  ;;  %v486_v41 = vmul.f32 %v467_v33, %v421_v12 }
 0xa02   :  { %v471_v32 = vpop.permute.xlu1 %470 }
 0xa03   :  { %v473_v34 = vmul.f32 %v471_v32, %v467_v33 }
 0xa05   :  { %475 = vrot.lane.b32.xlu2 %v473_v34, %s2054_s28 }
 0xa5f   :  { %v476_v35 = vpop.permute.xlu2 %475 }
 0xa60   :  { %v478_v36 = vadd.f32 %v476_v35, %v423_v18 }
 0xa62   :  { %1949 = vtanh.f32 %v478_v36 }
 0xa68   :  { %v1950_v37 = vpop.eup %1949 }
 0xa69   :  { %482 = vrot.lane.b32.xlu0 %v1950_v37, %s2055_s5 }
 0xadb   :  { %v483_v40 = vpop.permute.xlu0 %482 }
 0xadc   :  { %v485_v42 = vmul.f32 %v483_v40, %v480_v39  ;;  %v79_v39 = vld [vmem:[%s2773_s0 + $0x38] sm:$0xff] }
 0xadd   :  { %1863 = vmatmul.msk.f32.gmra.mxu0 %vm83_vm0, %v79_v39 }
 0xade   :  { %v487_v43 = vadd.f32 %v486_v41, %v485_v42 }
 0xae0   :  { %491 = vrot.lane.b32.xlu1 %v487_v43, %s2055_s5 }
 0xb52   :  { %v492_v46 = vpop.permute.xlu1 %491 }
 0xb53   :  { %1873 = vmatmul.msk.f32.vlgmr.msrb.gmra.mxu3 %vm83_vm0, %v492_v46 }
 0xb5a   :  { %v146_v45 = vpop.f32.mrf.mxu0 }
 0xb5b   :  { %v147_v46 = vadd.f32 %v2194_v10, %v146_v45 }
 0xb5d   :  { %157 = vst.msk [vmem:[#allocation2 + $0x38] sm:$0xff] %vm149_vm1, %v147_v46  ;;  %v2363_v46 = vld [vmem:[%s2781_s11 + $0x18] sm:$0xff] }
 0xb5e   :  { %806 = vmatpush.msrb.mxu2 %v2363_v46  ;;  %1786 = vmatpush.msrb.mxu0 %v2363_v46 }
 0xbd6   :  { %v512_v47 = vpop.f32.mrf.mxu3 }
 0xbd7   :  { %v513_v48 = vadd.f32 %v2199_v11, %v512_v47 }
 0xbd9   :  { %536 = vrot.lane.b32.xlu2 %v513_v48, %s2054_s28  ;;  %v515_v50 = vadd.f32 %v513_v48, %v489_v49 }
 0xbdb   :  { %v1874_v51 = vmul.f32 -1.442695, %v515_v50  ;;  %v621_v50 = vld [vmem:[#allocation2 + $0x38] sm:$0xff] }
 0xbdd   :  { %1951 = vpow2.f32 %v1874_v51 }
 0xbe3   :  { %v1952_v52 = vpop.eup %1951 }
 0xbe4   :  { %v519_v53 = vadd.f32 1.0, %v1952_v52 }
 0xbe6   :  { %1953 = vrcp.f32 %v519_v53  ;;  %v531_v59 = vand.u32 2147483648, %v519_v53  ;;  %vm525_vm9 = vweird.f32 %v519_v53  ;;  %v529_v60 = vand.u32 2147483647, %v519_v53 }
 0xbe8   :  { %v532_v62 = vor.u32 1.1754944e-38, %v531_v59  ;;  %vm530_vm11 = vcmp.eq.f32.partialorder %v529_v60, 8.507059e+37 }
 0xbec   :  { %v1954_v54 = vpop.eup %1953 }
 0xbed   :  { %v521_v55 = vmul.f32 %v1954_v54, %v519_v53  ;;  %vm526_vm8 = vweird.f32 %v1954_v54 }
 0xbee   :  { %vm527_vm10 = vmor %vm525_vm9, %vm526_vm8 }
 0xbef   :  { %v522_v56 = vsub.f32 1.0, %v521_v55 }
 0xbf1   :  { %v523_v57 = vmul.f32 %v1954_v54, %v522_v56 }
 0xbf3   :  { %v524_v58 = vadd.f32 %v1954_v54, %v523_v57 }
 0xbf5   :  { %v528_v61 = vsel %vm527_vm10, %v1954_v54, %v524_v58  ;;  %vm816_vm10 = vcmask 64512  }
 0xbf6   :  { %v533_v0 = vsel %vm530_vm11, %v532_v62, %v528_v61 }
 0xbf7   :  { %v546_v6 = vsub.f32 1.0, %v533_v0  ;;  %v552_v8 = vmul.f32 %v533_v0, %v487_v43 }
 0xc33   :  { %v537_v63 = vpop.permute.xlu2 %536 }
 0xc34   :  { %v539_v1 = vmul.f32 %v537_v63, %v533_v0 }
 0xc36   :  { %541 = vrot.lane.b32.xlu0 %v539_v1, %s2054_s28 }
 0xca8   :  { %v542_v2 = vpop.permute.xlu0 %541 }
 0xca9   :  { %v544_v3 = vadd.f32 %v542_v2, %v489_v49 }
 0xcab   :  { %1955 = vtanh.f32 %v544_v3 }
 0xcb1   :  { %v1956_v4 = vpop.eup %1955 }
 0xcb2   :  { %548 = vrot.lane.b32.xlu1 %v1956_v4, %s2055_s5  ;;  %v61_v4 = vld [vmem:[%s2776_s8 + $0x18] sm:$0xff] }
 0xcb3   :  { %706 = vmatpush.msra.mxu3 %v61_v4 }
 0xcb5   :  { %707 = vmatpush.msra.mxu3 %v60_v5 }
 0xd24   :  { %v549_v7 = vpop.permute.xlu1 %548 }
 0xd25   :  { %v551_v12 = vmul.f32 %v549_v7, %v546_v6  ;;  %v2304_v6 = vld [vmem:[%s2777_s7 + $0x18] sm:$0xff]  ;;  %v59_v7 = vld [vmem:[%s2776_s8 + $0x8] sm:$0xff] }
 0xd26   :  { %738 = vmatpush.msrb.mxu1 %v2304_v6  ;;  %708 = vmatpush.msra.mxu3 %v59_v7 }
 0xd27   :  { %v553_v13 = vadd.f32 %v552_v8, %v551_v12  ;;  %v58_v8 = vld [vmem:[%s2776_s8] sm:$0xff] }
 0xd28   :  { %709 = vmatpush.msra.mxu3 %v58_v8 }
 0xd29   :  { %557 = vrot.lane.b32.xlu2 %v553_v13, %s2055_s5 }
 0xd2a   :  { %885 = vmatpush.msrb.mxu3 %v2304_v6 }
 0xd83   :  { %v558_v14 = vpop.permute.xlu2 %557 }
 0xd84   :  { %1875 = vmatmul.msk.f32.vlgmr.msra.gmra.mxu1 %vm83_vm0, %v558_v14 }
 0xe01   :  { %v578_v17 = vpop.f32.mrf.mxu1 }
 0xe02   :  { %v579_v18 = vadd.f32 %v2199_v11, %v578_v17  ;;  %v2321_v17 = vld [vmem:[%s2777_s7 + $0x10] sm:$0xff] }
 0xe03   :  { %739 = vmatpush.msrb.mxu1 %v2321_v17  ;;  %886 = vmatpush.msrb.mxu3 %v2321_v17 }
 0xe04   :  { %602 = vrot.lane.b32.xlu0 %v579_v18, %s2054_s28  ;;  %v581_v20 = vadd.f32 %v579_v18, %v555_v19  ;;  %v2326_v18 = vld [vmem:[%s2777_s7 + $0x8] sm:$0xff] }
 0xe05   :  { %740 = vmatpush.msrb.mxu1 %v2326_v18  ;;  %887 = vmatpush.msrb.mxu3 %v2326_v18 }
 0xe06   :  { %v1876_v21 = vmul.f32 -1.442695, %v581_v20 }
 0xe08   :  { %1957 = vpow2.f32 %v1876_v21  ;;  %v1918_v21 = vld [vmem:[%s2778_s10] ss:$0 sm:$0xff] }
 0xe0e   :  { %v1958_v22 = vpop.eup %1957 }
 0xe0f   :  { %v585_v23 = vadd.f32 1.0, %v1958_v22 }
 0xe11   :  { %1959 = vrcp.f32 %v585_v23  ;;  %v597_v29 = vand.u32 2147483648, %v585_v23  ;;  %vm591_vm13 = vweird.f32 %v585_v23  ;;  %v595_v30 = vand.u32 2147483647, %v585_v23 }
 0xe13   :  { %v598_v32 = vor.u32 1.1754944e-38, %v597_v29  ;;  %vm596_vm15 = vcmp.eq.f32.partialorder %v595_v30, 8.507059e+37 }
 0xe17   :  { %v1960_v24 = vpop.eup %1959 }
 0xe18   :  { %v587_v25 = vmul.f32 %v1960_v24, %v585_v23  ;;  %vm592_vm12 = vweird.f32 %v1960_v24 }
 0xe19   :  { %vm593_vm14 = vmor %vm591_vm13, %vm592_vm12 }
 0xe1a   :  { %v588_v26 = vsub.f32 1.0, %v587_v25 }
 0xe1c   :  { %v589_v27 = vmul.f32 %v1960_v24, %v588_v26 }
 0xe1e   :  { %v590_v28 = vadd.f32 %v1960_v24, %v589_v27 }
 0xe20   :  { %v594_v31 = vsel %vm593_vm14, %v1960_v24, %v590_v28  ;;  %v2351_v24 = vld [vmem:[%s2779_s9] ss:$0 sm:$0xff] }
 0xe21   :  { %v599_v34 = vsel %vm596_vm15, %v598_v32, %v594_v31 }
 0xe22   :  { %v612_v40 = vsub.f32 1.0, %v599_v34  ;;  %v618_v42 = vmul.f32 %v599_v34, %v553_v13 }
 0xe76   :  { %v603_v33 = vpop.permute.xlu0 %602 }
 0xe77   :  { %v605_v35 = vmul.f32 %v603_v33, %v599_v34 }
 0xe79   :  { %607 = vrot.lane.b32.xlu1 %v605_v35, %s2054_s28 }
 0xeeb   :  { %v608_v36 = vpop.permute.xlu1 %607 }
 0xeec   :  { %v610_v37 = vadd.f32 %v608_v36, %v555_v19  ;;  %v2333_v19 = vld [vmem:[%s2777_s7] sm:$0xff] }
 0xeed   :  { %741 = vmatpush.msrb.mxu1 %v2333_v19  ;;  %888 = vmatpush.msrb.mxu3 %v2333_v19 }
 0xeee   :  { %1961 = vtanh.f32 %v610_v37  ;;  %742 = vmatmul.f32.vlgmr.msrb.gmra.mxu1 %v2053_v9 }
 0xeef   :  { %946 = vmatpush.msra.mxu1 %v2363_v46 }
 0xef4   :  { %v1962_v38 = vpop.eup %1961 }
 0xef5   :  { %614 = vrot.lane.b32.xlu2 %v1962_v38, %s2055_s5 }
 0xf4f   :  { %v615_v41 = vpop.permute.xlu2 %614 }
 0xf50   :  { %v617_v43 = vmul.f32 %v615_v41, %v612_v40 }
 0xf52   :  { %v619_v44 = vadd.f32 %v618_v42, %v617_v43 }
 0xf54   :  { %623 = vrot.lane.b32.xlu0 %v619_v44, %s2055_s5 }
 0xf6b   :  { %v743_v25 = vpop.f32.mrf.mxu1 }
 0xf6c   :  { %v744_v26 = vadd.f32 %v2351_v24, %v743_v25 }
 0xfc6   :  { %v624_v47 = vpop.permute.xlu0 %623 }
 0xfc7   :  { %1877 = vmatmul.msk.f32.vlgmr.msra.gmra.mxu2 %vm83_vm0, %v624_v47  ;;  %v2368_v47 = vld [vmem:[%s2781_s11 + $0x10] sm:$0xff] }
 0xfc8   :  { %807 = vmatpush.msrb.mxu2 %v2368_v47  ;;  %947 = vmatpush.msra.mxu1 %v2368_v47 }
 0xfc9   :  { %1787 = vmatpush.msrb.mxu0 %v2368_v47 }
0x104a   :  { %v644_v48 = vpop.f32.mrf.mxu2 }
0x104b   :  { %v645_v49 = vadd.f32 %v2199_v11, %v644_v48  ;;  %v2375_v48 = vld [vmem:[%s2781_s11 + $0x8] sm:$0xff] }
0x104c   :  { %808 = vmatpush.msrb.mxu2 %v2375_v48  ;;  %948 = vmatpush.msra.mxu1 %v2375_v48 }
0x104d   :  { %668 = vrot.lane.b32.xlu1 %v645_v49, %s2054_s28  ;;  %v647_v51 = vadd.f32 %v645_v49, %v621_v50  ;;  %v2384_v49 = vld [vmem:[%s2781_s11] sm:$0xff]  ;;  %1788 = vmatpush.msrb.mxu0 %v2375_v48 }
0x104e   :  { %809 = vmatpush.msrb.mxu2 %v2384_v49  ;;  %949 = vmatpush.msra.mxu1 %v2384_v49 }
0x104f   :  { %v1878_v52 = vmul.f32 -1.442695, %v647_v51  ;;  %1789 = vmatpush.msrb.mxu0 %v2384_v49 }
0x1050   :  { %1025 = vmatpush.msra.mxu2 %v2304_v6  ;;  %1165 = vmatpush.msrb.mxu1 %v2304_v6 }
0x1051   :  { %1963 = vpow2.f32 %v1878_v52 }
0x1052   :  { %1026 = vmatpush.msra.mxu2 %v2321_v17  ;;  %1166 = vmatpush.msrb.mxu1 %v2321_v17 }
0x1054   :  { %1027 = vmatpush.msra.mxu2 %v2326_v18  ;;  %1167 = vmatpush.msrb.mxu1 %v2326_v18 }
0x1056   :  { %1028 = vmatpush.msra.mxu2 %v2333_v19  ;;  %1168 = vmatpush.msrb.mxu1 %v2333_v19 }
0x1057   :  { %v1964_v53 = vpop.eup %1963 }
0x1058   :  { %v651_v54 = vadd.f32 1.0, %v1964_v53 }
0x105a   :  { %1965 = vrcp.f32 %v651_v54  ;;  %v663_v59 = vand.u32 2147483648, %v651_v54  ;;  %vm657_vm2 = vweird.f32 %v651_v54  ;;  %v661_v60 = vand.u32 2147483647, %v651_v54 }
0x105c   :  { %v664_v61 = vor.u32 1.1754944e-38, %v663_v59  ;;  %vm662_vm4 = vcmp.eq.f32.partialorder %v661_v60, 8.507059e+37 }
0x1060   :  { %v1966_v55 = vpop.eup %1965 }
0x1061   :  { %v653_v56 = vmul.f32 %v1966_v55, %v651_v54  ;;  %vm658_vm1 = vweird.f32 %v1966_v55 }
0x1062   :  { %vm659_vm3 = vmor %vm657_vm2, %vm658_vm1 }
0x1063   :  { %v654_v10 = vsub.f32 1.0, %v653_v56 }
0x1065   :  { %v655_v57 = vmul.f32 %v1966_v55, %v654_v10  ;;  %v2414_v10 = vld [vmem:[%s2780_s12] ss:$0 sm:$0xff] }
0x1067   :  { %v656_v58 = vadd.f32 %v1966_v55, %v655_v57  ;;  %v2419_v57 = vld [vmem:[%s2782_s2] sm:$0xff] }
0x1068   :  { %vm814_vm9 = vcmp.ne.f32.partialorder %v2419_v57, 0.0 }
0x1069   :  { %v660_v11 = vsel %vm659_vm3, %v1966_v55, %v656_v58 }
0x106a   :  { %v665_v63 = vsel %vm662_vm4, %v664_v61, %v660_v11  ;;  %v714_v61 = vlaneseq }
0x106b   :  { %v678_v12 = vsub.f32 1.0, %v665_v63  ;;  %v684_v14 = vmul.f32 %v665_v63, %v619_v44 }
0x10bf   :  { %v669_v62 = vpop.permute.xlu1 %668 }
0x10c0   :  { %v671_v0 = vmul.f32 %v669_v62, %v665_v63  ;;  %v2424_v62 = vand.u32 127, %v714_v61 }
0x10c2   :  { %673 = vrot.lane.b32.xlu2 %v671_v0, %s2054_s28  ;;  %vm719_vm14 = vcmp.eq.s32.totalorder %v2424_v62, 1  ;;  %vm716_vm15 = vcmp.eq.s32.totalorder %v2424_v62, 0 }
0x111c   :  { %v674_v1 = vpop.permute.xlu2 %673 }
0x111d   :  { %v676_v2 = vadd.f32 %v674_v1, %v621_v50 }
0x111f   :  { %1967 = vtanh.f32 %v676_v2 }
0x1125   :  { %v1968_v3 = vpop.eup %1967 }
0x1126   :  { %680 = vrot.lane.b32.xlu0 %v1968_v3, %s2055_s5 }
0x1198   :  { %v681_v13 = vpop.permute.xlu0 %680 }
0x1199   :  { %v683_v15 = vmul.f32 %v681_v13, %v678_v12 }
0x119b   :  { %v2314_v16 = vadd.f32 %v684_v14, %v683_v15 }
0x119d   :  { %690 = vrot.lane.b32.xlu1 %v2314_v16, %s2055_s5 }
0x120f   :  { %v691_v20 = vpop.permute.xlu1 %690 }
0x1210   :  { %1879 = vmatmul.msk.f32.vlgmr.msra.gmra.mxu3 %vm83_vm0, %v691_v20 }
0x1211   :  { %1086 = vmatpush.msra.mxu3 %v2363_v46 }
0x1213   :  { %1087 = vmatpush.msra.mxu3 %v2368_v47 }
0x1215   :  { %1088 = vmatpush.msra.mxu3 %v2375_v48 }
0x1217   :  { %1089 = vmatpush.msra.mxu3 %v2384_v49 }
0x1293   :  { %v711_v22 = vpop.f32.mrf.mxu3 }
0x1294   :  { %v2344_v23 = vadd.f32 %v1918_v21, %v711_v22  ;;  %v2431_v21 = vld [vmem:[%s2783_s1 + $0x8] sm:$0xff]  ;;  %v2436_v22 = vld [vmem:[%s2783_s1] sm:$0xff] }
0x1296   :  { %767 = vrot.lane.b32.xlu2 %v2344_v23, %s2054_s28  ;;  %v746_v27 = vadd.f32 %v744_v26, %v2344_v23 }
0x1298   :  { %v1882_v28 = vmul.f32 -1.442695, %v746_v27 }
0x129a   :  { %1969 = vpow2.f32 %v1882_v28 }
0x12a0   :  { %v1970_v29 = vpop.eup %1969 }
0x12a1   :  { %v750_v30 = vadd.f32 1.0, %v1970_v29 }
0x12a3   :  { %1971 = vrcp.f32 %v750_v30  ;;  %v762_v36 = vand.u32 2147483648, %v750_v30  ;;  %vm756_vm6 = vweird.f32 %v750_v30  ;;  %v760_v37 = vand.u32 2147483647, %v750_v30 }
0x12a5   :  { %v763_v39 = vor.u32 1.1754944e-38, %v762_v36  ;;  %vm761_vm8 = vcmp.eq.f32.partialorder %v760_v37, 8.507059e+37 }
0x12a9   :  { %v1972_v31 = vpop.eup %1971 }
0x12aa   :  { %v752_v32 = vmul.f32 %v1972_v31, %v750_v30  ;;  %vm757_vm5 = vweird.f32 %v1972_v31  ;;  %v2451_v30 = vsel %vm719_vm14, 1.0, %v2053_v9 }
0x12ab   :  { %vm758_vm7 = vmor %vm756_vm6, %vm757_vm5 }
0x12ac   :  { %v753_v33 = vsub.f32 1.0, %v752_v32 }
0x12ae   :  { %v754_v34 = vmul.f32 %v1972_v31, %v753_v33 }
0x12b0   :  { %v755_v35 = vadd.f32 %v1972_v31, %v754_v34 }
0x12b2   :  { %v759_v38 = vsel %vm758_vm7, %v1972_v31, %v755_v35  ;;  %v2454_v31 = vsel %vm716_vm15, 1.0, %v2053_v9 }
0x12b3   :  { %v764_v41 = vsel %vm761_vm8, %v763_v39, %v759_v38 }
0x12b4   :  { %v777_v50 = vsub.f32 1.0, %v764_v41  ;;  %v783_v52 = vmul.f32 %v764_v41, %v2314_v16 }
0x12f0   :  { %v2355_v40 = vpop.permute.xlu2 %767 }
0x12f1   :  { %v770_v42 = vmul.f32 %v2355_v40, %v764_v41 }
0x12f3   :  { %772 = vrot.lane.b32.xlu0 %v770_v42, %s2054_s28 }
0x1365   :  { %v773_v43 = vpop.permute.xlu0 %772 }
0x1366   :  { %v775_v44 = vadd.f32 %v773_v43, %v744_v26 }
0x1368   :  { %1973 = vtanh.f32 %v775_v44 }
0x136e   :  { %v1974_v45 = vpop.eup %1973 }
0x136f   :  { %779 = vrot.lane.b32.xlu1 %v1974_v45, %s2055_s5 }
0x13e1   :  { %v780_v51 = vpop.permute.xlu1 %779 }
0x13e2   :  { %v782_v53 = vmul.f32 %v780_v51, %v777_v50 }
0x13e4   :  { %v784_v54 = vadd.f32 %v783_v52, %v782_v53 }
0x13e6   :  { %1975 = vtanh.f32 %v784_v54 }
0x13ec   :  { %v1976_v55 = vpop.eup %1975 }
0x13ed   :  { %790 = vrot.lane.b32.xlu2 %v1976_v55, %s2055_s5 }
0x1447   :  { %v791_v56 = vpop.permute.xlu2 %790 }
0x1448   :  { %1883 = vmatmul.msk.f32.vlgmr.msrb.gmra.mxu2 %vm83_vm0, %v791_v56 }
0x1449   :  { %1226 = vmatpush.msrb.mxu2 %v2363_v46 }
0x144b   :  { %1227 = vmatpush.msrb.mxu2 %v2368_v47 }
0x144d   :  { %1228 = vmatpush.msrb.mxu2 %v2375_v48 }
0x144f   :  { %1229 = vmatpush.msrb.mxu2 %v2384_v49 }
0x14cb   :  { %v811_v58 = vpop.f32.mrf.mxu2 }
0x14cc   :  { %v812_v59 = vadd.f32 %v2414_v10, %v811_v58 }
0x14ce   :  { %v815_v60 = vsel %vm814_vm9, -inf, %v812_v59 }
0x14cf   :  { %v817_v11 = vsel %vm816_vm10, %v815_v60, -inf }
0x14d0   :  { %818 = vmax.xlane.f32.xlu0 %v817_v11 }
0x1543   :  { %v819_v63 = vpop.xlane.xlu0 %818 }
0x1544   :  { %vm820_vm11 = vcmp.eq.f32.partialorder %v815_v60, %v819_v63 }
0x1545   :  { %v821_v0 = vsel %vm820_vm11, %v2424_v62, 1073741824 }
0x1546   :  { %v822_v1 = vsel %vm816_vm10, %v821_v0, 2147483647 }
0x1547   :  { %v824_v2 = vshra.s32 %v822_v1, 16  ;;  %v823_v4 = vand.u32 65535, %v822_v1 }
0x1549   :  { %v826_v3 = vcvt.s32.f32 %v824_v2  ;;  %v825_v7 = vcvt.s32.f32 %v823_v4 }
0x154b   :  { %827 = vmin.xlane.f32.xlu1 %v826_v3 }
0x15be   :  { %v828_v5 = vpop.xlane.xlu1 %827 }
0x15bf   :  { %vm829_vm12 = vcmp.eq.f32.partialorder %v826_v3, %v828_v5  ;;  %v834_v12 = vcvt.f32.s32 %v828_v5 }
0x15c0   :  { %v830_v8 = vsel %vm829_vm12, %v825_v7, inf }
0x15c1   :  { %831 = vmin.xlane.f32.xlu2 %v830_v8  ;;  %v835_v14 = vshll.u32 %v834_v12, 16 }
0x1634   :  { %v832_v13 = vpop.xlane.xlu2 %831 }
0x1635   :  { %v833_v15 = vcvt.f32.s32 %v832_v13 }
0x1637   :  { %v836_v20 = vadd.s32 %v835_v14, %v833_v15 }
0x1639   :  { %vm837_vm13 = vcmp.eq.s32.totalorder %v2424_v62, %v836_v20 }
0x163a   :  { %v2440_v25 = vsel %vm837_vm13, 1.0, %v2053_v9 }
0x163b   :  { %v846_v26 = vmul.f32 %v2440_v25, %v2431_v21  ;;  %v840_v27 = vmul.f32 %v2440_v25, %v2436_v22  ;;  %v2480_v7 = vmax.f32 %v2419_v57, %v2440_v25 }
0x163d   :  { %v847_v28 = vsel %vm816_vm10, %v846_v26, 0.0  ;;  %v841_v29 = vsel %vm816_vm10, %v840_v27, 0.0  ;;  %vm954_vm5 = vcmp.ne.f32.partialorder %v2480_v7, 0.0 }
0x163e   :  { %848 = vadd.xlane.f32.xlu0 %v847_v28  ;;  %842 = vadd.xlane.f32.xlu2 %v841_v29 }
0x16b1   :  { %v849_v32 = vpop.xlane.xlu0 %848  ;;  %v843_v33 = vpop.xlane.xlu2 %842 }
0x16b2   :  { %v850_v34 = vmul.f32 %v2451_v30, %v849_v32  ;;  %v844_v35 = vmul.f32 %v2454_v31, %v843_v33 }
0x16b4   :  { %v2458_v36 = vadd.f32 %v850_v34, %v844_v35 }
0x16b6   :  { %1885 = vmatmul.msk.f32.vlgmr.msrb.gmra.mxu3 %vm83_vm0, %v2458_v36 }
0x16b7   :  { %1305 = vmatpush.msrb.mxu3 %v2304_v6 }
0x16b9   :  { %1306 = vmatpush.msrb.mxu3 %v2321_v17 }
0x16bb   :  { %1307 = vmatpush.msrb.mxu3 %v2326_v18 }
0x16bd   :  { %1308 = vmatpush.msrb.mxu3 %v2333_v19 }
0x1739   :  { %v890_v37 = vpop.f32.mrf.mxu3 }
0x173a   :  { %v891_v38 = vadd.f32 %v2351_v24, %v890_v37 }
0x173c   :  { %v893_v39 = vadd.f32 %v891_v38, %v2344_v23 }
0x173e   :  { %v1886_v41 = vmul.f32 -1.442695, %v893_v39 }
0x1740   :  { %1977 = vpow2.f32 %v1886_v41 }
0x1746   :  { %v1978_v42 = vpop.eup %1977 }
0x1747   :  { %v897_v43 = vadd.f32 1.0, %v1978_v42 }
0x1749   :  { %1979 = vrcp.f32 %v897_v43  ;;  %v909_v51 = vand.u32 2147483648, %v897_v43  ;;  %v907_v53 = vand.u32 2147483647, %v897_v43  ;;  %vm903_vm2 = vweird.f32 %v897_v43 }
0x174b   :  { %v910_v55 = vor.u32 1.1754944e-38, %v909_v51  ;;  %vm908_vm4 = vcmp.eq.f32.partialorder %v907_v53, 8.507059e+37 }
0x174f   :  { %v1980_v44 = vpop.eup %1979 }
0x1750   :  { %v899_v45 = vmul.f32 %v1980_v44, %v897_v43  ;;  %vm904_vm1 = vweird.f32 %v1980_v44 }
0x1751   :  { %vm905_vm3 = vmor %vm903_vm2, %vm904_vm1 }
0x1752   :  { %v900_v50 = vsub.f32 1.0, %v899_v45 }
0x1754   :  { %v901_v52 = vmul.f32 %v1980_v44, %v900_v50 }
0x1756   :  { %v902_v54 = vadd.f32 %v1980_v44, %v901_v52 }
0x1758   :  { %v906_v56 = vsel %vm905_vm3, %v1980_v44, %v902_v54 }
0x1759   :  { %v911_v58 = vsel %vm908_vm4, %v910_v55, %v906_v56 }
0x175a   :  { %v913_v59 = vmul.f32 %v911_v58, %v2355_v40  ;;  %v920_v63 = vsub.f32 1.0, %v911_v58  ;;  %v926_v1 = vmul.f32 %v911_v58, %v2314_v16 }
0x175c   :  { %915 = vrot.lane.b32.xlu1 %v913_v59, %s2054_s28 }
0x17ce   :  { %v916_v60 = vpop.permute.xlu1 %915 }
0x17cf   :  { %v918_v11 = vadd.f32 %v916_v60, %v891_v38 }
0x17d1   :  { %1981 = vtanh.f32 %v918_v11 }
0x17d7   :  { %v1982_v61 = vpop.eup %1981 }
0x17d8   :  { %922 = vrot.lane.b32.xlu2 %v1982_v61, %s2055_s5 }
0x1832   :  { %v923_v0 = vpop.permute.xlu2 %922 }
0x1833   :  { %v925_v2 = vmul.f32 %v923_v0, %v920_v63 }
0x1835   :  { %v927_v3 = vadd.f32 %v926_v1, %v925_v2 }
0x1837   :  { %1983 = vtanh.f32 %v927_v3 }
0x183d   :  { %v1984_v4 = vpop.eup %1983 }
0x183e   :  { %930 = vrot.lane.b32.xlu0 %v1984_v4, %s2055_s5 }
0x18b0   :  { %v931_v5 = vpop.permute.xlu0 %930 }
0x18b1   :  { %1887 = vmatmul.msk.f32.vlgmr.msra.gmra.mxu1 %vm83_vm0, %v931_v5 }
0x18b2   :  { %1366 = vmatpush.msra.mxu1 %v2363_v46 }
0x18b4   :  { %1367 = vmatpush.msra.mxu1 %v2368_v47 }
0x18b6   :  { %1368 = vmatpush.msra.mxu1 %v2375_v48 }
0x18b8   :  { %1369 = vmatpush.msra.mxu1 %v2384_v49 }
0x192e   :  { %v951_v8 = vpop.f32.mrf.mxu1 }
0x192f   :  { %v952_v12 = vadd.f32 %v2414_v10, %v951_v8 }
0x1931   :  { %v955_v13 = vsel %vm954_vm5, -inf, %v952_v12 }
0x1932   :  { %v956_v14 = vsel %vm816_vm10, %v955_v13, -inf }
0x1933   :  { %957 = vmax.xlane.f32.xlu1 %v956_v14 }
0x19a6   :  { %v958_v15 = vpop.xlane.xlu1 %957 }
0x19a7   :  { %vm959_vm6 = vcmp.eq.f32.partialorder %v955_v13, %v958_v15 }
0x19a8   :  { %v960_v20 = vsel %vm959_vm6, %v2424_v62, 1073741824 }
0x19a9   :  { %v961_v26 = vsel %vm816_vm10, %v960_v20, 2147483647 }
0x19aa   :  { %v963_v27 = vshra.s32 %v961_v26, 16  ;;  %v962_v57 = vand.u32 65535, %v961_v26 }
0x19ac   :  { %v965_v28 = vcvt.s32.f32 %v963_v27  ;;  %v964_v29 = vcvt.s32.f32 %v962_v57 }
0x19ae   :  { %966 = vmin.xlane.f32.xlu0 %v965_v28 }
0x1a21   :  { %v967_v25 = vpop.xlane.xlu0 %966 }
0x1a22   :  { %vm968_vm7 = vcmp.eq.f32.partialorder %v965_v28, %v967_v25  ;;  %v973_v33 = vcvt.f32.s32 %v967_v25 }
0x1a23   :  { %v969_v32 = vsel %vm968_vm7, %v964_v29, inf }
0x1a24   :  { %970 = vmin.xlane.f32.xlu2 %v969_v32  ;;  %v974_v35 = vshll.u32 %v973_v33, 16 }
0x1a97   :  { %v971_v34 = vpop.xlane.xlu2 %970 }
0x1a98   :  { %v972_v37 = vcvt.f32.s32 %v971_v34 }
0x1a9a   :  { %v975_v38 = vadd.s32 %v974_v35, %v972_v37 }
0x1a9c   :  { %vm976_vm8 = vcmp.eq.s32.totalorder %v2424_v62, %v975_v38 }
0x1a9d   :  { %v1888_v39 = vsel %vm976_vm8, 1.0, %v2053_v9 }
0x1a9e   :  { %v985_v41 = vmul.f32 %v1888_v39, %v2431_v21  ;;  %v979_v42 = vmul.f32 %v1888_v39, %v2436_v22  ;;  %v2516_v32 = vmax.f32 %v2480_v7, %v1888_v39 }
0x1aa0   :  { %v986_v43 = vsel %vm816_vm10, %v985_v41, 0.0  ;;  %v980_v44 = vsel %vm816_vm10, %v979_v42, 0.0  ;;  %vm1094_vm14 = vcmp.ne.f32.partialorder %v2516_v32, 0.0 }
0x1aa1   :  { %987 = vadd.xlane.f32.xlu0 %v986_v43  ;;  %981 = vadd.xlane.f32.xlu1 %v980_v44 }
0x1b14   :  { %v988_v45 = vpop.xlane.xlu0 %987  ;;  %v982_v50 = vpop.xlane.xlu1 %981 }
0x1b15   :  { %v989_v51 = vmul.f32 %v2451_v30, %v988_v45  ;;  %v983_v52 = vmul.f32 %v2454_v31, %v982_v50 }
0x1b17   :  { %v2495_v53 = vadd.f32 %v989_v51, %v983_v52 }
0x1b19   :  { %1889 = vmatmul.msk.f32.vlgmr.msra.gmra.mxu2 %vm83_vm0, %v2495_v53 }
0x1b1a   :  { %1445 = vmatpush.msra.mxu2 %v2304_v6 }
0x1b1c   :  { %1446 = vmatpush.msra.mxu2 %v2321_v17 }
0x1b1e   :  { %1447 = vmatpush.msra.mxu2 %v2326_v18 }
0x1b20   :  { %1448 = vmatpush.msra.mxu2 %v2333_v19 }
0x1b9c   :  { %v1030_v54 = vpop.f32.mrf.mxu2 }
0x1b9d   :  { %v1031_v55 = vadd.f32 %v2351_v24, %v1030_v54 }
0x1b9f   :  { %v1033_v56 = vadd.f32 %v1031_v55, %v2344_v23 }
0x1ba1   :  { %v1890_v58 = vmul.f32 -1.442695, %v1033_v56 }
0x1ba3   :  { %1985 = vpow2.f32 %v1890_v58 }
0x1ba9   :  { %v1986_v59 = vpop.eup %1985 }
0x1baa   :  { %v1037_v60 = vadd.f32 1.0, %v1986_v59 }
0x1bac   :  { %1987 = vrcp.f32 %v1037_v60  ;;  %v1049_v0 = vand.u32 2147483648, %v1037_v60  ;;  %v1047_v2 = vand.u32 2147483647, %v1037_v60  ;;  %vm1043_vm11 = vweird.f32 %v1037_v60 }
0x1bae   :  { %v1050_v4 = vor.u32 1.1754944e-38, %v1049_v0  ;;  %vm1048_vm13 = vcmp.eq.f32.partialorder %v1047_v2, 8.507059e+37 }
0x1bb2   :  { %v1988_v11 = vpop.eup %1987 }
0x1bb3   :  { %v1039_v61 = vmul.f32 %v1988_v11, %v1037_v60  ;;  %vm1044_vm9 = vweird.f32 %v1988_v11 }
0x1bb4   :  { %vm1045_vm12 = vmor %vm1043_vm11, %vm1044_vm9 }
0x1bb5   :  { %v1040_v63 = vsub.f32 1.0, %v1039_v61 }
0x1bb7   :  { %v1041_v1 = vmul.f32 %v1988_v11, %v1040_v63 }
0x1bb9   :  { %v1042_v3 = vadd.f32 %v1988_v11, %v1041_v1 }
0x1bbb   :  { %v1046_v5 = vsel %vm1045_vm12, %v1988_v11, %v1042_v3 }
0x1bbc   :  { %v1051_v8 = vsel %vm1048_vm13, %v1050_v4, %v1046_v5 }
0x1bbd   :  { %v1053_v12 = vmul.f32 %v1051_v8, %v2355_v40  ;;  %v1060_v20 = vsub.f32 1.0, %v1051_v8  ;;  %v1066_v27 = vmul.f32 %v1051_v8, %v2314_v16 }
0x1bbf   :  { %1055 = vrot.lane.b32.xlu2 %v1053_v12, %s2054_s28 }
0x1c19   :  { %v1056_v13 = vpop.permute.xlu2 %1055 }
0x1c1a   :  { %v1058_v14 = vadd.f32 %v1056_v13, %v1031_v55 }
0x1c1c   :  { %1989 = vtanh.f32 %v1058_v14 }
0x1c22   :  { %v1990_v15 = vpop.eup %1989 }
0x1c23   :  { %1062 = vrot.lane.b32.xlu1 %v1990_v15, %s2055_s5 }
0x1c95   :  { %v1063_v26 = vpop.permute.xlu1 %1062 }
0x1c96   :  { %v1065_v28 = vmul.f32 %v1063_v26, %v1060_v20 }
0x1c98   :  { %v1067_v57 = vadd.f32 %v1066_v27, %v1065_v28 }
0x1c9a   :  { %1991 = vtanh.f32 %v1067_v57 }
0x1ca0   :  { %v1992_v25 = vpop.eup %1991 }
0x1ca1   :  { %1070 = vrot.lane.b32.xlu0 %v1992_v25, %s2055_s5 }
0x1d13   :  { %v1071_v29 = vpop.permute.xlu0 %1070 }
0x1d14   :  { %1891 = vmatmul.msk.f32.vlgmr.msra.gmra.mxu3 %vm83_vm0, %v1071_v29 }
0x1d15   :  { %1506 = vmatpush.msra.mxu3 %v2363_v46 }
0x1d17   :  { %1507 = vmatpush.msra.mxu3 %v2368_v47 }
0x1d19   :  { %1508 = vmatpush.msra.mxu3 %v2375_v48 }
0x1d1b   :  { %1509 = vmatpush.msra.mxu3 %v2384_v49 }
0x1d97   :  { %v1091_v33 = vpop.f32.mrf.mxu3 }
0x1d98   :  { %v1092_v34 = vadd.f32 %v2414_v10, %v1091_v33 }
0x1d9a   :  { %v1095_v35 = vsel %vm1094_vm14, -inf, %v1092_v34 }
0x1d9b   :  { %v1096_v37 = vsel %vm816_vm10, %v1095_v35, -inf }
0x1d9c   :  { %1097 = vmax.xlane.f32.xlu2 %v1096_v37 }
0x1e0f   :  { %v1098_v38 = vpop.xlane.xlu2 %1097 }
0x1e10   :  { %vm1099_vm15 = vcmp.eq.f32.partialorder %v1095_v35, %v1098_v38 }
0x1e11   :  { %v1100_v41 = vsel %vm1099_vm15, %v2424_v62, 1073741824 }
0x1e12   :  { %v1101_v42 = vsel %vm816_vm10, %v1100_v41, 2147483647 }
0x1e13   :  { %v1103_v43 = vshra.s32 %v1101_v42, 16  ;;  %v1102_v7 = vand.u32 65535, %v1101_v42 }
0x1e15   :  { %v1105_v44 = vcvt.s32.f32 %v1103_v43  ;;  %v1104_v45 = vcvt.s32.f32 %v1102_v7 }
0x1e17   :  { %1106 = vmin.xlane.f32.xlu0 %v1105_v44 }
0x1e8a   :  { %v1107_v39 = vpop.xlane.xlu0 %1106 }
0x1e8b   :  { %vm1108_vm1 = vcmp.eq.f32.partialorder %v1105_v44, %v1107_v39  ;;  %v1113_v51 = vcvt.f32.s32 %v1107_v39 }
0x1e8c   :  { %v1109_v50 = vsel %vm1108_vm1, %v1104_v45, inf }
0x1e8d   :  { %1110 = vmin.xlane.f32.xlu1 %v1109_v50  ;;  %v1114_v54 = vshll.u32 %v1113_v51, 16 }
0x1f00   :  { %v1111_v52 = vpop.xlane.xlu1 %1110 }
0x1f01   :  { %v1112_v55 = vcvt.f32.s32 %v1111_v52 }
0x1f03   :  { %v1115_v56 = vadd.s32 %v1114_v54, %v1112_v55 }
0x1f05   :  { %vm1116_vm2 = vcmp.eq.s32.totalorder %v2424_v62, %v1115_v56 }
0x1f06   :  { %v1892_v58 = vsel %vm1116_vm2, 1.0, %v2053_v9 }
0x1f07   :  { %v1125_v59 = vmul.f32 %v1892_v58, %v2431_v21  ;;  %v1119_v60 = vmul.f32 %v1892_v58, %v2436_v22  ;;  %v2552_v51 = vmax.f32 %v2516_v32, %v1892_v58 }
0x1f09   :  { %v1126_v11 = vsel %vm816_vm10, %v1125_v59, 0.0  ;;  %v1120_v61 = vsel %vm816_vm10, %v1119_v60, 0.0  ;;  %vm1234_vm7 = vcmp.ne.f32.partialorder %v2552_v51, 0.0 }
0x1f0a   :  { %1127 = vadd.xlane.f32.xlu0 %v1126_v11  ;;  %1121 = vadd.xlane.f32.xlu2 %v1120_v61 }
0x1f7d   :  { %v1128_v63 = vpop.xlane.xlu0 %1127  ;;  %v1122_v0 = vpop.xlane.xlu2 %1121 }
0x1f7e   :  { %v1129_v1 = vmul.f32 %v2451_v30, %v1128_v63  ;;  %v1123_v2 = vmul.f32 %v2454_v31, %v1122_v0 }
0x1f80   :  { %v2531_v3 = vadd.f32 %v1129_v1, %v1123_v2 }
0x1f82   :  { %1893 = vmatmul.msk.f32.vlgmr.msrb.gmra.mxu1 %vm83_vm0, %v2531_v3 }
0x1f83   :  { %1585 = vmatpush.msrb.mxu1 %v2304_v6 }
0x1f85   :  { %1586 = vmatpush.msrb.mxu1 %v2321_v17 }
0x1f87   :  { %1587 = vmatpush.msrb.mxu1 %v2326_v18 }
0x1f89   :  { %1588 = vmatpush.msrb.mxu1 %v2333_v19 }
0x1fff   :  { %v1170_v4 = vpop.f32.mrf.mxu1 }
0x2000   :  { %v1171_v5 = vadd.f32 %v2351_v24, %v1170_v4 }
0x2002   :  { %v1173_v8 = vadd.f32 %v1171_v5, %v2344_v23 }
0x2004   :  { %v1894_v12 = vmul.f32 -1.442695, %v1173_v8 }
0x2006   :  { %1993 = vpow2.f32 %v1894_v12 }
0x200c   :  { %v1994_v13 = vpop.eup %1993 }
0x200d   :  { %v1177_v14 = vadd.f32 1.0, %v1994_v13 }
0x200f   :  { %1995 = vrcp.f32 %v1177_v14  ;;  %v1189_v27 = vand.u32 2147483648, %v1177_v14  ;;  %v1187_v57 = vand.u32 2147483647, %v1177_v14  ;;  %vm1183_vm4 = vweird.f32 %v1177_v14 }
0x2011   :  { %v1190_v29 = vor.u32 1.1754944e-38, %v1189_v27  ;;  %vm1188_vm6 = vcmp.eq.f32.partialorder %v1187_v57, 8.507059e+37 }
0x2015   :  { %v1996_v15 = vpop.eup %1995 }
0x2016   :  { %v1179_v20 = vmul.f32 %v1996_v15, %v1177_v14  ;;  %vm1184_vm3 = vweird.f32 %v1996_v15 }
0x2017   :  { %vm1185_vm5 = vmor %vm1183_vm4, %vm1184_vm3 }
0x2018   :  { %v1180_v26 = vsub.f32 1.0, %v1179_v20 }
0x201a   :  { %v1181_v28 = vmul.f32 %v1996_v15, %v1180_v26 }
0x201c   :  { %v1182_v25 = vadd.f32 %v1996_v15, %v1181_v28 }
0x201e   :  { %v1186_v33 = vsel %vm1185_vm5, %v1996_v15, %v1182_v25 }
0x201f   :  { %v1191_v34 = vsel %vm1188_vm6, %v1190_v29, %v1186_v33 }
0x2020   :  { %v1193_v35 = vmul.f32 %v1191_v34, %v2355_v40  ;;  %v1200_v42 = vsub.f32 1.0, %v1191_v34  ;;  %v1206_v44 = vmul.f32 %v1191_v34, %v2314_v16 }
0x2022   :  { %1195 = vrot.lane.b32.xlu1 %v1193_v35, %s2054_s28 }
0x2094   :  { %v1196_v37 = vpop.permute.xlu1 %1195 }
0x2095   :  { %v1198_v38 = vadd.f32 %v1196_v37, %v1171_v5 }
0x2097   :  { %1997 = vtanh.f32 %v1198_v38 }
0x209d   :  { %v1998_v41 = vpop.eup %1997 }
0x209e   :  { %1202 = vrot.lane.b32.xlu2 %v1998_v41, %s2055_s5 }
0x20f8   :  { %v1203_v43 = vpop.permute.xlu2 %1202 }
0x20f9   :  { %v1205_v7 = vmul.f32 %v1203_v43, %v1200_v42 }
0x20fb   :  { %v1207_v39 = vadd.f32 %v1206_v44, %v1205_v7 }
0x20fd   :  { %1999 = vtanh.f32 %v1207_v39 }
0x2103   :  { %v2000_v45 = vpop.eup %1999 }
0x2104   :  { %1210 = vrot.lane.b32.xlu0 %v2000_v45, %s2055_s5 }
0x2176   :  { %v1211_v50 = vpop.permute.xlu0 %1210 }
0x2177   :  { %1895 = vmatmul.msk.f32.vlgmr.msrb.gmra.mxu2 %vm83_vm0, %v1211_v50 }
0x2178   :  { %1646 = vmatpush.msrb.mxu2 %v2363_v46 }
0x217a   :  { %1647 = vmatpush.msrb.mxu2 %v2368_v47 }
0x217c   :  { %1648 = vmatpush.msrb.mxu2 %v2375_v48 }
0x217e   :  { %1649 = vmatpush.msrb.mxu2 %v2384_v49 }
0x21fa   :  { %v1231_v52 = vpop.f32.mrf.mxu2 }
0x21fb   :  { %v1232_v54 = vadd.f32 %v2414_v10, %v1231_v52 }
0x21fd   :  { %v1235_v55 = vsel %vm1234_vm7, -inf, %v1232_v54 }
0x21fe   :  { %v1236_v56 = vsel %vm816_vm10, %v1235_v55, -inf }
0x21ff   :  { %1237 = vmax.xlane.f32.xlu1 %v1236_v56 }
0x2272   :  { %v1238_v59 = vpop.xlane.xlu1 %1237 }
0x2273   :  { %vm1239_vm8 = vcmp.eq.f32.partialorder %v1235_v55, %v1238_v59 }
0x2274   :  { %v1240_v46 = vsel %vm1239_vm8, %v2424_v62, 1073741824 }
0x2275   :  { %v1241_v47 = vsel %vm816_vm10, %v1240_v46, 2147483647 }
0x2276   :  { %v1243_v48 = vshra.s32 %v1241_v47, 16  ;;  %v1242_v32 = vand.u32 65535, %v1241_v47 }
0x2278   :  { %v1245_v49 = vcvt.s32.f32 %v1243_v48  ;;  %v1244_v60 = vcvt.s32.f32 %v1242_v32 }
0x227a   :  { %1246 = vmin.xlane.f32.xlu0 %v1245_v49 }
0x22ed   :  { %v1247_v58 = vpop.xlane.xlu0 %1246 }
0x22ee   :  { %vm1248_vm9 = vcmp.eq.f32.partialorder %v1245_v49, %v1247_v58  ;;  %v1253_v61 = vcvt.f32.s32 %v1247_v58 }
0x22ef   :  { %v1249_v11 = vsel %vm1248_vm9, %v1244_v60, inf }
0x22f0   :  { %1250 = vmin.xlane.f32.xlu2 %v1249_v11  ;;  %v1254_v0 = vshll.u32 %v1253_v61, 16 }
0x2363   :  { %v1251_v63 = vpop.xlane.xlu2 %1250 }
0x2364   :  { %v1252_v1 = vcvt.f32.s32 %v1251_v63 }
0x2366   :  { %v1255_v2 = vadd.s32 %v1254_v0, %v1252_v1 }
0x2368   :  { %vm1256_vm11 = vcmp.eq.s32.totalorder %v2424_v62, %v1255_v2 }
0x2369   :  { %v1896_v4 = vsel %vm1256_vm11, 1.0, %v2053_v9 }
0x236a   :  { %v1265_v5 = vmul.f32 %v1896_v4, %v2431_v21  ;;  %v1259_v8 = vmul.f32 %v1896_v4, %v2436_v22  ;;  %v2584_v47 = vmax.f32 %v2552_v51, %v1896_v4 }
0x236c   :  { %v1266_v12 = vsel %vm816_vm10, %v1265_v5, 0.0  ;;  %v1260_v13 = vsel %vm816_vm10, %v1259_v8, 0.0  ;;  %vm1374_vm1 = vcmp.ne.f32.partialorder %v2584_v47, 0.0 }
0x236d   :  { %1267 = vadd.xlane.f32.xlu0 %v1266_v12  ;;  %1261 = vadd.xlane.f32.xlu1 %v1260_v13 }
0x23e0   :  { %v1268_v14 = vpop.xlane.xlu0 %1267  ;;  %v1262_v15 = vpop.xlane.xlu1 %1261 }
0x23e1   :  { %v1269_v20 = vmul.f32 %v2451_v30, %v1268_v14  ;;  %v1263_v26 = vmul.f32 %v2454_v31, %v1262_v15 }
0x23e3   :  { %v2567_v27 = vadd.f32 %v1269_v20, %v1263_v26 }
0x23e5   :  { %1897 = vmatmul.msk.f32.vlgmr.msrb.gmra.mxu3 %vm83_vm0, %v2567_v27 }
0x23e6   :  { %1725 = vmatpush.msrb.mxu3 %v2304_v6 }
0x23e8   :  { %1726 = vmatpush.msrb.mxu3 %v2321_v17 }
0x23ea   :  { %1727 = vmatpush.msrb.mxu3 %v2326_v18 }
0x23ec   :  { %1728 = vmatpush.msrb.mxu3 %v2333_v19 }
0x2468   :  { %v1310_v28 = vpop.f32.mrf.mxu3 }
0x2469   :  { %v1311_v57 = vadd.f32 %v2351_v24, %v1310_v28 }
0x246b   :  { %v1313_v25 = vadd.f32 %v1311_v57, %v2344_v23 }
0x246d   :  { %v1898_v29 = vmul.f32 -1.442695, %v1313_v25 }
0x246f   :  { %2001 = vpow2.f32 %v1898_v29 }
0x2475   :  { %v2002_v33 = vpop.eup %2001 }
0x2476   :  { %v1317_v34 = vadd.f32 1.0, %v2002_v33 }
0x2478   :  { %2003 = vrcp.f32 %v1317_v34  ;;  %v1329_v6 = vand.u32 2147483648, %v1317_v34  ;;  %v1327_v17 = vand.u32 2147483647, %v1317_v34  ;;  %vm1323_vm13 = vweird.f32 %v1317_v34 }
0x247a   :  { %v1330_v19 = vor.u32 1.1754944e-38, %v1329_v6  ;;  %vm1328_vm15 = vcmp.eq.f32.partialorder %v1327_v17, 8.507059e+37 }
0x247e   :  { %v2004_v35 = vpop.eup %2003 }
0x247f   :  { %v1319_v37 = vmul.f32 %v2004_v35, %v1317_v34  ;;  %vm1324_vm12 = vweird.f32 %v2004_v35 }
0x2480   :  { %vm1325_vm14 = vmor %vm1323_vm13, %vm1324_vm12 }
0x2481   :  { %v1320_v38 = vsub.f32 1.0, %v1319_v37 }
0x2483   :  { %v1321_v41 = vmul.f32 %v2004_v35, %v1320_v38 }
0x2485   :  { %v1322_v18 = vadd.f32 %v2004_v35, %v1321_v41 }
0x2487   :  { %v1326_v42 = vsel %vm1325_vm14, %v2004_v35, %v1322_v18 }
0x2488   :  { %v1331_v43 = vsel %vm1328_vm15, %v1330_v19, %v1326_v42 }
0x2489   :  { %v1333_v44 = vmul.f32 %v1331_v43, %v2355_v40  ;;  %v1340_v50 = vsub.f32 1.0, %v1331_v43  ;;  %v1346_v54 = vmul.f32 %v1331_v43, %v2314_v16 }
0x248b   :  { %1335 = vrot.lane.b32.xlu2 %v1333_v44, %s2054_s28 }
0x24e5   :  { %v1336_v7 = vpop.permute.xlu2 %1335 }
0x24e6   :  { %v1338_v39 = vadd.f32 %v1336_v7, %v1311_v57 }
0x24e8   :  { %2005 = vtanh.f32 %v1338_v39 }
0x24ee   :  { %v2006_v45 = vpop.eup %2005 }
0x24ef   :  { %1342 = vrot.lane.b32.xlu1 %v2006_v45, %s2055_s5 }
0x2561   :  { %v1343_v52 = vpop.permute.xlu1 %1342 }
0x2562   :  { %v1345_v55 = vmul.f32 %v1343_v52, %v1340_v50 }
0x2564   :  { %v1347_v56 = vadd.f32 %v1346_v54, %v1345_v55 }
0x2566   :  { %2007 = vtanh.f32 %v1347_v56 }
0x256c   :  { %v2008_v59 = vpop.eup %2007 }
0x256d   :  { %1350 = vrot.lane.b32.xlu0 %v2008_v59, %s2055_s5 }
0x25df   :  { %v1351_v46 = vpop.permute.xlu0 %1350 }
0x25e0   :  { %1899 = vmatmul.msk.f32.vlgmr.msra.gmra.mxu1 %vm83_vm0, %v1351_v46 }
0x265d   :  { %v1371_v48 = vpop.f32.mrf.mxu1 }
0x265e   :  { %v1372_v49 = vadd.f32 %v2414_v10, %v1371_v48 }
0x2660   :  { %v1375_v32 = vsel %vm1374_vm1, -inf, %v1372_v49 }
0x2661   :  { %v1376_v58 = vsel %vm816_vm10, %v1375_v32, -inf }
0x2662   :  { %1377 = vmax.xlane.f32.xlu2 %v1376_v58 }
0x26d5   :  { %v1378_v60 = vpop.xlane.xlu2 %1377 }
0x26d6   :  { %vm1379_vm2 = vcmp.eq.f32.partialorder %v1375_v32, %v1378_v60 }
0x26d7   :  { %v1380_v11 = vsel %vm1379_vm2, %v2424_v62, 1073741824 }
0x26d8   :  { %v1381_v61 = vsel %vm816_vm10, %v1380_v11, 2147483647 }
0x26d9   :  { %v1383_v63 = vshra.s32 %v1381_v61, 16  ;;  %v1382_v51 = vand.u32 65535, %v1381_v61 }
0x26db   :  { %v1385_v0 = vcvt.s32.f32 %v1383_v63  ;;  %v1384_v2 = vcvt.s32.f32 %v1382_v51 }
0x26dd   :  { %1386 = vmin.xlane.f32.xlu0 %v1385_v0 }
0x2750   :  { %v1387_v1 = vpop.xlane.xlu0 %1386 }
0x2751   :  { %vm1388_vm3 = vcmp.eq.f32.partialorder %v1385_v0, %v1387_v1  ;;  %v1393_v5 = vcvt.f32.s32 %v1387_v1 }
0x2752   :  { %v1389_v4 = vsel %vm1388_vm3, %v1384_v2, inf }
0x2753   :  { %1390 = vmin.xlane.f32.xlu1 %v1389_v4  ;;  %v1394_v12 = vshll.u32 %v1393_v5, 16 }
0x27c6   :  { %v1391_v8 = vpop.xlane.xlu1 %1390 }
0x27c7   :  { %v1392_v13 = vcvt.f32.s32 %v1391_v8 }
0x27c9   :  { %v1395_v14 = vadd.s32 %v1394_v12, %v1392_v13 }
0x27cb   :  { %vm1396_vm4 = vcmp.eq.s32.totalorder %v2424_v62, %v1395_v14 }
0x27cc   :  { %v1900_v15 = vsel %vm1396_vm4, 1.0, %v2053_v9 }
0x27cd   :  { %v1405_v20 = vmul.f32 %v1900_v15, %v2431_v21  ;;  %v1399_v26 = vmul.f32 %v1900_v15, %v2436_v22  ;;  %v2612_v61 = vmax.f32 %v2584_v47, %v1900_v15 }
0x27cf   :  { %v1406_v28 = vsel %vm816_vm10, %v1405_v20, 0.0  ;;  %v1400_v57 = vsel %vm816_vm10, %v1399_v26, 0.0  ;;  %vm1514_vm9 = vcmp.ne.f32.partialorder %v2612_v61, 0.0 }
0x27d0   :  { %1407 = vadd.xlane.f32.xlu0 %v1406_v28  ;;  %1401 = vadd.xlane.f32.xlu2 %v1400_v57 }
0x2843   :  { %v1408_v25 = vpop.xlane.xlu0 %1407  ;;  %v1402_v29 = vpop.xlane.xlu2 %1401 }
0x2844   :  { %v1409_v33 = vmul.f32 %v2451_v30, %v1408_v25  ;;  %v1403_v34 = vmul.f32 %v2454_v31, %v1402_v29 }
0x2846   :  { %v2599_v35 = vadd.f32 %v1409_v33, %v1403_v34 }
0x2848   :  { %1901 = vmatmul.msk.f32.vlgmr.msra.gmra.mxu2 %vm83_vm0, %v2599_v35 }
0x28cb   :  { %v1450_v37 = vpop.f32.mrf.mxu2 }
0x28cc   :  { %v1451_v38 = vadd.f32 %v2351_v24, %v1450_v37 }
0x28ce   :  { %v1453_v6 = vadd.f32 %v1451_v38, %v2344_v23 }
0x28d0   :  { %v1902_v41 = vmul.f32 -1.442695, %v1453_v6 }
0x28d2   :  { %2009 = vpow2.f32 %v1902_v41 }
0x28d8   :  { %v2010_v17 = vpop.eup %2009 }
0x28d9   :  { %v1457_v18 = vadd.f32 1.0, %v2010_v17 }
0x28db   :  { %2011 = vrcp.f32 %v1457_v18  ;;  %v1469_v44 = vand.u32 2147483648, %v1457_v18  ;;  %v1467_v39 = vand.u32 2147483647, %v1457_v18  ;;  %vm1463_vm6 = vweird.f32 %v1457_v18 }
0x28dd   :  { %v1470_v50 = vor.u32 1.1754944e-38, %v1469_v44  ;;  %vm1468_vm8 = vcmp.eq.f32.partialorder %v1467_v39, 8.507059e+37 }
0x28e1   :  { %v2012_v19 = vpop.eup %2011 }
0x28e2   :  { %v1459_v42 = vmul.f32 %v2012_v19, %v1457_v18  ;;  %vm1464_vm5 = vweird.f32 %v2012_v19 }
0x28e3   :  { %vm1465_vm7 = vmor %vm1463_vm6, %vm1464_vm5 }
0x28e4   :  { %v1460_v43 = vsub.f32 1.0, %v1459_v42 }
0x28e6   :  { %v1461_v7 = vmul.f32 %v2012_v19, %v1460_v43  ;;  %v2634_v43 = vld [vmem:[%s2779_s9] ss:$0 sm:$0xff] }
0x28e8   :  { %v1462_v45 = vadd.f32 %v2012_v19, %v1461_v7 }
0x28ea   :  { %v1466_v52 = vsel %vm1465_vm7, %v2012_v19, %v1462_v45 }
0x28eb   :  { %v1471_v24 = vsel %vm1468_vm8, %v1470_v50, %v1466_v52 }
0x28ec   :  { %v1473_v54 = vmul.f32 %v1471_v24, %v2355_v40  ;;  %v1480_v46 = vsub.f32 1.0, %v1471_v24  ;;  %v1486_v49 = vmul.f32 %v1471_v24, %v2314_v16 }
0x28ee   :  { %1475 = vrot.lane.b32.xlu2 %v1473_v54, %s2054_s28 }
0x2948   :  { %v1476_v55 = vpop.permute.xlu2 %1475 }
0x2949   :  { %v1478_v56 = vadd.f32 %v1476_v55, %v1451_v38 }
0x294b   :  { %2013 = vtanh.f32 %v1478_v56 }
0x2951   :  { %v2014_v59 = vpop.eup %2013 }
0x2952   :  { %1482 = vrot.lane.b32.xlu1 %v2014_v59, %s2055_s5 }
0x29c4   :  { %v1483_v48 = vpop.permute.xlu1 %1482 }
0x29c5   :  { %v1485_v32 = vmul.f32 %v1483_v48, %v1480_v46 }
0x29c7   :  { %v1487_v58 = vadd.f32 %v1486_v49, %v1485_v32 }
0x29c9   :  { %2015 = vtanh.f32 %v1487_v58 }
0x29cf   :  { %v2016_v60 = vpop.eup %2015 }
0x29d0   :  { %1490 = vrot.lane.b32.xlu0 %v2016_v60, %s2055_s5 }
0x2a42   :  { %v1491_v11 = vpop.permute.xlu0 %1490 }
0x2a43   :  { %1903 = vmatmul.msk.f32.vlgmr.msra.gmra.mxu3 %vm83_vm0, %v1491_v11 }
0x2ac6   :  { %v1511_v63 = vpop.f32.mrf.mxu3 }
0x2ac7   :  { %v1512_v0 = vadd.f32 %v2414_v10, %v1511_v63 }
0x2ac9   :  { %v1515_v51 = vsel %vm1514_vm9, -inf, %v1512_v0 }
0x2aca   :  { %v1516_v1 = vsel %vm816_vm10, %v1515_v51, -inf }
0x2acb   :  { %1517 = vmax.xlane.f32.xlu2 %v1516_v1 }
0x2b3e   :  { %v1518_v2 = vpop.xlane.xlu2 %1517 }
0x2b3f   :  { %vm1519_vm11 = vcmp.eq.f32.partialorder %v1515_v51, %v1518_v2 }
0x2b40   :  { %v1520_v4 = vsel %vm1519_vm11, %v2424_v62, 1073741824 }
0x2b41   :  { %v1521_v5 = vsel %vm816_vm10, %v1520_v4, 2147483647 }
0x2b42   :  { %v1523_v8 = vshra.s32 %v1521_v5, 16  ;;  %v1522_v47 = vand.u32 65535, %v1521_v5 }
0x2b44   :  { %v1525_v12 = vcvt.s32.f32 %v1523_v8  ;;  %v1524_v14 = vcvt.s32.f32 %v1522_v47 }
0x2b46   :  { %1526 = vmin.xlane.f32.xlu0 %v1525_v12 }
0x2bb9   :  { %v1527_v13 = vpop.xlane.xlu0 %1526 }
0x2bba   :  { %vm1528_vm12 = vcmp.eq.f32.partialorder %v1525_v12, %v1527_v13  ;;  %v1533_v20 = vcvt.f32.s32 %v1527_v13 }
0x2bbb   :  { %v1529_v15 = vsel %vm1528_vm12, %v1524_v14, inf }
0x2bbc   :  { %1530 = vmin.xlane.f32.xlu1 %v1529_v15  ;;  %v1534_v28 = vshll.u32 %v1533_v20, 16 }
0x2c2f   :  { %v1531_v26 = vpop.xlane.xlu1 %1530 }
0x2c30   :  { %v1532_v57 = vcvt.f32.s32 %v1531_v26 }
0x2c32   :  { %v1535_v25 = vadd.s32 %v1534_v28, %v1532_v57 }
0x2c34   :  { %vm1536_vm13 = vcmp.eq.s32.totalorder %v2424_v62, %v1535_v25 }
0x2c35   :  { %v1904_v29 = vsel %vm1536_vm13, 1.0, %v2053_v9 }
0x2c36   :  { %v1545_v33 = vmul.f32 %v1904_v29, %v2431_v21  ;;  %v1539_v34 = vmul.f32 %v1904_v29, %v2436_v22  ;;  %v2645_v12 = vmax.f32 %v2612_v61, %v1904_v29 }
0x2c38   :  { %v1546_v37 = vsel %vm816_vm10, %v1545_v33, 0.0  ;;  %v1540_v38 = vsel %vm816_vm10, %v1539_v34, 0.0  ;;  %vm1654_vm3 = vcmp.ne.f32.partialorder %v2645_v12, 0.0 }
0x2c39   :  { %1547 = vadd.xlane.f32.xlu0 %v1546_v37  ;;  %1541 = vadd.xlane.f32.xlu2 %v1540_v38 }
0x2cac   :  { %v1548_v6 = vpop.xlane.xlu0 %1547  ;;  %v1542_v41 = vpop.xlane.xlu2 %1541 }
0x2cad   :  { %v1549_v17 = vmul.f32 %v2451_v30, %v1548_v6  ;;  %v1543_v18 = vmul.f32 %v2454_v31, %v1542_v41 }
0x2caf   :  { %v2627_v19 = vadd.f32 %v1549_v17, %v1543_v18 }
0x2cb1   :  { %1905 = vmatmul.msk.f32.vlgmr.msrb.gmra.mxu1 %vm83_vm0, %v2627_v19 }
0x2d2e   :  { %v1590_v42 = vpop.f32.mrf.mxu1 }
0x2d2f   :  { %v1591_v44 = vadd.f32 %v2634_v43, %v1590_v42 }
0x2d31   :  { %v1593_v7 = vadd.f32 %v1591_v44, %v2344_v23 }
0x2d33   :  { %v1906_v39 = vmul.f32 -1.442695, %v1593_v7 }
0x2d35   :  { %2017 = vpow2.f32 %v1906_v39 }
0x2d3b   :  { %v2018_v45 = vpop.eup %2017 }
0x2d3c   :  { %v1597_v50 = vadd.f32 1.0, %v2018_v45 }
0x2d3e   :  { %2019 = vrcp.f32 %v1597_v50  ;;  %v1609_v55 = vand.u32 2147483648, %v1597_v50  ;;  %v1607_v59 = vand.u32 2147483647, %v1597_v50  ;;  %vm1603_vm15 = vweird.f32 %v1597_v50 }
0x2d40   :  { %v1610_v48 = vor.u32 1.1754944e-38, %v1609_v55  ;;  %vm1608_vm2 = vcmp.eq.f32.partialorder %v1607_v59, 8.507059e+37 }
0x2d44   :  { %v2020_v52 = vpop.eup %2019 }
0x2d45   :  { %v1599_v24 = vmul.f32 %v2020_v52, %v1597_v50  ;;  %vm1604_vm14 = vweird.f32 %v2020_v52 }
0x2d46   :  { %vm1605_vm1 = vmor %vm1603_vm15, %vm1604_vm14 }
0x2d47   :  { %v1600_v54 = vsub.f32 1.0, %v1599_v24 }
0x2d49   :  { %v1601_v56 = vmul.f32 %v2020_v52, %v1600_v54 }
0x2d4b   :  { %v1602_v46 = vadd.f32 %v2020_v52, %v1601_v56 }
0x2d4d   :  { %v1606_v49 = vsel %vm1605_vm1, %v2020_v52, %v1602_v46 }
0x2d4e   :  { %v1611_v32 = vsel %vm1608_vm2, %v1610_v48, %v1606_v49 }
0x2d4f   :  { %v1613_v58 = vmul.f32 %v1611_v32, %v2355_v40  ;;  %v1620_v0 = vsub.f32 1.0, %v1611_v32  ;;  %v1626_v1 = vmul.f32 %v1611_v32, %v2314_v16 }
0x2d51   :  { %1615 = vrot.lane.b32.xlu1 %v1613_v58, %s2054_s28 }
0x2dc3   :  { %v1616_v60 = vpop.permute.xlu1 %1615 }
0x2dc4   :  { %v1618_v11 = vadd.f32 %v1616_v60, %v1591_v44 }
0x2dc6   :  { %2021 = vtanh.f32 %v1618_v11 }
0x2dcc   :  { %v2022_v63 = vpop.eup %2021 }
0x2dcd   :  { %1622 = vrot.lane.b32.xlu2 %v2022_v63, %s2055_s5 }
0x2e27   :  { %v1623_v51 = vpop.permute.xlu2 %1622 }
0x2e28   :  { %v1625_v2 = vmul.f32 %v1623_v51, %v1620_v0 }
0x2e2a   :  { %v1627_v4 = vadd.f32 %v1626_v1, %v1625_v2 }
0x2e2c   :  { %2023 = vtanh.f32 %v1627_v4 }
0x2e32   :  { %v2024_v5 = vpop.eup %2023 }
0x2e33   :  { %1630 = vrot.lane.b32.xlu0 %v2024_v5, %s2055_s5 }
0x2ea5   :  { %v1631_v8 = vpop.permute.xlu0 %1630 }
0x2ea6   :  { %1907 = vmatmul.msk.f32.vlgmr.msrb.gmra.mxu2 %vm83_vm0, %v1631_v8 }
0x2f29   :  { %v1651_v47 = vpop.f32.mrf.mxu2 }
0x2f2a   :  { %v1652_v13 = vadd.f32 %v2414_v10, %v1651_v47 }
0x2f2c   :  { %v1655_v14 = vsel %vm1654_vm3, -inf, %v1652_v13 }
0x2f2d   :  { %v1656_v15 = vsel %vm816_vm10, %v1655_v14, -inf }
0x2f2e   :  { %1657 = vmax.xlane.f32.xlu1 %v1656_v15 }
0x2fa1   :  { %v1658_v20 = vpop.xlane.xlu1 %1657 }
0x2fa2   :  { %vm1659_vm4 = vcmp.eq.f32.partialorder %v1655_v14, %v1658_v20 }
0x2fa3   :  { %v1660_v26 = vsel %vm1659_vm4, %v2424_v62, 1073741824 }
0x2fa4   :  { %v1661_v28 = vsel %vm816_vm10, %v1660_v26, 2147483647  ;;  %v2050_v26 = vld [vmem:[%s2780_s12] ss:$0 sm:$0xff] }
0x2fa5   :  { %v1663_v57 = vshra.s32 %v1661_v28, 16  ;;  %v1662_v61 = vand.u32 65535, %v1661_v28 }
0x2fa7   :  { %v1665_v25 = vcvt.s32.f32 %v1663_v57  ;;  %v1664_v33 = vcvt.s32.f32 %v1662_v61 }
0x2fa9   :  { %1666 = vmin.xlane.f32.xlu0 %v1665_v25 }
0x301c   :  { %v1667_v29 = vpop.xlane.xlu0 %1666 }
0x301d   :  { %vm1668_vm5 = vcmp.eq.f32.partialorder %v1665_v25, %v1667_v29  ;;  %v1673_v34 = vcvt.f32.s32 %v1667_v29 }
0x301e   :  { %v1669_v10 = vsel %vm1668_vm5, %v1664_v33, inf }
0x301f   :  { %1670 = vmin.xlane.f32.xlu2 %v1669_v10  ;;  %v1674_v38 = vshll.u32 %v1673_v34, 16 }
0x3092   :  { %v1671_v37 = vpop.xlane.xlu2 %1670 }
0x3093   :  { %v1672_v6 = vcvt.f32.s32 %v1671_v37 }
0x3095   :  { %v1675_v41 = vadd.s32 %v1674_v38, %v1672_v6  ;;  %v852_v6 = vmul.f32 %v2458_v36, %v2458_v36 }
0x3097   :  { %vm1676_vm6 = vcmp.eq.s32.totalorder %v2424_v62, %v1675_v41  ;;  %v853_v41 = vsel %vm83_vm0, %v852_v6, 0.0 }
0x3098   :  { %v1908_v17 = vsel %vm1676_vm6, 1.0, %v2053_v9 }
0x3099   :  { %v1685_v18 = vmul.f32 %v1908_v17, %v2431_v21  ;;  %v1679_v42 = vmul.f32 %v1908_v17, %v2436_v22 }
0x309b   :  { %v1686_v44 = vsel %vm816_vm10, %v1685_v18, 0.0  ;;  %v1680_v7 = vsel %vm816_vm10, %v1679_v42, 0.0 }
0x309c   :  { %1687 = vadd.xlane.f32.xlu0 %v1686_v44  ;;  %1681 = vadd.xlane.f32.xlu1 %v1680_v7 }
0x310f   :  { %v1688_v39 = vpop.xlane.xlu0 %1687  ;;  %v1682_v45 = vpop.xlane.xlu1 %1681 }
0x3110   :  { %v1689_v50 = vmul.f32 %v2451_v30, %v1688_v39  ;;  %v1683_v52 = vmul.f32 %v2454_v31, %v1682_v45 }
0x3112   :  { %v2660_v24 = vadd.f32 %v1689_v50, %v1683_v52 }
0x3114   :  { %1909 = vmatmul.msk.f32.vlgmr.msrb.gmra.mxu3 %vm83_vm0, %v2660_v24  ;;  %v1691_v44 = vsub.f32 %v2660_v24, %v2627_v19 }
0x3116   :  { %v1692_v7 = vmul.f32 %v1691_v44, %v1691_v44 }
0x3118   :  { %v1693_v39 = vsel %vm83_vm0, %v1692_v7, 0.0 }
0x3197   :  { %v1730_v21 = vpop.f32.mrf.mxu3 }
0x3198   :  { %v1731_v22 = vadd.f32 %v2634_v43, %v1730_v21 }
0x319a   :  { %v1733_v54 = vadd.f32 %v1731_v22, %v2344_v23 }
0x319c   :  { %v1910_v55 = vmul.f32 -1.442695, %v1733_v54 }
0x319e   :  { %2025 = vpow2.f32 %v1910_v55  ;;  %v2051_v55 = vld [vmem:[%s2783_s1 + $0x8] sm:$0xff] }
0x31a4   :  { %v2026_v56 = vpop.eup %2025 }
0x31a5   :  { %v1737_v59 = vadd.f32 1.0, %v2026_v56 }
0x31a7   :  { %2027 = vrcp.f32 %v1737_v59  ;;  %v1749_v32 = vand.u32 2147483648, %v1737_v59  ;;  %v1747_v60 = vand.u32 2147483647, %v1737_v59  ;;  %vm1743_vm8 = vweird.f32 %v1737_v59 }
0x31a9   :  { %v1750_v63 = vor.u32 1.1754944e-38, %v1749_v32  ;;  %vm1748_vm11 = vcmp.eq.f32.partialorder %v1747_v60, 8.507059e+37  ;;  %v1131_v32 = vsub.f32 %v2531_v3, %v2495_v53 }
0x31ad   :  { %v2028_v46 = vpop.eup %2027 }
0x31ae   :  { %v1739_v48 = vmul.f32 %v2028_v46, %v1737_v59  ;;  %vm1744_vm7 = vweird.f32 %v2028_v46  ;;  %v2052_v59 = vld [vmem:[%s2783_s1] sm:$0xff] }
0x31af   :  { %vm1745_vm9 = vmor %vm1743_vm8, %vm1744_vm7 }
0x31b0   :  { %v1740_v49 = vsub.f32 1.0, %v1739_v48 }
0x31b2   :  { %v1741_v58 = vmul.f32 %v2028_v46, %v1740_v49 }
0x31b4   :  { %v1742_v11 = vadd.f32 %v2028_v46, %v1741_v58 }
0x31b6   :  { %v1746_v0 = vsel %vm1745_vm9, %v2028_v46, %v1742_v11 }
0x31b7   :  { %v1751_v43 = vsel %vm1748_vm11, %v1750_v63, %v1746_v0  ;;  %v1551_v63 = vsub.f32 %v2627_v19, %v2599_v35  ;;  %v1411_v0 = vsub.f32 %v2599_v35, %v2567_v27 }
0x31b8   :  { %v1753_v23 = vmul.f32 %v1751_v43, %v2355_v40  ;;  %v1760_v4 = vsub.f32 1.0, %v1751_v43  ;;  %v1766_v8 = vmul.f32 %v1751_v43, %v2314_v16  ;;  %v1708_v40 = vmax.f32 %v2645_v12, %v1908_v17 }
0x31b9   :  { %v1271_v17 = vsub.f32 %v2567_v27, %v2531_v3  ;;  %v1552_v3 = vmul.f32 %v1551_v63, %v1551_v63  ;;  %v1412_v43 = vmul.f32 %v1411_v0, %v1411_v0 }
0x31ba   :  { %1755 = vrot.lane.b32.xlu2 %v1753_v23, %s2054_s28  ;;  %vm1794_vm12 = vcmp.ne.f32.partialorder %v1708_v40, 0.0 }
0x31bb   :  { %v1272_v18 = vmul.f32 %v1271_v17, %v1271_v17 }
0x31bd   :  { %v1273_v42 = vsel %vm83_vm0, %v1272_v18, 0.0 }
0x3214   :  { %v1756_v51 = vpop.permute.xlu2 %1755 }
0x3215   :  { %v1758_v1 = vadd.f32 %v1756_v51, %v1731_v22 }
0x3217   :  { %2029 = vtanh.f32 %v1758_v1 }
0x321d   :  { %v2030_v2 = vpop.eup %2029 }
0x321e   :  { %1762 = vrot.lane.b32.xlu1 %v2030_v2, %s2055_s5 }
0x3290   :  { %v1763_v5 = vpop.permute.xlu1 %1762 }
0x3291   :  { %v1765_v47 = vmul.f32 %v1763_v5, %v1760_v4 }
0x3293   :  { %v1767_v13 = vadd.f32 %v1766_v8, %v1765_v47 }
0x3295   :  { %2031 = vtanh.f32 %v1767_v13 }
0x329b   :  { %v2032_v14 = vpop.eup %2031 }
0x329c   :  { %1770 = vrot.lane.b32.xlu0 %v2032_v14, %s2055_s5 }
0x330e   :  { %v1771_v15 = vpop.permute.xlu0 %1770 }
0x330f   :  { %1911 = vmatmul.msk.f32.vlgmr.msrb.gmra.mxu0 %vm83_vm0, %v1771_v15 }
0x338c   :  { %v1791_v20 = vpop.f32.mrf.mxu0 }
0x338d   :  { %v1792_v28 = vadd.f32 %v2050_v26, %v1791_v20 }
0x338f   :  { %v1795_v57 = vsel %vm1794_vm12, -inf, %v1792_v28 }
0x3390   :  { %v1796_v16 = vsel %vm816_vm10, %v1795_v57, -inf }
0x3391   :  { %1797 = vmax.xlane.f32.xlu2 %v1796_v16 }
0x3404   :  { %v1798_v25 = vpop.xlane.xlu2 %1797 }
0x3405   :  { %vm1799_vm13 = vcmp.eq.f32.partialorder %v1795_v57, %v1798_v25 }
0x3406   :  { %v1800_v61 = vsel %vm1799_vm13, %v2424_v62, 1073741824 }
0x3407   :  { %v1801_v29 = vsel %vm816_vm10, %v1800_v61, 2147483647 }
0x3408   :  { %v1803_v33 = vshra.s32 %v1801_v29, 16  ;;  %v1802_v12 = vand.u32 65535, %v1801_v29 }
0x340a   :  { %v1805_v10 = vcvt.s32.f32 %v1803_v33  ;;  %v1804_v37 = vcvt.s32.f32 %v1802_v12 }
0x340c   :  { %1806 = vmin.xlane.f32.xlu0 %v1805_v10 }
0x347f   :  { %v1807_v34 = vpop.xlane.xlu0 %1806 }
0x3480   :  { %vm1808_vm14 = vcmp.eq.f32.partialorder %v1805_v10, %v1807_v34  ;;  %v1813_v45 = vcvt.f32.s32 %v1807_v34 }
0x3481   :  { %v1809_v38 = vsel %vm1808_vm14, %v1804_v37, inf }
0x3482   :  { %1810 = vmin.xlane.f32.xlu1 %v1809_v38  ;;  %v1814_v52 = vshll.u32 %v1813_v45, 16 }
0x348a   :  { %854 = vadd.xlane.f32.xlu1 %v853_v41 }
0x3492   :  { %1274 = vadd.xlane.f32.xlu1 %v1273_v42 }
0x349a   :  { %1694 = vadd.xlane.f32.xlu1 %v1693_v39 }
0x34f5   :  { %v1811_v50 = vpop.xlane.xlu1 %1810 }
0x34f6   :  { %v1812_v21 = vcvt.f32.s32 %v1811_v50 }
0x34f8   :  { %v1815_v22 = vadd.s32 %v1814_v52, %v1812_v21 }
0x34fa   :  { %vm1816_vm15 = vcmp.eq.s32.totalorder %v2424_v62, %v1815_v22  ;;  %v1132_v62 = vmul.f32 %v1131_v32, %v1131_v32 }
0x34fb   :  { %v1912_v54 = vsel %vm1816_vm15, 1.0, %v2053_v9  ;;  %v991_v9 = vsub.f32 %v2495_v53, %v2458_v36  ;;  %v1553_v36 = vsel %vm83_vm0, %v1552_v3, 0.0  ;;  %v1413_v53 = vsel %vm83_vm0, %v1412_v43, 0.0 }
0x34fc   :  { %v1825_v56 = vmul.f32 %v2051_v55, %v1912_v54  ;;  %v1819_v46 = vmul.f32 %v2052_v59, %v1912_v54  ;;  %v1133_v60 = vsel %vm83_vm0, %v1132_v62, 0.0 }
0x34fd   :  { %v992_v58 = vmul.f32 %v991_v9, %v991_v9  ;;  %v2714_v5 = vpop.xlane.xlu1 %854 }
0x34fe   :  { %v1826_v48 = vsel %vm816_vm10, %v1825_v56, 0.0  ;;  %v1820_v49 = vsel %vm816_vm10, %v1819_v46, 0.0  ;;  %vm863_vm10 = vcmp.eq.f32.partialorder %v2714_v5, inf  ;;  %v866_v63 = vand.u32 2147483648, %v2714_v5 }
0x34ff   :  { %1827 = vadd.xlane.f32.xlu0 %v1826_v48  ;;  %1821 = vadd.xlane.f32.xlu2 %v1820_v49  ;;  %v993_v11 = vsel %vm83_vm0, %v992_v58, 0.0  ;;  %vm865_vm2 = vcmp.eq.f32.partialorder %v2714_v5, 0.0 }
0x3505   :  { %v2719_v14 = vpop.xlane.xlu1 %1274 }
0x3506   :  { %vm1283_vm5 = vcmp.eq.f32.partialorder %v2719_v14, inf  ;;  %vm1285_vm7 = vcmp.eq.f32.partialorder %v2719_v14, 0.0 }
0x3507   :  { %1134 = vadd.xlane.f32.xlu0 %v1133_v60  ;;  %994 = vadd.xlane.f32.xlu2 %v993_v11 }
0x350d   :  { %v2731_v61 = vpop.xlane.xlu1 %1694 }
0x350e   :  { %vm1703_vm12 = vcmp.eq.f32.partialorder %v2731_v61, inf  ;;  %vm1705_vm13 = vcmp.eq.f32.partialorder %v2731_v61, 0.0 }
0x350f   :  { %1554 = vadd.xlane.f32.xlu0 %v1553_v36  ;;  %1414 = vadd.xlane.f32.xlu2 %v1413_v53 }
0x3572   :  { %v1828_v23 = vpop.xlane.xlu0 %1827  ;;  %v1822_v51 = vpop.xlane.xlu2 %1821 }
0x3573   :  { %v1829_v1 = vmul.f32 %v2451_v30, %v1828_v23  ;;  %v1823_v2 = vmul.f32 %v2454_v31, %v1822_v51 }
0x3575   :  { %v1830_v19 = vadd.f32 %v1829_v1, %v1823_v2 }
0x3577   :  { %v1831_v4 = vsub.f32 %v1830_v19, %v2660_v24 }
0x3579   :  { %v1832_v27 = vmul.f32 %v1831_v4, %v1831_v4 }
0x357a   :  { %v995_v8 = vpop.xlane.xlu2 %994  ;;  %v2717_v47 = vpop.xlane.xlu0 %1134 }
0x357b   :  { %v1833_v35 = vsel %vm83_vm0, %v1832_v27, 0.0  ;;  %2033 = vrsqrt.f32 %v995_v8  ;;  %vm1003_vm0 = vcmp.eq.f32.partialorder %v995_v8, inf  ;;  %v1006_v62 = vand.u32 2147483648, %v995_v8 }
0x357c   :  { %1834 = vadd.xlane.f32.xlu2 %v1833_v35  ;;  %2035 = vrsqrt.f32 %v2714_v5  ;;  %vm1005_vm1 = vcmp.eq.f32.partialorder %v995_v8, 0.0  ;;  %vm1143_vm3 = vcmp.eq.f32.partialorder %v2717_v47, inf  ;;  %v1146_v19 = vand.u32 2147483648, %v2717_v47 }
0x357d   :  { %2037 = vrsqrt.f32 %v2717_v47  ;;  %vm1145_vm4 = vcmp.eq.f32.partialorder %v2717_v47, 0.0 }
0x357e   :  { %2039 = vrsqrt.f32 %v2719_v14 }
0x3581   :  { %v2034_v13 = vpop.eup %2033 }
0x3582   :  { %v2036_v30 = vpop.eup %2035  ;;  %v2722_v31 = vpop.xlane.xlu2 %1414  ;;  %v997_v24 = vmul.f32 %v2034_v13, %v995_v8 }
0x3583   :  { %v857_v15 = vmul.f32 %v2036_v30, %v2714_v5  ;;  %2041 = vrsqrt.f32 %v2722_v31  ;;  %v2038_v40 = vpop.eup %2037  ;;  %v2727_v26 = vpop.xlane.xlu0 %1554  ;;  %vm1423_vm6 = vcmp.eq.f32.partialorder %v2722_v31, inf  ;;  %vm1425_vm8 = vcmp.eq.f32.partialorder %v2722_v31, 0.0 }
0x3584   :  { %v998_v20 = vmul.f32 %v2034_v13, %v997_v24  ;;  %v2040_v57 = vpop.eup %2039  ;;  %v1137_v16 = vmul.f32 %v2038_v40, %v2717_v47  ;;  %2043 = vrsqrt.f32 %v2727_v26  ;;  %v1286_v24 = vand.u32 2147483648, %v2719_v14 }
0x3585   :  { %v858_v28 = vmul.f32 %v2036_v30, %v857_v15  ;;  %v1277_v10 = vmul.f32 %v2040_v57, %v2719_v14  ;;  %2045 = vrsqrt.f32 %v2731_v61  ;;  %v1426_v15 = vand.u32 2147483648, %v2722_v31 }
0x3586   :  { %v999_v29 = vmul.f32 0.5, %v998_v20  ;;  %v1138_v12 = vmul.f32 %v2038_v40, %v1137_v16  ;;  %vm1563_vm9 = vcmp.eq.f32.partialorder %v2727_v26, inf  ;;  %vm1565_vm11 = vcmp.eq.f32.partialorder %v2727_v26, 0.0 }
0x3587   :  { %v859_v33 = vmul.f32 0.5, %v858_v28  ;;  %v1278_v41 = vmul.f32 %v2040_v57, %v1277_v10 }
0x3588   :  { %v1000_v37 = vsub.f32 1.5, %v999_v29  ;;  %v1139_v17 = vmul.f32 0.5, %v1138_v12  ;;  %v1566_v12 = vand.u32 2147483648, %v2727_v26 }
0x3589   :  { %v2042_v25 = vpop.eup %2041  ;;  %v860_v6 = vsub.f32 1.5, %v859_v33  ;;  %v1279_v45 = vmul.f32 0.5, %v1278_v41  ;;  %v1706_v41 = vand.u32 2147483648, %v2731_v61 }
0x358a   :  { %v1417_v34 = vmul.f32 %v2042_v25, %v2722_v31  ;;  %v2044_v38 = vpop.eup %2043  ;;  %v1001_v42 = vmul.f32 %v2034_v13, %v1000_v37  ;;  %v1140_v50 = vsub.f32 1.5, %v1139_v17 }
0x358b   :  { %v1557_v44 = vmul.f32 %v2044_v38, %v2727_v26  ;;  %v2046_v7 = vpop.eup %2045  ;;  %v861_v39 = vmul.f32 %v2036_v30, %v860_v6  ;;  %v1280_v56 = vsub.f32 1.5, %v1279_v45 }
0x358c   :  { %v1418_v18 = vmul.f32 %v2042_v25, %v1417_v34  ;;  %v1697_v21 = vmul.f32 %v2046_v7, %v2731_v61  ;;  %v1002_v22 = vmul.f32 %v1001_v42, %v995_v8  ;;  %v1141_v59 = vmul.f32 %v2038_v40, %v1140_v50 }
0x358d   :  { %v1558_v54 = vmul.f32 %v2044_v38, %v1557_v44  ;;  %v862_v55 = vmul.f32 %v861_v39, %v2714_v5  ;;  %v1281_v58 = vmul.f32 %v2040_v57, %v1280_v56 }
0x358e   :  { %v1419_v52 = vmul.f32 0.5, %v1418_v18  ;;  %v1698_v48 = vmul.f32 %v2046_v7, %v1697_v21  ;;  %v1004_v49 = vsel %vm1003_vm0, %v995_v8, %v1002_v22  ;;  %v1142_v60 = vmul.f32 %v1141_v59, %v2717_v47 }
0x358f   :  { %v1559_v32 = vmul.f32 0.5, %v1558_v54  ;;  %v864_v9 = vsel %vm863_vm10, %v2714_v5, %v862_v55  ;;  %v1007_v0 = vsel %vm1005_vm1, %v1006_v62, %v1004_v49  ;;  %v1282_v23 = vmul.f32 %v1281_v58, %v2719_v14 }
0x3590   :  { %v1420_v46 = vsub.f32 1.5, %v1419_v52  ;;  %v1699_v3 = vmul.f32 0.5, %v1698_v48  ;;  %v867_v53 = vsel %vm865_vm2, %v866_v63, %v864_v9  ;;  %v1144_v51 = vsel %vm1143_vm3, %v2717_v47, %v1142_v60 }
0x3591   :  { %v1560_v43 = vsub.f32 1.5, %v1559_v32  ;;  %v1009_v1 = vadd.f32 %v1007_v0, %v867_v53  ;;  %v1147_v35 = vsel %vm1145_vm4, %v1146_v19, %v1144_v51  ;;  %v1284_v5 = vsel %vm1283_vm5, %v2719_v14, %v1282_v23 }
0x3592   :  { %v1421_v11 = vmul.f32 %v2042_v25, %v1420_v46  ;;  %v1700_v4 = vsub.f32 1.5, %v1699_v3  ;;  %v1287_v28 = vsel %vm1285_vm7, %v1286_v24, %v1284_v5  ;;  %vm1849_vm0 = vcmask 7168  }
0x3593   :  { %v1561_v27 = vmul.f32 %v2044_v38, %v1560_v43  ;;  %v1149_v8 = vadd.f32 %v1147_v35, %v1009_v1 }
0x3594   :  { %v1422_v2 = vmul.f32 %v1421_v11, %v2722_v31  ;;  %v1701_v40 = vmul.f32 %v2046_v7, %v1700_v4 }
0x3595   :  { %v1562_v47 = vmul.f32 %v1561_v27, %v2727_v26  ;;  %v1289_v16 = vadd.f32 %v1287_v28, %v1149_v8 }
0x3596   :  { %v1424_v13 = vsel %vm1423_vm6, %v2722_v31, %v1422_v2  ;;  %v1702_v29 = vmul.f32 %v1701_v40, %v2731_v61 }
0x3597   :  { %v1427_v57 = vsel %vm1425_vm8, %v1426_v15, %v1424_v13  ;;  %v1564_v33 = vsel %vm1563_vm9, %v2727_v26, %v1562_v47 }
0x3598   :  { %v1429_v10 = vadd.f32 %v1427_v57, %v1289_v16  ;;  %v1567_v31 = vsel %vm1565_vm11, %v1566_v12, %v1564_v33  ;;  %v1704_v37 = vsel %vm1703_vm12, %v2731_v61, %v1702_v29 }
0x3599   :  { %v1707_v18 = vsel %vm1705_vm13, %v1706_v41, %v1704_v37 }
0x359a   :  { %v1569_v38 = vadd.f32 %v1567_v31, %v1429_v10 }
0x359c   :  { %v1709_v44 = vadd.f32 %v1707_v18, %v1569_v38 }
0x35ef   :  { %v1835_v36 = vpop.xlane.xlu2 %1834 }
0x35f0   :  { %2047 = vrsqrt.f32 %v1835_v36  ;;  %vm1843_vm14 = vcmp.eq.f32.partialorder %v1835_v36, inf  ;;  %v1846_v42 = vand.u32 2147483648, %v1835_v36  ;;  %vm1845_vm15 = vcmp.eq.f32.partialorder %v1835_v36, 0.0 }
0x35f6   :  { %v2048_v30 = vpop.eup %2047 }
0x35f7   :  { %v1837_v20 = vmul.f32 %v2048_v30, %v1835_v36 }
0x35f9   :  { %v1838_v25 = vmul.f32 %v2048_v30, %v1837_v20 }
0x35fb   :  { %v1839_v14 = vmul.f32 0.5, %v1838_v25 }
0x35fd   :  { %v1840_v34 = vsub.f32 1.5, %v1839_v14 }
0x35ff   :  { %v1841_v6 = vmul.f32 %v2048_v30, %v1840_v34 }
0x3601   :  { %v1842_v17 = vmul.f32 %v1841_v6, %v1835_v36 }
0x3603   :  { %v1844_v7 = vsel %vm1843_vm14, %v1835_v36, %v1842_v17 }
0x3604   :  { %v1847_v26 = vsel %vm1845_vm15, %v1846_v42, %v1844_v7 }
0x3605   :  { %v1848_v39 = vadd.f32 %v1847_v26, %v1709_v44 }
0x3607   :  { %1850 = vst.msk [vmem:[%s2784_s13] sm:$0xff] %vm1849_vm0, %v1848_v39 }

</bundles_post_ra>
